<compile_context>
chip_gen: v7x
topology: tpu7x:2x2x1
jax: 0.10.0
libtpu: 0.0.40
codegen_flags: <defaults>
</compile_context>

<pallas_src>
import functools
import numpy as np
import jax
import jax.numpy as jnp
from jax import lax
from jax.experimental import pallas as pl
from jax.experimental.pallas import tpu as pltpu

# ----------------------------- synthetic config ----------------------------------------
VOCAB = 128
HIDDEN = 32
FFN = 64
NUM_HEADS = 4
TEMPLATE = (3, 3)
SPELL_LEN = sum(TEMPLATE)
PAD_ID, UNK_ID, SEP_ID, EOS_ID, PSEUDO_ID = 0, 1, 2, 3, 127
MAX_CODE_LEN = 16
MAX_TGT_LEN = 8

LSTM_KEYS = ['w0f_x', 'w0f_h', 'b0f', 'w0b_x', 'w0b_h', 'b0b',
             'w1f_x', 'w1f_h', 'b1f', 'w1b_x', 'w1b_h', 'b1b']
MLP_KEYS = ['mlp_w1', 'mlp_b1', 'mlp_w2', 'mlp_b2']
LM_KEYS = ['ln1g', 'ln1b', 'wqkv', 'bqkv', 'wo', 'bo',
           'ln2g', 'ln2b', 'wf1', 'bf1', 'wf2', 'bf2',
           'lnfg', 'lnfb', 'wlm', 'blm']


# ----------------------------- Kernel 1: PromptAgent (BiLSTM + MLP head) -----------------
def prompt_agent_kernel(x_ref,
                        w0f_x, w0f_h, b0f, w0b_x, w0b_h, b0b,
                        w1f_x, w1f_h, b1f, w1b_x, w1b_h, b1b,
                        mw1, mb1, mw2, mb2,
                        o_ref,
                        gxf_ref, gxb_ref, yf_ref, yb_ref, y0_ref):
    """2-layer bidirectional LSTM (PyTorch gate order i,f,g,o) + Linear/ReLU/Linear head."""
    S = x_ref.shape[0]
    hd = yf_ref.shape[1]

    def run_layer(src, wxf, whf, bf, wxb, whb, bb):
        # Hoisted input projections: one (S,in)x(in,4*hd) matmul per direction instead of a
        # per-timestep (1,in) matmul on the serialized critical path.
        gxf_ref[...] = jnp.dot(src, wxf[...], preferred_element_type=jnp.float32) + bf[...]
        gxb_ref[...] = jnp.dot(src, wxb[...], preferred_element_type=jnp.float32) + bb[...]
        whf_v = whf[...]
        whb_v = whb[...]

        def cell(h, c, gx_row, wh):
            gates = gx_row + jnp.dot(h, wh, preferred_element_type=jnp.float32)   # (1, 4*hd)
            sg = jax.nn.sigmoid(gates)       # whole-row EUP activation
            th = jnp.tanh(gates)             # whole-row EUP activation
            i_g = sg[:, 0:hd]
            f_g = sg[:, hd:2 * hd]
            g_g = th[:, 2 * hd:3 * hd]
            o_g = sg[:, 3 * hd:4 * hd]
            c = f_g * c + i_g * g_g
            h = o_g * jnp.tanh(c)
            return h, c

        def body(s, carry):
            hf, cf, hb, cb = carry
            tb = S - 1 - s
            # forward & backward chains are independent -> interleaved in one recurrence
            hf, cf = cell(hf, cf, gxf_ref[pl.ds(s, 1), :], whf_v)
            hb, cb = cell(hb, cb, gxb_ref[pl.ds(tb, 1), :], whb_v)
            yf_ref[pl.ds(s, 1), :] = hf
            yb_ref[pl.ds(tb, 1), :] = hb
            return (hf, cf, hb, cb)

        z = jnp.zeros((1, hd), jnp.float32)
        lax.fori_loop(0, S, body, (z, z, z, z), unroll=True)

    # layer 0 (input = prompt embeddings)
    run_layer(x_ref[...], w0f_x, w0f_h, b0f, w0b_x, w0b_h, b0b)
    y0_ref[...] = jnp.concatenate([yf_ref[...], yb_ref[...]], axis=-1)
    # layer 1 (input = layer-0 bidirectional output)
    run_layer(y0_ref[...], w1f_x, w1f_h, b1f, w1b_x, w1b_h, b1b)
    y = jnp.concatenate([yf_ref[...], yb_ref[...]], axis=-1)

    # fused PromptAgent.mlp_head: Linear -> ReLU -> Linear
    h = jnp.dot(y, mw1[...], preferred_element_type=jnp.float32) + mb1[...]
    h = jnp.maximum(h, 0.0)
    o_ref[...] = jnp.dot(h, mw2[...], preferred_element_type=jnp.float32) + mb2[...]


def prompt_agent_forward(x, params):
    S, H = x.shape
    hd = H // 2
    ws = [params['lstm'][k] for k in LSTM_KEYS] + [params[k] for k in MLP_KEYS]

    def full2d(shape):
        return pl.BlockSpec(shape, lambda i: (0, 0))

    return pl.pallas_call(
        prompt_agent_kernel,
        out_shape=jax.ShapeDtypeStruct((S, H), jnp.float32),
        grid=(1,),
        in_specs=[full2d((S, H))] + [full2d(w.shape) for w in ws],
        out_specs=full2d((S, H)),
        scratch_shapes=[pltpu.VMEM((S, 4 * hd), jnp.float32),   # hoisted fwd gate inputs
                        pltpu.VMEM((S, 4 * hd), jnp.float32),   # hoisted bwd gate inputs
                        pltpu.VMEM((S, hd), jnp.float32),
                        pltpu.VMEM((S, hd), jnp.float32),
                        pltpu.VMEM((S, H), jnp.float32)],
        compiler_params=pltpu.CompilerParams(dimension_semantics=("arbitrary",)),
    )(x, *ws)


# ----------------------------- Kernel 2: tiny causal LM + shifted CE loss (fused) --------
def lm_loss_kernel(idx_ref, x_ref, mask_ref, labels_ref,
                   ln1g, ln1b, wqkv, bqkv, wo, bo,
                   ln2g, ln2b, wf1, bf1, wf2, bf2,
                   lnfg, lnfb, wlm, blm,
                   loss_ref, *, pad_id, num_heads):
    """Tiny causal-LM stand-in + per-sample shifted CE(ignore_index=pad, sum). One batch elem."""
    x = x_ref[0]                  # (T, H) f32
    key_mask = mask_ref[0]        # (1, T) f32, 1.0 for non-pad tokens
    labels = labels_ref[0]        # (T, 1) int32
    T, H = x.shape
    nh = num_heads
    hd = H // nh
    scale = 1.0 / (hd ** 0.5)

    def layer_norm(v, g_ref, b_ref):
        mu = jnp.mean(v, axis=-1, keepdims=True)
        var = jnp.mean((v - mu) ** 2, axis=-1, keepdims=True)
        return (v - mu) * lax.rsqrt(var + 1e-5) * g_ref[...] + b_ref[...]

    # --- causal multi-head self-attention (all heads in one batched contraction) ---
    h1 = layer_norm(x, ln1g, ln1b)
    qkv = jnp.dot(h1.astype(jnp.bfloat16), wqkv[...],
                  preferred_element_type=jnp.float32) + bqkv[...]            # (T, 3H) f32
    q, k, v = qkv[:, 0:H], qkv[:, H:2 * H], qkv[:, 2 * H:3 * H]

    def split_heads(a):                                                      # (T,H) -> (nh,T,hd)
        return jnp.concatenate([a[None, :, i * hd:(i + 1) * hd] for i in range(nh)], axis=0)

    q3 = split_heads(q).astype(jnp.bfloat16)
    k3 = split_heads(k).astype(jnp.bfloat16)
    v3 = split_heads(v).astype(jnp.bfloat16)

    row_ids = lax.broadcasted_iota(jnp.int32, (T, T), 0)
    col_ids = lax.broadcasted_iota(jnp.int32, (T, T), 1)
    allow = jnp.logical_and(row_ids >= col_ids, key_mask > 0.5)              # (T, T)

    s = jnp.einsum('hqd,hkd->hqk', q3, k3,
                   preferred_element_type=jnp.float32) * scale               # (nh, T, T)
    s = jnp.where(allow[None, :, :], s, jnp.float32(-1e9))
    m = jnp.max(s, axis=-1, keepdims=True)
    p = jnp.exp(s - m)
    p = p / jnp.sum(p, axis=-1, keepdims=True)
    ctx3 = jnp.einsum('hqk,hkd->hqd', p.astype(jnp.bfloat16), v3,
                      preferred_element_type=jnp.float32)                    # (nh, T, hd)
    ctx = jnp.concatenate([ctx3[i] for i in range(nh)], axis=-1)             # (T, H)

    x = x + jnp.dot(ctx.astype(jnp.bfloat16), wo[...],
                    preferred_element_type=jnp.float32) + bo[...]

    # --- feed-forward ---
    h2 = layer_norm(x, ln2g, ln2b)
    ff = jnp.dot(h2.astype(jnp.bfloat16), wf1[...],
                 preferred_element_type=jnp.float32) + bf1[...]
    ff = jnp.maximum(ff, 0.0)
    x = x + jnp.dot(ff.astype(jnp.bfloat16), wf2[...],
                    preferred_element_type=jnp.float32) + bf2[...]

    # --- final LN + tied LM head; logits stay on-chip, never written to HBM ---
    hf = layer_norm(x, lnfg, lnfb)
    logits = jnp.dot(hf.astype(jnp.bfloat16), wlm[...],
                     preferred_element_type=jnp.float32) + blm[...]          # (T, V)
    V = logits.shape[1]

    # --- fused shifted CrossEntropy: loss_fct(logits[i][idx:-1], inputs[i][idx+1:]) ---
    start = idx_ref[pl.program_id(0)]                                        # scalar from SMEM
    next_col = jnp.concatenate(
        [labels[1:, :], jnp.full((1, 1), pad_id, dtype=jnp.int32)], axis=0)  # (T, 1)
    mx = jnp.max(logits, axis=-1, keepdims=True)
    lse = mx + jnp.log(jnp.sum(jnp.exp(logits - mx), axis=-1, keepdims=True))
    vcol = lax.broadcasted_iota(jnp.int32, (T, V), 1)
    picked = jnp.sum(jnp.where(vcol == next_col, logits, 0.0), axis=-1, keepdims=True)
    t_ids = lax.broadcasted_iota(jnp.int32, (T, 1), 0)
    valid = jnp.logical_and(jnp.logical_and(t_ids >= start, t_ids <= T - 2),
                            next_col != pad_id)
    nll = jnp.where(valid, lse - picked, 0.0)
    # lane-dense (1,128) write: unmasked vst instead of a 1-lane partial store
    loss_ref[0] = jnp.broadcast_to(jnp.sum(nll), (1, 128))


def lm_loss_forward(sum_idx, embeds, mask3, labels3, lm_params):
    B, T, H = embeds.shape
    ws = [lm_params[k] for k in LM_KEYS]
    kernel = functools.partial(lm_loss_kernel, pad_id=PAD_ID, num_heads=NUM_HEADS)

    def wspec(shape):
        return pl.BlockSpec(shape, lambda b, idx: (0, 0))

    grid_spec = pltpu.PrefetchScalarGridSpec(
        num_scalar_prefetch=1,
        grid=(B,),
        in_specs=[pl.BlockSpec((1, T, H), lambda b, idx: (b, 0, 0)),
                  pl.BlockSpec((1, 1, T), lambda b, idx: (b, 0, 0)),
                  pl.BlockSpec((1, T, 1), lambda b, idx: (b, 0, 0))]
                 + [wspec(w.shape) for w in ws],
        out_specs=pl.BlockSpec((1, 1, 128), lambda b, idx: (b, 0, 0)),
    )
    out = pl.pallas_call(
        kernel,
        out_shape=jax.ShapeDtypeStruct((B, 1, 128), jnp.float32),
        grid_spec=grid_spec,
        compiler_params=pltpu.CompilerParams(dimension_semantics=("parallel",)),
    )(sum_idx, embeds, mask3, labels3, *ws)
    return out[:, 0, 0]


# ----------------------------- StageCS forward (training path, x_ts given) ---------------
@jax.jit
def stagecs_forward(params, queries, sum_idx):
    B, T = queries.shape
    S_sp = params['prompt_embed'].shape[0]

    # PromptAgent(): embedding(seq_indices) -> BiLSTM -> MLP head (one fused pallas_call)
    replace_embeds = prompt_agent_forward(params['prompt_embed'], params)    # (S_sp, H)

    # cstuning_embed_input
    q4emb = jnp.where(queries == PSEUDO_ID, UNK_ID, queries)
    raw = jnp.take(params['tok_embed'], q4emb, axis=0)                       # (B, T, H)
    is_p = queries == PSEUDO_ID
    rank = jnp.clip(jnp.cumsum(is_p.astype(jnp.int32), axis=1) - 1, 0, S_sp - 1)
    rep = jnp.take(replace_embeds, rank, axis=0)                             # (B, T, H)
    inputs_embeds = jnp.where(is_p[..., None], rep, raw)

    attention_mask = (queries != PAD_ID).astype(jnp.float32)
    mask3 = attention_mask.reshape(B, 1, T)
    labels3 = queries.astype(jnp.int32).reshape(B, T, 1)

    # fused stand-in causal LM + shifted CE loss (per-sample sum), averaged over batch
    per_sample = lm_loss_forward(sum_idx, inputs_embeds, mask3, labels3, params['lm'])
    return jnp.sum(per_sample) / B


# ----------------------------- deterministic parameter init ------------------------------
def init_params(key):
    ks = list(jax.random.split(key, 32))
    it = iter(ks)

    def nrm(shape, scale=0.02):
        return (scale * jax.random.normal(next(it), shape)).astype(jnp.float32)

    H, V, F = HIDDEN, VOCAB, FFN
    hd = H // 2
    p = {'tok_embed': nrm((V, H)), 'prompt_embed': nrm((SPELL_LEN, H))}

    lstm = {}
    for layer in range(2):
        in_dim = H  # layer 0 input = H; layer 1 input = 2*hd = H
        for d in ('f', 'b'):
            lstm[f'w{layer}{d}_x'] = nrm((in_dim, 4 * hd), 0.1)
            lstm[f'w{layer}{d}_h'] = nrm((hd, 4 * hd), 0.1)
            lstm[f'b{layer}{d}'] = nrm((1, 4 * hd), 0.1)
    p['lstm'] = lstm

    p['mlp_w1'] = nrm((H, H)); p['mlp_b1'] = jnp.zeros((1, H), jnp.float32)
    p['mlp_w2'] = nrm((H, H)); p['mlp_b2'] = jnp.zeros((1, H), jnp.float32)

    # LM matmul weights kept in bf16 (MXU-native on v5e/v6e/v7x); LN/biases stay f32.
    lm = {
        'ln1g': jnp.ones((1, H), jnp.float32), 'ln1b': jnp.zeros((1, H), jnp.float32),
        'wqkv': nrm((H, 3 * H)).astype(jnp.bfloat16), 'bqkv': jnp.zeros((1, 3 * H), jnp.float32),
        'wo': nrm((H, H)).astype(jnp.bfloat16), 'bo': jnp.zeros((1, H), jnp.float32),
        'ln2g': jnp.ones((1, H), jnp.float32), 'ln2b': jnp.zeros((1, H), jnp.float32),
        'wf1': nrm((H, F)).astype(jnp.bfloat16), 'bf1': jnp.zeros((1, F), jnp.float32),
        'wf2': nrm((F, H)).astype(jnp.bfloat16), 'bf2': jnp.zeros((1, H), jnp.float32),
        'lnfg': jnp.ones((1, H), jnp.float32), 'lnfb': jnp.zeros((1, H), jnp.float32),
        'wlm': jnp.transpose(p['tok_embed']).astype(jnp.bfloat16),   # tied LM head (H, V)
        'blm': jnp.zeros((1, V), jnp.float32),
    }
    p['lm'] = lm
    return p


def get_query(code_ids, target_ids):
    """StageCS.get_query with synthetic token ids (tokenizer replaced)."""
    left = [PSEUDO_ID] * TEMPLATE[0] + list(code_ids[:MAX_CODE_LEN]) + [PSEUDO_ID] * TEMPLATE[1]
    right = list(target_ids[:MAX_TGT_LEN]) + [EOS_ID]
    return left + [SEP_ID] + right, len(left)


# ----------------------------- main -------------------------------------------------------
if __name__ == "__main__":
    key = jax.random.PRNGKey(0)
    kp, kc0, kc1, kt0, kt1 = jax.random.split(key, 5)
    params = init_params(kp)

    # synthetic "x_hs / x_ts" token id sequences (tokenizer stand-in)
    code0 = np.asarray(jax.random.randint(kc0, (5,), 5, VOCAB - 1)).tolist()
    code1 = np.asarray(jax.random.randint(kc1, (4,), 5, VOCAB - 1)).tolist()
    tgt0 = np.asarray(jax.random.randint(kt0, (4,), 5, VOCAB - 1)).tolist()
    tgt1 = np.asarray(jax.random.randint(kt1, (3,), 5, VOCAB - 1)).tolist()

    q0, idx0 = get_query(code0, tgt0)
    q1, idx1 = get_query(code1, tgt1)
    # pad the batch seq length up to a sublane multiple (extra PAD positions are attention-masked
    # and carry PAD labels, so the loss is unchanged).
    T = max(len(q0), len(q1))
    T = ((T + 7) // 8) * 8
    queries_np = np.full((2, T), PAD_ID, dtype=np.int32)
    queries_np[0, :len(q0)] = q0
    queries_np[1, :len(q1)] = q1

    queries = jnp.asarray(queries_np, dtype=jnp.int32)          # (2, 24)
    sum_idx = jnp.asarray([idx0, idx1], dtype=jnp.int32)        # (2,)

    loss = stagecs_forward(params, queries, sum_idx)
    loss = jax.block_until_ready(loss)
    assert bool(jnp.isfinite(loss)), f"non-finite loss: {loss}"
    print("KERNEL_OK")
</pallas_src>

<mosaic_0001>
module attributes {stable_mosaic.version = 11 : i64} {
  func.func @prompt_agent_kernel(%arg0: i32, %arg1: memref<6x32xf32, #tpu.memory_space<vmem>>, %arg2: memref<32x64xf32, #tpu.memory_space<vmem>>, %arg3: memref<16x64xf32, #tpu.memory_space<vmem>>, %arg4: memref<1x64xf32, #tpu.memory_space<vmem>>, %arg5: memref<32x64xf32, #tpu.memory_space<vmem>>, %arg6: memref<16x64xf32, #tpu.memory_space<vmem>>, %arg7: memref<1x64xf32, #tpu.memory_space<vmem>>, %arg8: memref<32x64xf32, #tpu.memory_space<vmem>>, %arg9: memref<16x64xf32, #tpu.memory_space<vmem>>, %arg10: memref<1x64xf32, #tpu.memory_space<vmem>>, %arg11: memref<32x64xf32, #tpu.memory_space<vmem>>, %arg12: memref<16x64xf32, #tpu.memory_space<vmem>>, %arg13: memref<1x64xf32, #tpu.memory_space<vmem>>, %arg14: memref<32x32xf32, #tpu.memory_space<vmem>>, %arg15: memref<1x32xf32, #tpu.memory_space<vmem>>, %arg16: memref<32x32xf32, #tpu.memory_space<vmem>>, %arg17: memref<1x32xf32, #tpu.memory_space<vmem>>, %arg18: memref<6x32xf32, #tpu.memory_space<vmem>>, %arg19: memref<6x64xf32, #tpu.memory_space<vmem>>, %arg20: memref<6x64xf32, #tpu.memory_space<vmem>>, %arg21: memref<6x16xf32, #tpu.memory_space<vmem>>, %arg22: memref<6x16xf32, #tpu.memory_space<vmem>>, %arg23: memref<6x32xf32, #tpu.memory_space<vmem>>) attributes {dimension_semantics = [#tpu.dimension_semantics<arbitrary>], iteration_bounds = array<i64: 1>, scalar_prefetch = 0 : i64, scratch_operands = 5 : i64, tpu.core_type = #tpu.core_type<tc>, window_params = [{pipeline_mode = #tpu.pipeline_mode<synchronous>, transform_indices = @transform_0, window_bounds = array<i64: 6, 32>}, {pipeline_mode = #tpu.pipeline_mode<synchronous>, transform_indices = @transform_1, window_bounds = array<i64: 32, 64>}, {pipeline_mode = #tpu.pipeline_mode<synchronous>, transform_indices = @transform_2, window_bounds = array<i64: 16, 64>}, {pipeline_mode = #tpu.pipeline_mode<synchronous>, transform_indices = @transform_3, window_bounds = array<i64: 1, 64>}, {pipeline_mode = #tpu.pipeline_mode<synchronous>, transform_indices = @transform_4, window_bounds = array<i64: 32, 64>}, {pipeline_mode = #tpu.pipeline_mode<synchronous>, transform_indices = @transform_5, window_bounds = array<i64: 16, 64>}, {pipeline_mode = #tpu.pipeline_mode<synchronous>, transform_indices = @transform_6, window_bounds = array<i64: 1, 64>}, {pipeline_mode = #tpu.pipeline_mode<synchronous>, transform_indices = @transform_7, window_bounds = array<i64: 32, 64>}, {pipeline_mode = #tpu.pipeline_mode<synchronous>, transform_indices = @transform_8, window_bounds = array<i64: 16, 64>}, {pipeline_mode = #tpu.pipeline_mode<synchronous>, transform_indices = @transform_9, window_bounds = array<i64: 1, 64>}, {pipeline_mode = #tpu.pipeline_mode<synchronous>, transform_indices = @transform_10, window_bounds = array<i64: 32, 64>}, {pipeline_mode = #tpu.pipeline_mode<synchronous>, transform_indices = @transform_11, window_bounds = array<i64: 16, 64>}, {pipeline_mode = #tpu.pipeline_mode<synchronous>, transform_indices = @transform_12, window_bounds = array<i64: 1, 64>}, {pipeline_mode = #tpu.pipeline_mode<synchronous>, transform_indices = @transform_13, window_bounds = array<i64: 32, 32>}, {pipeline_mode = #tpu.pipeline_mode<synchronous>, transform_indices = @transform_14, window_bounds = array<i64: 1, 32>}, {pipeline_mode = #tpu.pipeline_mode<synchronous>, transform_indices = @transform_15, window_bounds = array<i64: 32, 32>}, {pipeline_mode = #tpu.pipeline_mode<synchronous>, transform_indices = @transform_16, window_bounds = array<i64: 1, 32>}, {pipeline_mode = #tpu.pipeline_mode<synchronous>, transform_indices = @transform_17, window_bounds = array<i64: 6, 32>}]} {
    %c0 = arith.constant 0 : index
    %c0_0 = arith.constant 0 : index
    %0 = vector.load %arg1[%c0, %c0_0] : memref<6x32xf32, #tpu.memory_space<vmem>>, vector<6x32xf32>
    %c0_1 = arith.constant 0 : index
    %c0_2 = arith.constant 0 : index
    %1 = vector.load %arg2[%c0_1, %c0_2] : memref<32x64xf32, #tpu.memory_space<vmem>>, vector<32x64xf32>
    %cst = arith.constant dense<0.000000e+00> : vector<6x64xf32>
    %2 = tpu.matmul %0, %1, %cst {dimension_numbers = #tpu.dot_dimension_numbers<[1], [0], [0], [1], [0, 0, 1, 1], [], []>} : vector<6x32xf32>, vector<32x64xf32>, vector<6x64xf32> -> vector<6x64xf32>
    %c0_3 = arith.constant 0 : index
    %c0_4 = arith.constant 0 : index
    %3 = vector.load %arg4[%c0_3, %c0_4] : memref<1x64xf32, #tpu.memory_space<vmem>>, vector<1x64xf32>
    %4 = vector.broadcast %3 : vector<1x64xf32> to vector<6x64xf32>
    %5 = arith.addf %2, %4 : vector<6x64xf32>
    %c0_5 = arith.constant 0 : index
    %c0_6 = arith.constant 0 : index
    %6 = vector.load %arg19[%c0_5, %c0_6] : memref<6x64xf32, #tpu.memory_space<vmem>>, vector<6x64xf32>
    tpu.vector_store %arg19[%c0_5, %c0_6], %5 {strides = array<i32>} : memref<6x64xf32, #tpu.memory_space<vmem>>, vector<6x64xf32>,
    %c0_7 = arith.constant 0 : index
    %c0_8 = arith.constant 0 : index
    %7 = vector.load %arg5[%c0_7, %c0_8] : memref<32x64xf32, #tpu.memory_space<vmem>>, vector<32x64xf32>
    %cst_9 = arith.constant dense<0.000000e+00> : vector<6x64xf32>
    %8 = tpu.matmul %0, %7, %cst_9 {dimension_numbers = #tpu.dot_dimension_numbers<[1], [0], [0], [1], [0, 0, 1, 1], [], []>} : vector<6x32xf32>, vector<32x64xf32>, vector<6x64xf32> -> vector<6x64xf32>
    %c0_10 = arith.constant 0 : index
    %c0_11 = arith.constant 0 : index
    %9 = vector.load %arg7[%c0_10, %c0_11] : memref<1x64xf32, #tpu.memory_space<vmem>>, vector<1x64xf32>
    %10 = vector.broadcast %9 : vector<1x64xf32> to vector<6x64xf32>
    %11 = arith.addf %8, %10 : vector<6x64xf32>
    %c0_12 = arith.constant 0 : index
    %c0_13 = arith.constant 0 : index
    %12 = vector.load %arg20[%c0_12, %c0_13] : memref<6x64xf32, #tpu.memory_space<vmem>>, vector<6x64xf32>
    tpu.vector_store %arg20[%c0_12, %c0_13], %11 {strides = array<i32>} : memref<6x64xf32, #tpu.memory_space<vmem>>, vector<6x64xf32>,
    %c0_14 = arith.constant 0 : index
    %c0_15 = arith.constant 0 : index
    %13 = vector.load %arg3[%c0_14, %c0_15] : memref<16x64xf32, #tpu.memory_space<vmem>>, vector<16x64xf32>
    %c0_16 = arith.constant 0 : index
    %c0_17 = arith.constant 0 : index
    %14 = vector.load %arg6[%c0_16, %c0_17] : memref<16x64xf32, #tpu.memory_space<vmem>>, vector<16x64xf32>
    %cst_18 = arith.constant 0.000000e+00 : f32
    %15 = vector.broadcast %cst_18 : f32 to vector<1x16xf32>
    %c0_i32 = arith.constant 0 : i32
    %c5_i32 = arith.constant 5 : i32
    %16 = arith.subi %c5_i32, %c0_i32 : i32
    %17 = arith.index_cast %c0_i32 : i32 to index
    %c0_19 = arith.constant 0 : index
    %18 = vector.load %arg19[%17, %c0_19] : memref<6x64xf32, #tpu.memory_space<vmem>>, vector<1x64xf32>
    %cst_20 = arith.constant dense<0.000000e+00> : vector<1x64xf32>
    %19 = tpu.matmul %15, %13, %cst_20 {dimension_numbers = #tpu.dot_dimension_numbers<[1], [0], [0], [1], [0, 0, 1, 1], [], []>} : vector<1x16xf32>, vector<16x64xf32>, vector<1x64xf32> -> vector<1x64xf32>
    %20 = arith.addf %18, %19 : vector<1x64xf32>
    %21 = arith.negf %20 : vector<1x64xf32>
    %22 = math.exp %21 : vector<1x64xf32>
    %cst_21 = arith.constant 1.000000e+00 : f32
    %23 = vector.broadcast %cst_21 : f32 to vector<1x64xf32>
    %24 = arith.addf %23, %22 : vector<1x64xf32>
    %25 = arith.divf %23, %24 : vector<1x64xf32>
    %26 = math.tanh %20 : vector<1x64xf32>
    %27 = vector.extract_strided_slice %25 {offsets = [0, 0], sizes = [1, 16], strides = [1, 1]} : vector<1x64xf32> to vector<1x16xf32>
    %28 = vector.extract_strided_slice %25 {offsets = [0, 16], sizes = [1, 16], strides = [1, 1]} : vector<1x64xf32> to vector<1x16xf32>
    %29 = vector.extract_strided_slice %26 {offsets = [0, 32], sizes = [1, 16], strides = [1, 1]} : vector<1x64xf32> to vector<1x16xf32>
    %30 = vector.extract_strided_slice %25 {offsets = [0, 48], sizes = [1, 16], strides = [1, 1]} : vector<1x64xf32> to vector<1x16xf32>
    %31 = arith.mulf %28, %15 : vector<1x16xf32>
    %32 = arith.mulf %27, %29 : vector<1x16xf32>
    %33 = arith.addf %31, %32 : vector<1x16xf32>
    %34 = math.tanh %33 : vector<1x16xf32>
    %35 = arith.mulf %30, %34 : vector<1x16xf32>
    %36 = arith.index_cast %16 : i32 to index
    %c0_22 = arith.constant 0 : index
    %37 = vector.load %arg20[%36, %c0_22] : memref<6x64xf32, #tpu.memory_space<vmem>>, vector<1x64xf32>
    %cst_23 = arith.constant dense<0.000000e+00> : vector<1x64xf32>
    %38 = tpu.matmul %15, %14, %cst_23 {dimension_numbers = #tpu.dot_dimension_numbers<[1], [0], [0], [1], [0, 0, 1, 1], [], []>} : vector<1x16xf32>, vector<16x64xf32>, vector<1x64xf32> -> vector<1x64xf32>
    %39 = arith.addf %37, %38 : vector<1x64xf32>
    %40 = arith.negf %39 : vector<1x64xf32>
    %41 = math.exp %40 : vector<1x64xf32>
    %cst_24 = arith.constant 1.000000e+00 : f32
    %42 = vector.broadcast %cst_24 : f32 to vector<1x64xf32>
    %43 = arith.addf %42, %41 : vector<1x64xf32>
    %44 = arith.divf %42, %43 : vector<1x64xf32>
    %45 = math.tanh %39 : vector<1x64xf32>
    %46 = vector.extract_strided_slice %44 {offsets = [0, 0], sizes = [1, 16], strides = [1, 1]} : vector<1x64xf32> to vector<1x16xf32>
    %47 = vector.extract_strided_slice %44 {offsets = [0, 16], sizes = [1, 16], strides = [1, 1]} : vector<1x64xf32> to vector<1x16xf32>
    %48 = vector.extract_strided_slice %45 {offsets = [0, 32], sizes = [1, 16], strides = [1, 1]} : vector<1x64xf32> to vector<1x16xf32>
    %49 = vector.extract_strided_slice %44 {offsets = [0, 48], sizes = [1, 16], strides = [1, 1]} : vector<1x64xf32> to vector<1x16xf32>
    %50 = arith.mulf %47, %15 : vector<1x16xf32>
    %51 = arith.mulf %46, %48 : vector<1x16xf32>
    %52 = arith.addf %50, %51 : vector<1x16xf32>
    %53 = math.tanh %52 : vector<1x16xf32>
    %54 = arith.mulf %49, %53 : vector<1x16xf32>
    %55 = arith.index_cast %c0_i32 : i32 to index
    %c0_25 = arith.constant 0 : index
    %56 = vector.load %arg21[%55, %c0_25] : memref<6x16xf32, #tpu.memory_space<vmem>>, vector<1x16xf32>
    tpu.vector_store %arg21[%55, %c0_25], %35 {strides = array<i32>} : memref<6x16xf32, #tpu.memory_space<vmem>>, vector<1x16xf32>,
    %57 = arith.index_cast %16 : i32 to index
    %c0_26 = arith.constant 0 : index
    %58 = vector.load %arg22[%57, %c0_26] : memref<6x16xf32, #tpu.memory_space<vmem>>, vector<1x16xf32>
    tpu.vector_store %arg22[%57, %c0_26], %54 {strides = array<i32>} : memref<6x16xf32, #tpu.memory_space<vmem>>, vector<1x16xf32>,
    %c1_i32 = arith.constant 1 : i32
    %c5_i32_27 = arith.constant 5 : i32
    %59 = arith.subi %c5_i32_27, %c1_i32 : i32
    %60 = arith.index_cast %c1_i32 : i32 to index
    %c0_28 = arith.constant 0 : index
    %61 = vector.load %arg19[%60, %c0_28] : memref<6x64xf32, #tpu.memory_space<vmem>>, vector<1x64xf32>
    %cst_29 = arith.constant dense<0.000000e+00> : vector<1x64xf32>
    %62 = tpu.matmul %35, %13, %cst_29 {dimension_numbers = #tpu.dot_dimension_numbers<[1], [0], [0], [1], [0, 0, 1, 1], [], []>} : vector<1x16xf32>, vector<16x64xf32>, vector<1x64xf32> -> vector<1x64xf32>
    %63 = arith.addf %61, %62 : vector<1x64xf32>
    %64 = arith.negf %63 : vector<1x64xf32>
    %65 = math.exp %64 : vector<1x64xf32>
    %cst_30 = arith.constant 1.000000e+00 : f32
    %66 = vector.broadcast %cst_30 : f32 to vector<1x64xf32>
    %67 = arith.addf %66, %65 : vector<1x64xf32>
    %68 = arith.divf %66, %67 : vector<1x64xf32>
    %69 = math.tanh %63 : vector<1x64xf32>
    %70 = vector.extract_strided_slice %68 {offsets = [0, 0], sizes = [1, 16], strides = [1, 1]} : vector<1x64xf32> to vector<1x16xf32>
    %71 = vector.extract_strided_slice %68 {offsets = [0, 16], sizes = [1, 16], strides = [1, 1]} : vector<1x64xf32> to vector<1x16xf32>
    %72 = vector.extract_strided_slice %69 {offsets = [0, 32], sizes = [1, 16], strides = [1, 1]} : vector<1x64xf32> to vector<1x16xf32>
    %73 = vector.extract_strided_slice %68 {offsets = [0, 48], sizes = [1, 16], strides = [1, 1]} : vector<1x64xf32> to vector<1x16xf32>
    %74 = arith.mulf %71, %33 : vector<1x16xf32>
    %75 = arith.mulf %70, %72 : vector<1x16xf32>
    %76 = arith.addf %74, %75 : vector<1x16xf32>
    %77 = math.tanh %76 : vector<1x16xf32>
    %78 = arith.mulf %73, %77 : vector<1x16xf32>
    %79 = arith.index_cast %59 : i32 to index
    %c0_31 = arith.constant 0 : index
    %80 = vector.load %arg20[%79, %c0_31] : memref<6x64xf32, #tpu.memory_space<vmem>>, vector<1x64xf32>
    %cst_32 = arith.constant dense<0.000000e+00> : vector<1x64xf32>
    %81 = tpu.matmul %54, %14, %cst_32 {dimension_numbers = #tpu.dot_dimension_numbers<[1], [0], [0], [1], [0, 0, 1, 1], [], []>} : vector<1x16xf32>, vector<16x64xf32>, vector<1x64xf32> -> vector<1x64xf32>
    %82 = arith.addf %80, %81 : vector<1x64xf32>
    %83 = arith.negf %82 : vector<1x64xf32>
    %84 = math.exp %83 : vector<1x64xf32>
    %cst_33 = arith.constant 1.000000e+00 : f32
    %85 = vector.broadcast %cst_33 : f32 to vector<1x64xf32>
    %86 = arith.addf %85, %84 : vector<1x64xf32>
    %87 = arith.divf %85, %86 : vector<1x64xf32>
    %88 = math.tanh %82 : vector<1x64xf32>
    %89 = vector.extract_strided_slice %87 {offsets = [0, 0], sizes = [1, 16], strides = [1, 1]} : vector<1x64xf32> to vector<1x16xf32>
    %90 = vector.extract_strided_slice %87 {offsets = [0, 16], sizes = [1, 16], strides = [1, 1]} : vector<1x64xf32> to vector<1x16xf32>
    %91 = vector.extract_strided_slice %88 {offsets = [0, 32], sizes = [1, 16], strides = [1, 1]} : vector<1x64xf32> to vector<1x16xf32>
    %92 = vector.extract_strided_slice %87 {offsets = [0, 48], sizes = [1, 16], strides = [1, 1]} : vector<1x64xf32> to vector<1x16xf32>
    %93 = arith.mulf %90, %52 : vector<1x16xf32>
    %94 = arith.mulf %89, %91 : vector<1x16xf32>
    %95 = arith.addf %93, %94 : vector<1x16xf32>
    %96 = math.tanh %95 : vector<1x16xf32>
    %97 = arith.mulf %92, %96 : vector<1x16xf32>
    %98 = arith.index_cast %c1_i32 : i32 to index
    %c0_34 = arith.constant 0 : index
    %99 = vector.load %arg21[%98, %c0_34] : memref<6x16xf32, #tpu.memory_space<vmem>>, vector<1x16xf32>
    tpu.vector_store %arg21[%98, %c0_34], %78 {strides = array<i32>} : memref<6x16xf32, #tpu.memory_space<vmem>>, vector<1x16xf32>,
    %100 = arith.index_cast %59 : i32 to index
    %c0_35 = arith.constant 0 : index
    %101 = vector.load %arg22[%100, %c0_35] : memref<6x16xf32, #tpu.memory_space<vmem>>, vector<1x16xf32>
    tpu.vector_store %arg22[%100, %c0_35], %97 {strides = array<i32>} : memref<6x16xf32, #tpu.memory_space<vmem>>, vector<1x16xf32>,
    %c2_i32 = arith.constant 2 : i32
    %c5_i32_36 = arith.constant 5 : i32
    %102 = arith.subi %c5_i32_36, %c2_i32 : i32
    %103 = arith.index_cast %c2_i32 : i32 to index
    %c0_37 = arith.constant 0 : index
    %104 = vector.load %arg19[%103, %c0_37] : memref<6x64xf32, #tpu.memory_space<vmem>>, vector<1x64xf32>
    %cst_38 = arith.constant dense<0.000000e+00> : vector<1x64xf32>
    %105 = tpu.matmul %78, %13, %cst_38 {dimension_numbers = #tpu.dot_dimension_numbers<[1], [0], [0], [1], [0, 0, 1, 1], [], []>} : vector<1x16xf32>, vector<16x64xf32>, vector<1x64xf32> -> vector<1x64xf32>
    %106 = arith.addf %104, %105 : vector<1x64xf32>
    %107 = arith.negf %106 : vector<1x64xf32>
    %108 = math.exp %107 : vector<1x64xf32>
    %cst_39 = arith.constant 1.000000e+00 : f32
    %109 = vector.broadcast %cst_39 : f32 to vector<1x64xf32>
    %110 = arith.addf %109, %108 : vector<1x64xf32>
    %111 = arith.divf %109, %110 : vector<1x64xf32>
    %112 = math.tanh %106 : vector<1x64xf32>
    %113 = vector.extract_strided_slice %111 {offsets = [0, 0], sizes = [1, 16], strides = [1, 1]} : vector<1x64xf32> to vector<1x16xf32>
    %114 = vector.extract_strided_slice %111 {offsets = [0, 16], sizes = [1, 16], strides = [1, 1]} : vector<1x64xf32> to vector<1x16xf32>
    %115 = vector.extract_strided_slice %112 {offsets = [0, 32], sizes = [1, 16], strides = [1, 1]} : vector<1x64xf32> to vector<1x16xf32>
    %116 = vector.extract_strided_slice %111 {offsets = [0, 48], sizes = [1, 16], strides = [1, 1]} : vector<1x64xf32> to vector<1x16xf32>
    %117 = arith.mulf %114, %76 : vector<1x16xf32>
    %118 = arith.mulf %113, %115 : vector<1x16xf32>
    %119 = arith.addf %117, %118 : vector<1x16xf32>
    %120 = math.tanh %119 : vector<1x16xf32>
    %121 = arith.mulf %116, %120 : vector<1x16xf32>
    %122 = arith.index_cast %102 : i32 to index
    %c0_40 = arith.constant 0 : index
    %123 = vector.load %arg20[%122, %c0_40] : memref<6x64xf32, #tpu.memory_space<vmem>>, vector<1x64xf32>
    %cst_41 = arith.constant dense<0.000000e+00> : vector<1x64xf32>
    %124 = tpu.matmul %97, %14, %cst_41 {dimension_numbers = #tpu.dot_dimension_numbers<[1], [0], [0], [1], [0, 0, 1, 1], [], []>} : vector<1x16xf32>, vector<16x64xf32>, vector<1x64xf32> -> vector<1x64xf32>
    %125 = arith.addf %123, %124 : vector<1x64xf32>
    %126 = arith.negf %125 : vector<1x64xf32>
    %127 = math.exp %126 : vector<1x64xf32>
    %cst_42 = arith.constant 1.000000e+00 : f32
    %128 = vector.broadcast %cst_42 : f32 to vector<1x64xf32>
    %129 = arith.addf %128, %127 : vector<1x64xf32>
    %130 = arith.divf %128, %129 : vector<1x64xf32>
    %131 = math.tanh %125 : vector<1x64xf32>
    %132 = vector.extract_strided_slice %130 {offsets = [0, 0], sizes = [1, 16], strides = [1, 1]} : vector<1x64xf32> to vector<1x16xf32>
    %133 = vector.extract_strided_slice %130 {offsets = [0, 16], sizes = [1, 16], strides = [1, 1]} : vector<1x64xf32> to vector<1x16xf32>
    %134 = vector.extract_strided_slice %131 {offsets = [0, 32], sizes = [1, 16], strides = [1, 1]} : vector<1x64xf32> to vector<1x16xf32>
    %135 = vector.extract_strided_slice %130 {offsets = [0, 48], sizes = [1, 16], strides = [1, 1]} : vector<1x64xf32> to vector<1x16xf32>
    %136 = arith.mulf %133, %95 : vector<1x16xf32>
    %137 = arith.mulf %132, %134 : vector<1x16xf32>
    %138 = arith.addf %136, %137 : vector<1x16xf32>
    %139 = math.tanh %138 : vector<1x16xf32>
    %140 = arith.mulf %135, %139 : vector<1x16xf32>
    %141 = arith.index_cast %c2_i32 : i32 to index
    %c0_43 = arith.constant 0 : index
    %142 = vector.load %arg21[%141, %c0_43] : memref<6x16xf32, #tpu.memory_space<vmem>>, vector<1x16xf32>
    tpu.vector_store %arg21[%141, %c0_43], %121 {strides = array<i32>} : memref<6x16xf32, #tpu.memory_space<vmem>>, vector<1x16xf32>,
    %143 = arith.index_cast %102 : i32 to index
    %c0_44 = arith.constant 0 : index
    %144 = vector.load %arg22[%143, %c0_44] : memref<6x16xf32, #tpu.memory_space<vmem>>, vector<1x16xf32>
    tpu.vector_store %arg22[%143, %c0_44], %140 {strides = array<i32>} : memref<6x16xf32, #tpu.memory_space<vmem>>, vector<1x16xf32>,
    %c3_i32 = arith.constant 3 : i32
    %c5_i32_45 = arith.constant 5 : i32
    %145 = arith.subi %c5_i32_45, %c3_i32 : i32
    %146 = arith.index_cast %c3_i32 : i32 to index
    %c0_46 = arith.constant 0 : index
    %147 = vector.load %arg19[%146, %c0_46] : memref<6x64xf32, #tpu.memory_space<vmem>>, vector<1x64xf32>
    %cst_47 = arith.constant dense<0.000000e+00> : vector<1x64xf32>
    %148 = tpu.matmul %121, %13, %cst_47 {dimension_numbers = #tpu.dot_dimension_numbers<[1], [0], [0], [1], [0, 0, 1, 1], [], []>} : vector<1x16xf32>, vector<16x64xf32>, vector<1x64xf32> -> vector<1x64xf32>
    %149 = arith.addf %147, %148 : vector<1x64xf32>
    %150 = arith.negf %149 : vector<1x64xf32>
    %151 = math.exp %150 : vector<1x64xf32>
    %cst_48 = arith.constant 1.000000e+00 : f32
    %152 = vector.broadcast %cst_48 : f32 to vector<1x64xf32>
    %153 = arith.addf %152, %151 : vector<1x64xf32>
    %154 = arith.divf %152, %153 : vector<1x64xf32>
    %155 = math.tanh %149 : vector<1x64xf32>
    %156 = vector.extract_strided_slice %154 {offsets = [0, 0], sizes = [1, 16], strides = [1, 1]} : vector<1x64xf32> to vector<1x16xf32>
    %157 = vector.extract_strided_slice %154 {offsets = [0, 16], sizes = [1, 16], strides = [1, 1]} : vector<1x64xf32> to vector<1x16xf32>
    %158 = vector.extract_strided_slice %155 {offsets = [0, 32], sizes = [1, 16], strides = [1, 1]} : vector<1x64xf32> to vector<1x16xf32>
    %159 = vector.extract_strided_slice %154 {offsets = [0, 48], sizes = [1, 16], strides = [1, 1]} : vector<1x64xf32> to vector<1x16xf32>
    %160 = arith.mulf %157, %119 : vector<1x16xf32>
    %161 = arith.mulf %156, %158 : vector<1x16xf32>
    %162 = arith.addf %160, %161 : vector<1x16xf32>
    %163 = math.tanh %162 : vector<1x16xf32>
    %164 = arith.mulf %159, %163 : vector<1x16xf32>
    %165 = arith.index_cast %145 : i32 to index
    %c0_49 = arith.constant 0 : index
    %166 = vector.load %arg20[%165, %c0_49] : memref<6x64xf32, #tpu.memory_space<vmem>>, vector<1x64xf32>
    %cst_50 = arith.constant dense<0.000000e+00> : vector<1x64xf32>
    %167 = tpu.matmul %140, %14, %cst_50 {dimension_numbers = #tpu.dot_dimension_numbers<[1], [0], [0], [1], [0, 0, 1, 1], [], []>} : vector<1x16xf32>, vector<16x64xf32>, vector<1x64xf32> -> vector<1x64xf32>
    %168 = arith.addf %166, %167 : vector<1x64xf32>
    %169 = arith.negf %168 : vector<1x64xf32>
    %170 = math.exp %169 : vector<1x64xf32>
    %cst_51 = arith.constant 1.000000e+00 : f32
    %171 = vector.broadcast %cst_51 : f32 to vector<1x64xf32>
    %172 = arith.addf %171, %170 : vector<1x64xf32>
    %173 = arith.divf %171, %172 : vector<1x64xf32>
    %174 = math.tanh %168 : vector<1x64xf32>
    %175 = vector.extract_strided_slice %173 {offsets = [0, 0], sizes = [1, 16], strides = [1, 1]} : vector<1x64xf32> to vector<1x16xf32>
    %176 = vector.extract_strided_slice %173 {offsets = [0, 16], sizes = [1, 16], strides = [1, 1]} : vector<1x64xf32> to vector<1x16xf32>
    %177 = vector.extract_strided_slice %174 {offsets = [0, 32], sizes = [1, 16], strides = [1, 1]} : vector<1x64xf32> to vector<1x16xf32>
    %178 = vector.extract_strided_slice %173 {offsets = [0, 48], sizes = [1, 16], strides = [1, 1]} : vector<1x64xf32> to vector<1x16xf32>
    %179 = arith.mulf %176, %138 : vector<1x16xf32>
    %180 = arith.mulf %175, %177 : vector<1x16xf32>
    %181 = arith.addf %179, %180 : vector<1x16xf32>
    %182 = math.tanh %181 : vector<1x16xf32>
    %183 = arith.mulf %178, %182 : vector<1x16xf32>
    %184 = arith.index_cast %c3_i32 : i32 to index
    %c0_52 = arith.constant 0 : index
    %185 = vector.load %arg21[%184, %c0_52] : memref<6x16xf32, #tpu.memory_space<vmem>>, vector<1x16xf32>
    tpu.vector_store %arg21[%184, %c0_52], %164 {strides = array<i32>} : memref<6x16xf32, #tpu.memory_space<vmem>>, vector<1x16xf32>,
    %186 = arith.index_cast %145 : i32 to index
    %c0_53 = arith.constant 0 : index
    %187 = vector.load %arg22[%186, %c0_53] : memref<6x16xf32, #tpu.memory_space<vmem>>, vector<1x16xf32>
    tpu.vector_store %arg22[%186, %c0_53], %183 {strides = array<i32>} : memref<6x16xf32, #tpu.memory_space<vmem>>, vector<1x16xf32>,
    %c4_i32 = arith.constant 4 : i32
    %c5_i32_54 = arith.constant 5 : i32
    %188 = arith.subi %c5_i32_54, %c4_i32 : i32
    %189 = arith.index_cast %c4_i32 : i32 to index
    %c0_55 = arith.constant 0 : index
    %190 = vector.load %arg19[%189, %c0_55] : memref<6x64xf32, #tpu.memory_space<vmem>>, vector<1x64xf32>
    %cst_56 = arith.constant dense<0.000000e+00> : vector<1x64xf32>
    %191 = tpu.matmul %164, %13, %cst_56 {dimension_numbers = #tpu.dot_dimension_numbers<[1], [0], [0], [1], [0, 0, 1, 1], [], []>} : vector<1x16xf32>, vector<16x64xf32>, vector<1x64xf32> -> vector<1x64xf32>
    %192 = arith.addf %190, %191 : vector<1x64xf32>
    %193 = arith.negf %192 : vector<1x64xf32>
    %194 = math.exp %193 : vector<1x64xf32>
    %cst_57 = arith.constant 1.000000e+00 : f32
    %195 = vector.broadcast %cst_57 : f32 to vector<1x64xf32>
    %196 = arith.addf %195, %194 : vector<1x64xf32>
    %197 = arith.divf %195, %196 : vector<1x64xf32>
    %198 = math.tanh %192 : vector<1x64xf32>
    %199 = vector.extract_strided_slice %197 {offsets = [0, 0], sizes = [1, 16], strides = [1, 1]} : vector<1x64xf32> to vector<1x16xf32>
    %200 = vector.extract_strided_slice %197 {offsets = [0, 16], sizes = [1, 16], strides = [1, 1]} : vector<1x64xf32> to vector<1x16xf32>
    %201 = vector.extract_strided_slice %198 {offsets = [0, 32], sizes = [1, 16], strides = [1, 1]} : vector<1x64xf32> to vector<1x16xf32>
    %202 = vector.extract_strided_slice %197 {offsets = [0, 48], sizes = [1, 16], strides = [1, 1]} : vector<1x64xf32> to vector<1x16xf32>
    %203 = arith.mulf %200, %162 : vector<1x16xf32>
    %204 = arith.mulf %199, %201 : vector<1x16xf32>
    %205 = arith.addf %203, %204 : vector<1x16xf32>
    %206 = math.tanh %205 : vector<1x16xf32>
    %207 = arith.mulf %202, %206 : vector<1x16xf32>
    %208 = arith.index_cast %188 : i32 to index
    %c0_58 = arith.constant 0 : index
    %209 = vector.load %arg20[%208, %c0_58] : memref<6x64xf32, #tpu.memory_space<vmem>>, vector<1x64xf32>
    %cst_59 = arith.constant dense<0.000000e+00> : vector<1x64xf32>
    %210 = tpu.matmul %183, %14, %cst_59 {dimension_numbers = #tpu.dot_dimension_numbers<[1], [0], [0], [1], [0, 0, 1, 1], [], []>} : vector<1x16xf32>, vector<16x64xf32>, vector<1x64xf32> -> vector<1x64xf32>
    %211 = arith.addf %209, %210 : vector<1x64xf32>
    %212 = arith.negf %211 : vector<1x64xf32>
    %213 = math.exp %212 : vector<1x64xf32>
    %cst_60 = arith.constant 1.000000e+00 : f32
    %214 = vector.broadcast %cst_60 : f32 to vector<1x64xf32>
    %215 = arith.addf %214, %213 : vector<1x64xf32>
    %216 = arith.divf %214, %215 : vector<1x64xf32>
    %217 = math.tanh %211 : vector<1x64xf32>
    %218 = vector.extract_strided_slice %216 {offsets = [0, 0], sizes = [1, 16], strides = [1, 1]} : vector<1x64xf32> to vector<1x16xf32>
    %219 = vector.extract_strided_slice %216 {offsets = [0, 16], sizes = [1, 16], strides = [1, 1]} : vector<1x64xf32> to vector<1x16xf32>
    %220 = vector.extract_strided_slice %217 {offsets = [0, 32], sizes = [1, 16], strides = [1, 1]} : vector<1x64xf32> to vector<1x16xf32>
    %221 = vector.extract_strided_slice %216 {offsets = [0, 48], sizes = [1, 16], strides = [1, 1]} : vector<1x64xf32> to vector<1x16xf32>
    %222 = arith.mulf %219, %181 : vector<1x16xf32>
    %223 = arith.mulf %218, %220 : vector<1x16xf32>
    %224 = arith.addf %222, %223 : vector<1x16xf32>
    %225 = math.tanh %224 : vector<1x16xf32>
    %226 = arith.mulf %221, %225 : vector<1x16xf32>
    %227 = arith.index_cast %c4_i32 : i32 to index
    %c0_61 = arith.constant 0 : index
    %228 = vector.load %arg21[%227, %c0_61] : memref<6x16xf32, #tpu.memory_space<vmem>>, vector<1x16xf32>
    tpu.vector_store %arg21[%227, %c0_61], %207 {strides = array<i32>} : memref<6x16xf32, #tpu.memory_space<vmem>>, vector<1x16xf32>,
    %229 = arith.index_cast %188 : i32 to index
    %c0_62 = arith.constant 0 : index
    %230 = vector.load %arg22[%229, %c0_62] : memref<6x16xf32, #tpu.memory_space<vmem>>, vector<1x16xf32>
    tpu.vector_store %arg22[%229, %c0_62], %226 {strides = array<i32>} : memref<6x16xf32, #tpu.memory_space<vmem>>, vector<1x16xf32>,
    %c5_i32_63 = arith.constant 5 : i32
    %c5_i32_64 = arith.constant 5 : i32
    %231 = arith.subi %c5_i32_64, %c5_i32_63 : i32
    %232 = arith.index_cast %c5_i32_63 : i32 to index
    %c0_65 = arith.constant 0 : index
    %233 = vector.load %arg19[%232, %c0_65] : memref<6x64xf32, #tpu.memory_space<vmem>>, vector<1x64xf32>
    %cst_66 = arith.constant dense<0.000000e+00> : vector<1x64xf32>
    %234 = tpu.matmul %207, %13, %cst_66 {dimension_numbers = #tpu.dot_dimension_numbers<[1], [0], [0], [1], [0, 0, 1, 1], [], []>} : vector<1x16xf32>, vector<16x64xf32>, vector<1x64xf32> -> vector<1x64xf32>
    %235 = arith.addf %233, %234 : vector<1x64xf32>
    %236 = arith.negf %235 : vector<1x64xf32>
    %237 = math.exp %236 : vector<1x64xf32>
    %cst_67 = arith.constant 1.000000e+00 : f32
    %238 = vector.broadcast %cst_67 : f32 to vector<1x64xf32>
    %239 = arith.addf %238, %237 : vector<1x64xf32>
    %240 = arith.divf %238, %239 : vector<1x64xf32>
    %241 = math.tanh %235 : vector<1x64xf32>
    %242 = vector.extract_strided_slice %240 {offsets = [0, 0], sizes = [1, 16], strides = [1, 1]} : vector<1x64xf32> to vector<1x16xf32>
    %243 = vector.extract_strided_slice %240 {offsets = [0, 16], sizes = [1, 16], strides = [1, 1]} : vector<1x64xf32> to vector<1x16xf32>
    %244 = vector.extract_strided_slice %241 {offsets = [0, 32], sizes = [1, 16], strides = [1, 1]} : vector<1x64xf32> to vector<1x16xf32>
    %245 = vector.extract_strided_slice %240 {offsets = [0, 48], sizes = [1, 16], strides = [1, 1]} : vector<1x64xf32> to vector<1x16xf32>
    %246 = arith.mulf %243, %205 : vector<1x16xf32>
    %247 = arith.mulf %242, %244 : vector<1x16xf32>
    %248 = arith.addf %246, %247 : vector<1x16xf32>
    %249 = math.tanh %248 : vector<1x16xf32>
    %250 = arith.mulf %245, %249 : vector<1x16xf32>
    %251 = arith.index_cast %231 : i32 to index
    %c0_68 = arith.constant 0 : index
    %252 = vector.load %arg20[%251, %c0_68] : memref<6x64xf32, #tpu.memory_space<vmem>>, vector<1x64xf32>
    %cst_69 = arith.constant dense<0.000000e+00> : vector<1x64xf32>
    %253 = tpu.matmul %226, %14, %cst_69 {dimension_numbers = #tpu.dot_dimension_numbers<[1], [0], [0], [1], [0, 0, 1, 1], [], []>} : vector<1x16xf32>, vector<16x64xf32>, vector<1x64xf32> -> vector<1x64xf32>
    %254 = arith.addf %252, %253 : vector<1x64xf32>
    %255 = arith.negf %254 : vector<1x64xf32>
    %256 = math.exp %255 : vector<1x64xf32>
    %cst_70 = arith.constant 1.000000e+00 : f32
    %257 = vector.broadcast %cst_70 : f32 to vector<1x64xf32>
    %258 = arith.addf %257, %256 : vector<1x64xf32>
    %259 = arith.divf %257, %258 : vector<1x64xf32>
    %260 = math.tanh %254 : vector<1x64xf32>
    %261 = vector.extract_strided_slice %259 {offsets = [0, 0], sizes = [1, 16], strides = [1, 1]} : vector<1x64xf32> to vector<1x16xf32>
    %262 = vector.extract_strided_slice %259 {offsets = [0, 16], sizes = [1, 16], strides = [1, 1]} : vector<1x64xf32> to vector<1x16xf32>
    %263 = vector.extract_strided_slice %260 {offsets = [0, 32], sizes = [1, 16], strides = [1, 1]} : vector<1x64xf32> to vector<1x16xf32>
    %264 = vector.extract_strided_slice %259 {offsets = [0, 48], sizes = [1, 16], strides = [1, 1]} : vector<1x64xf32> to vector<1x16xf32>
    %265 = arith.mulf %262, %224 : vector<1x16xf32>
    %266 = arith.mulf %261, %263 : vector<1x16xf32>
    %267 = arith.addf %265, %266 : vector<1x16xf32>
    %268 = math.tanh %267 : vector<1x16xf32>
    %269 = arith.mulf %264, %268 : vector<1x16xf32>
    %270 = arith.index_cast %c5_i32_63 : i32 to index
    %c0_71 = arith.constant 0 : index
    %271 = vector.load %arg21[%270, %c0_71] : memref<6x16xf32, #tpu.memory_space<vmem>>, vector<1x16xf32>
    tpu.vector_store %arg21[%270, %c0_71], %250 {strides = array<i32>} : memref<6x16xf32, #tpu.memory_space<vmem>>, vector<1x16xf32>,
    %272 = arith.index_cast %231 : i32 to index
    %c0_72 = arith.constant 0 : index
    %273 = vector.load %arg22[%272, %c0_72] : memref<6x16xf32, #tpu.memory_space<vmem>>, vector<1x16xf32>
    tpu.vector_store %arg22[%272, %c0_72], %269 {strides = array<i32>} : memref<6x16xf32, #tpu.memory_space<vmem>>, vector<1x16xf32>,
    %c6_i32 = arith.constant 6 : i32
    %c0_73 = arith.constant 0 : index
    %c0_74 = arith.constant 0 : index
    %274 = vector.load %arg21[%c0_73, %c0_74] : memref<6x16xf32, #tpu.memory_space<vmem>>, vector<6x16xf32>
    %c0_75 = arith.constant 0 : index
    %c0_76 = arith.constant 0 : index
    %275 = vector.load %arg22[%c0_75, %c0_76] : memref<6x16xf32, #tpu.memory_space<vmem>>, vector<6x16xf32>
    %276 = tpu.concatenate %274, %275 in 1 : vector<6x16xf32>, vector<6x16xf32> -> vector<6x32xf32>
    %c0_77 = arith.constant 0 : index
    %c0_78 = arith.constant 0 : index
    %277 = vector.load %arg23[%c0_77, %c0_78] : memref<6x32xf32, #tpu.memory_space<vmem>>, vector<6x32xf32>
    tpu.vector_store %arg23[%c0_77, %c0_78], %276 {strides = array<i32>} : memref<6x32xf32, #tpu.memory_space<vmem>>, vector<6x32xf32>,
    %c0_79 = arith.constant 0 : index
    %c0_80 = arith.constant 0 : index
    %278 = vector.load %arg23[%c0_79, %c0_80] : memref<6x32xf32, #tpu.memory_space<vmem>>, vector<6x32xf32>
    %c0_81 = arith.constant 0 : index
    %c0_82 = arith.constant 0 : index
    %279 = vector.load %arg8[%c0_81, %c0_82] : memref<32x64xf32, #tpu.memory_space<vmem>>, vector<32x64xf32>
    %cst_83 = arith.constant dense<0.000000e+00> : vector<6x64xf32>
    %280 = tpu.matmul %278, %279, %cst_83 {dimension_numbers = #tpu.dot_dimension_numbers<[1], [0], [0], [1], [0, 0, 1, 1], [], []>} : vector<6x32xf32>, vector<32x64xf32>, vector<6x64xf32> -> vector<6x64xf32>
    %c0_84 = arith.constant 0 : index
    %c0_85 = arith.constant 0 : index
    %281 = vector.load %arg10[%c0_84, %c0_85] : memref<1x64xf32, #tpu.memory_space<vmem>>, vector<1x64xf32>
    %282 = vector.broadcast %281 : vector<1x64xf32> to vector<6x64xf32>
    %283 = arith.addf %280, %282 : vector<6x64xf32>
    %c0_86 = arith.constant 0 : index
    %c0_87 = arith.constant 0 : index
    %284 = vector.load %arg19[%c0_86, %c0_87] : memref<6x64xf32, #tpu.memory_space<vmem>>, vector<6x64xf32>
    tpu.vector_store %arg19[%c0_86, %c0_87], %283 {strides = array<i32>} : memref<6x64xf32, #tpu.memory_space<vmem>>, vector<6x64xf32>,
    %c0_88 = arith.constant 0 : index
    %c0_89 = arith.constant 0 : index
    %285 = vector.load %arg11[%c0_88, %c0_89] : memref<32x64xf32, #tpu.memory_space<vmem>>, vector<32x64xf32>
    %cst_90 = arith.constant dense<0.000000e+00> : vector<6x64xf32>
    %286 = tpu.matmul %278, %285, %cst_90 {dimension_numbers = #tpu.dot_dimension_numbers<[1], [0], [0], [1], [0, 0, 1, 1], [], []>} : vector<6x32xf32>, vector<32x64xf32>, vector<6x64xf32> -> vector<6x64xf32>
    %c0_91 = arith.constant 0 : index
    %c0_92 = arith.constant 0 : index
    %287 = vector.load %arg13[%c0_91, %c0_92] : memref<1x64xf32, #tpu.memory_space<vmem>>, vector<1x64xf32>
    %288 = vector.broadcast %287 : vector<1x64xf32> to vector<6x64xf32>
    %289 = arith.addf %286, %288 : vector<6x64xf32>
    %c0_93 = arith.constant 0 : index
    %c0_94 = arith.constant 0 : index
    %290 = vector.load %arg20[%c0_93, %c0_94] : memref<6x64xf32, #tpu.memory_space<vmem>>, vector<6x64xf32>
    tpu.vector_store %arg20[%c0_93, %c0_94], %289 {strides = array<i32>} : memref<6x64xf32, #tpu.memory_space<vmem>>, vector<6x64xf32>,
    %c0_95 = arith.constant 0 : index
    %c0_96 = arith.constant 0 : index
    %291 = vector.load %arg9[%c0_95, %c0_96] : memref<16x64xf32, #tpu.memory_space<vmem>>, vector<16x64xf32>
    %c0_97 = arith.constant 0 : index
    %c0_98 = arith.constant 0 : index
    %292 = vector.load %arg12[%c0_97, %c0_98] : memref<16x64xf32, #tpu.memory_space<vmem>>, vector<16x64xf32>
    %cst_99 = arith.constant 0.000000e+00 : f32
    %293 = vector.broadcast %cst_99 : f32 to vector<1x16xf32>
    %c0_i32_100 = arith.constant 0 : i32
    %c5_i32_101 = arith.constant 5 : i32
    %294 = arith.subi %c5_i32_101, %c0_i32_100 : i32
    %295 = arith.index_cast %c0_i32_100 : i32 to index
    %c0_102 = arith.constant 0 : index
    %296 = vector.load %arg19[%295, %c0_102] : memref<6x64xf32, #tpu.memory_space<vmem>>, vector<1x64xf32>
    %cst_103 = arith.constant dense<0.000000e+00> : vector<1x64xf32>
    %297 = tpu.matmul %293, %291, %cst_103 {dimension_numbers = #tpu.dot_dimension_numbers<[1], [0], [0], [1], [0, 0, 1, 1], [], []>} : vector<1x16xf32>, vector<16x64xf32>, vector<1x64xf32> -> vector<1x64xf32>
    %298 = arith.addf %296, %297 : vector<1x64xf32>
    %299 = arith.negf %298 : vector<1x64xf32>
    %300 = math.exp %299 : vector<1x64xf32>
    %cst_104 = arith.constant 1.000000e+00 : f32
    %301 = vector.broadcast %cst_104 : f32 to vector<1x64xf32>
    %302 = arith.addf %301, %300 : vector<1x64xf32>
    %303 = arith.divf %301, %302 : vector<1x64xf32>
    %304 = math.tanh %298 : vector<1x64xf32>
    %305 = vector.extract_strided_slice %303 {offsets = [0, 0], sizes = [1, 16], strides = [1, 1]} : vector<1x64xf32> to vector<1x16xf32>
    %306 = vector.extract_strided_slice %303 {offsets = [0, 16], sizes = [1, 16], strides = [1, 1]} : vector<1x64xf32> to vector<1x16xf32>
    %307 = vector.extract_strided_slice %304 {offsets = [0, 32], sizes = [1, 16], strides = [1, 1]} : vector<1x64xf32> to vector<1x16xf32>
    %308 = vector.extract_strided_slice %303 {offsets = [0, 48], sizes = [1, 16], strides = [1, 1]} : vector<1x64xf32> to vector<1x16xf32>
    %309 = arith.mulf %306, %293 : vector<1x16xf32>
    %310 = arith.mulf %305, %307 : vector<1x16xf32>
    %311 = arith.addf %309, %310 : vector<1x16xf32>
    %312 = math.tanh %311 : vector<1x16xf32>
    %313 = arith.mulf %308, %312 : vector<1x16xf32>
    %314 = arith.index_cast %294 : i32 to index
    %c0_105 = arith.constant 0 : index
    %315 = vector.load %arg20[%314, %c0_105] : memref<6x64xf32, #tpu.memory_space<vmem>>, vector<1x64xf32>
    %cst_106 = arith.constant dense<0.000000e+00> : vector<1x64xf32>
    %316 = tpu.matmul %293, %292, %cst_106 {dimension_numbers = #tpu.dot_dimension_numbers<[1], [0], [0], [1], [0, 0, 1, 1], [], []>} : vector<1x16xf32>, vector<16x64xf32>, vector<1x64xf32> -> vector<1x64xf32>
    %317 = arith.addf %315, %316 : vector<1x64xf32>
    %318 = arith.negf %317 : vector<1x64xf32>
    %319 = math.exp %318 : vector<1x64xf32>
    %cst_107 = arith.constant 1.000000e+00 : f32
    %320 = vector.broadcast %cst_107 : f32 to vector<1x64xf32>
    %321 = arith.addf %320, %319 : vector<1x64xf32>
    %322 = arith.divf %320, %321 : vector<1x64xf32>
    %323 = math.tanh %317 : vector<1x64xf32>
    %324 = vector.extract_strided_slice %322 {offsets = [0, 0], sizes = [1, 16], strides = [1, 1]} : vector<1x64xf32> to vector<1x16xf32>
    %325 = vector.extract_strided_slice %322 {offsets = [0, 16], sizes = [1, 16], strides = [1, 1]} : vector<1x64xf32> to vector<1x16xf32>
    %326 = vector.extract_strided_slice %323 {offsets = [0, 32], sizes = [1, 16], strides = [1, 1]} : vector<1x64xf32> to vector<1x16xf32>
    %327 = vector.extract_strided_slice %322 {offsets = [0, 48], sizes = [1, 16], strides = [1, 1]} : vector<1x64xf32> to vector<1x16xf32>
    %328 = arith.mulf %325, %293 : vector<1x16xf32>
    %329 = arith.mulf %324, %326 : vector<1x16xf32>
    %330 = arith.addf %328, %329 : vector<1x16xf32>
    %331 = math.tanh %330 : vector<1x16xf32>
    %332 = arith.mulf %327, %331 : vector<1x16xf32>
    %333 = arith.index_cast %c0_i32_100 : i32 to index
    %c0_108 = arith.constant 0 : index
    %334 = vector.load %arg21[%333, %c0_108] : memref<6x16xf32, #tpu.memory_space<vmem>>, vector<1x16xf32>
    tpu.vector_store %arg21[%333, %c0_108], %313 {strides = array<i32>} : memref<6x16xf32, #tpu.memory_space<vmem>>, vector<1x16xf32>,
    %335 = arith.index_cast %294 : i32 to index
    %c0_109 = arith.constant 0 : index
    %336 = vector.load %arg22[%335, %c0_109] : memref<6x16xf32, #tpu.memory_space<vmem>>, vector<1x16xf32>
    tpu.vector_store %arg22[%335, %c0_109], %332 {strides = array<i32>} : memref<6x16xf32, #tpu.memory_space<vmem>>, vector<1x16xf32>,
    %c1_i32_110 = arith.constant 1 : i32
    %c5_i32_111 = arith.constant 5 : i32
    %337 = arith.subi %c5_i32_111, %c1_i32_110 : i32
    %338 = arith.index_cast %c1_i32_110 : i32 to index
    %c0_112 = arith.constant 0 : index
    %339 = vector.load %arg19[%338, %c0_112] : memref<6x64xf32, #tpu.memory_space<vmem>>, vector<1x64xf32>
    %cst_113 = arith.constant dense<0.000000e+00> : vector<1x64xf32>
    %340 = tpu.matmul %313, %291, %cst_113 {dimension_numbers = #tpu.dot_dimension_numbers<[1], [0], [0], [1], [0, 0, 1, 1], [], []>} : vector<1x16xf32>, vector<16x64xf32>, vector<1x64xf32> -> vector<1x64xf32>
    %341 = arith.addf %339, %340 : vector<1x64xf32>
    %342 = arith.negf %341 : vector<1x64xf32>
    %343 = math.exp %342 : vector<1x64xf32>
    %cst_114 = arith.constant 1.000000e+00 : f32
    %344 = vector.broadcast %cst_114 : f32 to vector<1x64xf32>
    %345 = arith.addf %344, %343 : vector<1x64xf32>
    %346 = arith.divf %344, %345 : vector<1x64xf32>
    %347 = math.tanh %341 : vector<1x64xf32>
    %348 = vector.extract_strided_slice %346 {offsets = [0, 0], sizes = [1, 16], strides = [1, 1]} : vector<1x64xf32> to vector<1x16xf32>
    %349 = vector.extract_strided_slice %346 {offsets = [0, 16], sizes = [1, 16], strides = [1, 1]} : vector<1x64xf32> to vector<1x16xf32>
    %350 = vector.extract_strided_slice %347 {offsets = [0, 32], sizes = [1, 16], strides = [1, 1]} : vector<1x64xf32> to vector<1x16xf32>
    %351 = vector.extract_strided_slice %346 {offsets = [0, 48], sizes = [1, 16], strides = [1, 1]} : vector<1x64xf32> to vector<1x16xf32>
    %352 = arith.mulf %349, %311 : vector<1x16xf32>
    %353 = arith.mulf %348, %350 : vector<1x16xf32>
    %354 = arith.addf %352, %353 : vector<1x16xf32>
    %355 = math.tanh %354 : vector<1x16xf32>
    %356 = arith.mulf %351, %355 : vector<1x16xf32>
    %357 = arith.index_cast %337 : i32 to index
    %c0_115 = arith.constant 0 : index
    %358 = vector.load %arg20[%357, %c0_115] : memref<6x64xf32, #tpu.memory_space<vmem>>, vector<1x64xf32>
    %cst_116 = arith.constant dense<0.000000e+00> : vector<1x64xf32>
    %359 = tpu.matmul %332, %292, %cst_116 {dimension_numbers = #tpu.dot_dimension_numbers<[1], [0], [0], [1], [0, 0, 1, 1], [], []>} : vector<1x16xf32>, vector<16x64xf32>, vector<1x64xf32> -> vector<1x64xf32>
    %360 = arith.addf %358, %359 : vector<1x64xf32>
    %361 = arith.negf %360 : vector<1x64xf32>
    %362 = math.exp %361 : vector<1x64xf32>
    %cst_117 = arith.constant 1.000000e+00 : f32
    %363 = vector.broadcast %cst_117 : f32 to vector<1x64xf32>
    %364 = arith.addf %363, %362 : vector<1x64xf32>
    %365 = arith.divf %363, %364 : vector<1x64xf32>
    %366 = math.tanh %360 : vector<1x64xf32>
    %367 = vector.extract_strided_slice %365 {offsets = [0, 0], sizes = [1, 16], strides = [1, 1]} : vector<1x64xf32> to vector<1x16xf32>
    %368 = vector.extract_strided_slice %365 {offsets = [0, 16], sizes = [1, 16], strides = [1, 1]} : vector<1x64xf32> to vector<1x16xf32>
    %369 = vector.extract_strided_slice %366 {offsets = [0, 32], sizes = [1, 16], strides = [1, 1]} : vector<1x64xf32> to vector<1x16xf32>
    %370 = vector.extract_strided_slice %365 {offsets = [0, 48], sizes = [1, 16], strides = [1, 1]} : vector<1x64xf32> to vector<1x16xf32>
    %371 = arith.mulf %368, %330 : vector<1x16xf32>
    %372 = arith.mulf %367, %369 : vector<1x16xf32>
    %373 = arith.addf %371, %372 : vector<1x16xf32>
    %374 = math.tanh %373 : vector<1x16xf32>
    %375 = arith.mulf %370, %374 : vector<1x16xf32>
    %376 = arith.index_cast %c1_i32_110 : i32 to index
    %c0_118 = arith.constant 0 : index
    %377 = vector.load %arg21[%376, %c0_118] : memref<6x16xf32, #tpu.memory_space<vmem>>, vector<1x16xf32>
    tpu.vector_store %arg21[%376, %c0_118], %356 {strides = array<i32>} : memref<6x16xf32, #tpu.memory_space<vmem>>, vector<1x16xf32>,
    %378 = arith.index_cast %337 : i32 to index
    %c0_119 = arith.constant 0 : index
    %379 = vector.load %arg22[%378, %c0_119] : memref<6x16xf32, #tpu.memory_space<vmem>>, vector<1x16xf32>
    tpu.vector_store %arg22[%378, %c0_119], %375 {strides = array<i32>} : memref<6x16xf32, #tpu.memory_space<vmem>>, vector<1x16xf32>,
    %c2_i32_120 = arith.constant 2 : i32
    %c5_i32_121 = arith.constant 5 : i32
    %380 = arith.subi %c5_i32_121, %c2_i32_120 : i32
    %381 = arith.index_cast %c2_i32_120 : i32 to index
    %c0_122 = arith.constant 0 : index
    %382 = vector.load %arg19[%381, %c0_122] : memref<6x64xf32, #tpu.memory_space<vmem>>, vector<1x64xf32>
    %cst_123 = arith.constant dense<0.000000e+00> : vector<1x64xf32>
    %383 = tpu.matmul %356, %291, %cst_123 {dimension_numbers = #tpu.dot_dimension_numbers<[1], [0], [0], [1], [0, 0, 1, 1], [], []>} : vector<1x16xf32>, vector<16x64xf32>, vector<1x64xf32> -> vector<1x64xf32>
    %384 = arith.addf %382, %383 : vector<1x64xf32>
    %385 = arith.negf %384 : vector<1x64xf32>
    %386 = math.exp %385 : vector<1x64xf32>
    %cst_124 = arith.constant 1.000000e+00 : f32
    %387 = vector.broadcast %cst_124 : f32 to vector<1x64xf32>
    %388 = arith.addf %387, %386 : vector<1x64xf32>
    %389 = arith.divf %387, %388 : vector<1x64xf32>
    %390 = math.tanh %384 : vector<1x64xf32>
    %391 = vector.extract_strided_slice %389 {offsets = [0, 0], sizes = [1, 16], strides = [1, 1]} : vector<1x64xf32> to vector<1x16xf32>
    %392 = vector.extract_strided_slice %389 {offsets = [0, 16], sizes = [1, 16], strides = [1, 1]} : vector<1x64xf32> to vector<1x16xf32>
    %393 = vector.extract_strided_slice %390 {offsets = [0, 32], sizes = [1, 16], strides = [1, 1]} : vector<1x64xf32> to vector<1x16xf32>
    %394 = vector.extract_strided_slice %389 {offsets = [0, 48], sizes = [1, 16], strides = [1, 1]} : vector<1x64xf32> to vector<1x16xf32>
    %395 = arith.mulf %392, %354 : vector<1x16xf32>
    %396 = arith.mulf %391, %393 : vector<1x16xf32>
    %397 = arith.addf %395, %396 : vector<1x16xf32>
    %398 = math.tanh %397 : vector<1x16xf32>
    %399 = arith.mulf %394, %398 : vector<1x16xf32>
    %400 = arith.index_cast %380 : i32 to index
    %c0_125 = arith.constant 0 : index
    %401 = vector.load %arg20[%400, %c0_125] : memref<6x64xf32, #tpu.memory_space<vmem>>, vector<1x64xf32>
    %cst_126 = arith.constant dense<0.000000e+00> : vector<1x64xf32>
    %402 = tpu.matmul %375, %292, %cst_126 {dimension_numbers = #tpu.dot_dimension_numbers<[1], [0], [0], [1], [0, 0, 1, 1], [], []>} : vector<1x16xf32>, vector<16x64xf32>, vector<1x64xf32> -> vector<1x64xf32>
    %403 = arith.addf %401, %402 : vector<1x64xf32>
    %404 = arith.negf %403 : vector<1x64xf32>
    %405 = math.exp %404 : vector<1x64xf32>
    %cst_127 = arith.constant 1.000000e+00 : f32
    %406 = vector.broadcast %cst_127 : f32 to vector<1x64xf32>
    %407 = arith.addf %406, %405 : vector<1x64xf32>
    %408 = arith.divf %406, %407 : vector<1x64xf32>
    %409 = math.tanh %403 : vector<1x64xf32>
    %410 = vector.extract_strided_slice %408 {offsets = [0, 0], sizes = [1, 16], strides = [1, 1]} : vector<1x64xf32> to vector<1x16xf32>
    %411 = vector.extract_strided_slice %408 {offsets = [0, 16], sizes = [1, 16], strides = [1, 1]} : vector<1x64xf32> to vector<1x16xf32>
    %412 = vector.extract_strided_slice %409 {offsets = [0, 32], sizes = [1, 16], strides = [1, 1]} : vector<1x64xf32> to vector<1x16xf32>
    %413 = vector.extract_strided_slice %408 {offsets = [0, 48], sizes = [1, 16], strides = [1, 1]} : vector<1x64xf32> to vector<1x16xf32>
    %414 = arith.mulf %411, %373 : vector<1x16xf32>
    %415 = arith.mulf %410, %412 : vector<1x16xf32>
    %416 = arith.addf %414, %415 : vector<1x16xf32>
    %417 = math.tanh %416 : vector<1x16xf32>
    %418 = arith.mulf %413, %417 : vector<1x16xf32>
    %419 = arith.index_cast %c2_i32_120 : i32 to index
    %c0_128 = arith.constant 0 : index
    %420 = vector.load %arg21[%419, %c0_128] : memref<6x16xf32, #tpu.memory_space<vmem>>, vector<1x16xf32>
    tpu.vector_store %arg21[%419, %c0_128], %399 {strides = array<i32>} : memref<6x16xf32, #tpu.memory_space<vmem>>, vector<1x16xf32>,
    %421 = arith.index_cast %380 : i32 to index
    %c0_129 = arith.constant 0 : index
    %422 = vector.load %arg22[%421, %c0_129] : memref<6x16xf32, #tpu.memory_space<vmem>>, vector<1x16xf32>
    tpu.vector_store %arg22[%421, %c0_129], %418 {strides = array<i32>} : memref<6x16xf32, #tpu.memory_space<vmem>>, vector<1x16xf32>,
    %c3_i32_130 = arith.constant 3 : i32
    %c5_i32_131 = arith.constant 5 : i32
    %423 = arith.subi %c5_i32_131, %c3_i32_130 : i32
    %424 = arith.index_cast %c3_i32_130 : i32 to index
    %c0_132 = arith.constant 0 : index
    %425 = vector.load %arg19[%424, %c0_132] : memref<6x64xf32, #tpu.memory_space<vmem>>, vector<1x64xf32>
    %cst_133 = arith.constant dense<0.000000e+00> : vector<1x64xf32>
    %426 = tpu.matmul %399, %291, %cst_133 {dimension_numbers = #tpu.dot_dimension_numbers<[1], [0], [0], [1], [0, 0, 1, 1], [], []>} : vector<1x16xf32>, vector<16x64xf32>, vector<1x64xf32> -> vector<1x64xf32>
    %427 = arith.addf %425, %426 : vector<1x64xf32>
    %428 = arith.negf %427 : vector<1x64xf32>
    %429 = math.exp %428 : vector<1x64xf32>
    %cst_134 = arith.constant 1.000000e+00 : f32
    %430 = vector.broadcast %cst_134 : f32 to vector<1x64xf32>
    %431 = arith.addf %430, %429 : vector<1x64xf32>
    %432 = arith.divf %430, %431 : vector<1x64xf32>
    %433 = math.tanh %427 : vector<1x64xf32>
    %434 = vector.extract_strided_slice %432 {offsets = [0, 0], sizes = [1, 16], strides = [1, 1]} : vector<1x64xf32> to vector<1x16xf32>
    %435 = vector.extract_strided_slice %432 {offsets = [0, 16], sizes = [1, 16], strides = [1, 1]} : vector<1x64xf32> to vector<1x16xf32>
    %436 = vector.extract_strided_slice %433 {offsets = [0, 32], sizes = [1, 16], strides = [1, 1]} : vector<1x64xf32> to vector<1x16xf32>
    %437 = vector.extract_strided_slice %432 {offsets = [0, 48], sizes = [1, 16], strides = [1, 1]} : vector<1x64xf32> to vector<1x16xf32>
    %438 = arith.mulf %435, %397 : vector<1x16xf32>
    %439 = arith.mulf %434, %436 : vector<1x16xf32>
    %440 = arith.addf %438, %439 : vector<1x16xf32>
    %441 = math.tanh %440 : vector<1x16xf32>
    %442 = arith.mulf %437, %441 : vector<1x16xf32>
    %443 = arith.index_cast %423 : i32 to index
    %c0_135 = arith.constant 0 : index
    %444 = vector.load %arg20[%443, %c0_135] : memref<6x64xf32, #tpu.memory_space<vmem>>, vector<1x64xf32>
    %cst_136 = arith.constant dense<0.000000e+00> : vector<1x64xf32>
    %445 = tpu.matmul %418, %292, %cst_136 {dimension_numbers = #tpu.dot_dimension_numbers<[1], [0], [0], [1], [0, 0, 1, 1], [], []>} : vector<1x16xf32>, vector<16x64xf32>, vector<1x64xf32> -> vector<1x64xf32>
    %446 = arith.addf %444, %445 : vector<1x64xf32>
    %447 = arith.negf %446 : vector<1x64xf32>
    %448 = math.exp %447 : vector<1x64xf32>
    %cst_137 = arith.constant 1.000000e+00 : f32
    %449 = vector.broadcast %cst_137 : f32 to vector<1x64xf32>
    %450 = arith.addf %449, %448 : vector<1x64xf32>
    %451 = arith.divf %449, %450 : vector<1x64xf32>
    %452 = math.tanh %446 : vector<1x64xf32>
    %453 = vector.extract_strided_slice %451 {offsets = [0, 0], sizes = [1, 16], strides = [1, 1]} : vector<1x64xf32> to vector<1x16xf32>
    %454 = vector.extract_strided_slice %451 {offsets = [0, 16], sizes = [1, 16], strides = [1, 1]} : vector<1x64xf32> to vector<1x16xf32>
    %455 = vector.extract_strided_slice %452 {offsets = [0, 32], sizes = [1, 16], strides = [1, 1]} : vector<1x64xf32> to vector<1x16xf32>
    %456 = vector.extract_strided_slice %451 {offsets = [0, 48], sizes = [1, 16], strides = [1, 1]} : vector<1x64xf32> to vector<1x16xf32>
    %457 = arith.mulf %454, %416 : vector<1x16xf32>
    %458 = arith.mulf %453, %455 : vector<1x16xf32>
    %459 = arith.addf %457, %458 : vector<1x16xf32>
    %460 = math.tanh %459 : vector<1x16xf32>
    %461 = arith.mulf %456, %460 : vector<1x16xf32>
    %462 = arith.index_cast %c3_i32_130 : i32 to index
    %c0_138 = arith.constant 0 : index
    %463 = vector.load %arg21[%462, %c0_138] : memref<6x16xf32, #tpu.memory_space<vmem>>, vector<1x16xf32>
    tpu.vector_store %arg21[%462, %c0_138], %442 {strides = array<i32>} : memref<6x16xf32, #tpu.memory_space<vmem>>, vector<1x16xf32>,
    %464 = arith.index_cast %423 : i32 to index
    %c0_139 = arith.constant 0 : index
    %465 = vector.load %arg22[%464, %c0_139] : memref<6x16xf32, #tpu.memory_space<vmem>>, vector<1x16xf32>
    tpu.vector_store %arg22[%464, %c0_139], %461 {strides = array<i32>} : memref<6x16xf32, #tpu.memory_space<vmem>>, vector<1x16xf32>,
    %c4_i32_140 = arith.constant 4 : i32
    %c5_i32_141 = arith.constant 5 : i32
    %466 = arith.subi %c5_i32_141, %c4_i32_140 : i32
    %467 = arith.index_cast %c4_i32_140 : i32 to index
    %c0_142 = arith.constant 0 : index
    %468 = vector.load %arg19[%467, %c0_142] : memref<6x64xf32, #tpu.memory_space<vmem>>, vector<1x64xf32>
    %cst_143 = arith.constant dense<0.000000e+00> : vector<1x64xf32>
    %469 = tpu.matmul %442, %291, %cst_143 {dimension_numbers = #tpu.dot_dimension_numbers<[1], [0], [0], [1], [0, 0, 1, 1], [], []>} : vector<1x16xf32>, vector<16x64xf32>, vector<1x64xf32> -> vector<1x64xf32>
    %470 = arith.addf %468, %469 : vector<1x64xf32>
    %471 = arith.negf %470 : vector<1x64xf32>
    %472 = math.exp %471 : vector<1x64xf32>
    %cst_144 = arith.constant 1.000000e+00 : f32
    %473 = vector.broadcast %cst_144 : f32 to vector<1x64xf32>
    %474 = arith.addf %473, %472 : vector<1x64xf32>
    %475 = arith.divf %473, %474 : vector<1x64xf32>
    %476 = math.tanh %470 : vector<1x64xf32>
    %477 = vector.extract_strided_slice %475 {offsets = [0, 0], sizes = [1, 16], strides = [1, 1]} : vector<1x64xf32> to vector<1x16xf32>
    %478 = vector.extract_strided_slice %475 {offsets = [0, 16], sizes = [1, 16], strides = [1, 1]} : vector<1x64xf32> to vector<1x16xf32>
    %479 = vector.extract_strided_slice %476 {offsets = [0, 32], sizes = [1, 16], strides = [1, 1]} : vector<1x64xf32> to vector<1x16xf32>
    %480 = vector.extract_strided_slice %475 {offsets = [0, 48], sizes = [1, 16], strides = [1, 1]} : vector<1x64xf32> to vector<1x16xf32>
    %481 = arith.mulf %478, %440 : vector<1x16xf32>
    %482 = arith.mulf %477, %479 : vector<1x16xf32>
    %483 = arith.addf %481, %482 : vector<1x16xf32>
    %484 = math.tanh %483 : vector<1x16xf32>
    %485 = arith.mulf %480, %484 : vector<1x16xf32>
    %486 = arith.index_cast %466 : i32 to index
    %c0_145 = arith.constant 0 : index
    %487 = vector.load %arg20[%486, %c0_145] : memref<6x64xf32, #tpu.memory_space<vmem>>, vector<1x64xf32>
    %cst_146 = arith.constant dense<0.000000e+00> : vector<1x64xf32>
    %488 = tpu.matmul %461, %292, %cst_146 {dimension_numbers = #tpu.dot_dimension_numbers<[1], [0], [0], [1], [0, 0, 1, 1], [], []>} : vector<1x16xf32>, vector<16x64xf32>, vector<1x64xf32> -> vector<1x64xf32>
    %489 = arith.addf %487, %488 : vector<1x64xf32>
    %490 = arith.negf %489 : vector<1x64xf32>
    %491 = math.exp %490 : vector<1x64xf32>
    %cst_147 = arith.constant 1.000000e+00 : f32
    %492 = vector.broadcast %cst_147 : f32 to vector<1x64xf32>
    %493 = arith.addf %492, %491 : vector<1x64xf32>
    %494 = arith.divf %492, %493 : vector<1x64xf32>
    %495 = math.tanh %489 : vector<1x64xf32>
    %496 = vector.extract_strided_slice %494 {offsets = [0, 0], sizes = [1, 16], strides = [1, 1]} : vector<1x64xf32> to vector<1x16xf32>
    %497 = vector.extract_strided_slice %494 {offsets = [0, 16], sizes = [1, 16], strides = [1, 1]} : vector<1x64xf32> to vector<1x16xf32>
    %498 = vector.extract_strided_slice %495 {offsets = [0, 32], sizes = [1, 16], strides = [1, 1]} : vector<1x64xf32> to vector<1x16xf32>
    %499 = vector.extract_strided_slice %494 {offsets = [0, 48], sizes = [1, 16], strides = [1, 1]} : vector<1x64xf32> to vector<1x16xf32>
    %500 = arith.mulf %497, %459 : vector<1x16xf32>
    %501 = arith.mulf %496, %498 : vector<1x16xf32>
    %502 = arith.addf %500, %501 : vector<1x16xf32>
    %503 = math.tanh %502 : vector<1x16xf32>
    %504 = arith.mulf %499, %503 : vector<1x16xf32>
    %505 = arith.index_cast %c4_i32_140 : i32 to index
    %c0_148 = arith.constant 0 : index
    %506 = vector.load %arg21[%505, %c0_148] : memref<6x16xf32, #tpu.memory_space<vmem>>, vector<1x16xf32>
    tpu.vector_store %arg21[%505, %c0_148], %485 {strides = array<i32>} : memref<6x16xf32, #tpu.memory_space<vmem>>, vector<1x16xf32>,
    %507 = arith.index_cast %466 : i32 to index
    %c0_149 = arith.constant 0 : index
    %508 = vector.load %arg22[%507, %c0_149] : memref<6x16xf32, #tpu.memory_space<vmem>>, vector<1x16xf32>
    tpu.vector_store %arg22[%507, %c0_149], %504 {strides = array<i32>} : memref<6x16xf32, #tpu.memory_space<vmem>>, vector<1x16xf32>,
    %c5_i32_150 = arith.constant 5 : i32
    %c5_i32_151 = arith.constant 5 : i32
    %509 = arith.subi %c5_i32_151, %c5_i32_150 : i32
    %510 = arith.index_cast %c5_i32_150 : i32 to index
    %c0_152 = arith.constant 0 : index
    %511 = vector.load %arg19[%510, %c0_152] : memref<6x64xf32, #tpu.memory_space<vmem>>, vector<1x64xf32>
    %cst_153 = arith.constant dense<0.000000e+00> : vector<1x64xf32>
    %512 = tpu.matmul %485, %291, %cst_153 {dimension_numbers = #tpu.dot_dimension_numbers<[1], [0], [0], [1], [0, 0, 1, 1], [], []>} : vector<1x16xf32>, vector<16x64xf32>, vector<1x64xf32> -> vector<1x64xf32>
    %513 = arith.addf %511, %512 : vector<1x64xf32>
    %514 = arith.negf %513 : vector<1x64xf32>
    %515 = math.exp %514 : vector<1x64xf32>
    %cst_154 = arith.constant 1.000000e+00 : f32
    %516 = vector.broadcast %cst_154 : f32 to vector<1x64xf32>
    %517 = arith.addf %516, %515 : vector<1x64xf32>
    %518 = arith.divf %516, %517 : vector<1x64xf32>
    %519 = math.tanh %513 : vector<1x64xf32>
    %520 = vector.extract_strided_slice %518 {offsets = [0, 0], sizes = [1, 16], strides = [1, 1]} : vector<1x64xf32> to vector<1x16xf32>
    %521 = vector.extract_strided_slice %518 {offsets = [0, 16], sizes = [1, 16], strides = [1, 1]} : vector<1x64xf32> to vector<1x16xf32>
    %522 = vector.extract_strided_slice %519 {offsets = [0, 32], sizes = [1, 16], strides = [1, 1]} : vector<1x64xf32> to vector<1x16xf32>
    %523 = vector.extract_strided_slice %518 {offsets = [0, 48], sizes = [1, 16], strides = [1, 1]} : vector<1x64xf32> to vector<1x16xf32>
    %524 = arith.mulf %521, %483 : vector<1x16xf32>
    %525 = arith.mulf %520, %522 : vector<1x16xf32>
    %526 = arith.addf %524, %525 : vector<1x16xf32>
    %527 = math.tanh %526 : vector<1x16xf32>
    %528 = arith.mulf %523, %527 : vector<1x16xf32>
    %529 = arith.index_cast %509 : i32 to index
    %c0_155 = arith.constant 0 : index
    %530 = vector.load %arg20[%529, %c0_155] : memref<6x64xf32, #tpu.memory_space<vmem>>, vector<1x64xf32>
    %cst_156 = arith.constant dense<0.000000e+00> : vector<1x64xf32>
    %531 = tpu.matmul %504, %292, %cst_156 {dimension_numbers = #tpu.dot_dimension_numbers<[1], [0], [0], [1], [0, 0, 1, 1], [], []>} : vector<1x16xf32>, vector<16x64xf32>, vector<1x64xf32> -> vector<1x64xf32>
    %532 = arith.addf %530, %531 : vector<1x64xf32>
    %533 = arith.negf %532 : vector<1x64xf32>
    %534 = math.exp %533 : vector<1x64xf32>
    %cst_157 = arith.constant 1.000000e+00 : f32
    %535 = vector.broadcast %cst_157 : f32 to vector<1x64xf32>
    %536 = arith.addf %535, %534 : vector<1x64xf32>
    %537 = arith.divf %535, %536 : vector<1x64xf32>
    %538 = math.tanh %532 : vector<1x64xf32>
    %539 = vector.extract_strided_slice %537 {offsets = [0, 0], sizes = [1, 16], strides = [1, 1]} : vector<1x64xf32> to vector<1x16xf32>
    %540 = vector.extract_strided_slice %537 {offsets = [0, 16], sizes = [1, 16], strides = [1, 1]} : vector<1x64xf32> to vector<1x16xf32>
    %541 = vector.extract_strided_slice %538 {offsets = [0, 32], sizes = [1, 16], strides = [1, 1]} : vector<1x64xf32> to vector<1x16xf32>
    %542 = vector.extract_strided_slice %537 {offsets = [0, 48], sizes = [1, 16], strides = [1, 1]} : vector<1x64xf32> to vector<1x16xf32>
    %543 = arith.mulf %540, %502 : vector<1x16xf32>
    %544 = arith.mulf %539, %541 : vector<1x16xf32>
    %545 = arith.addf %543, %544 : vector<1x16xf32>
    %546 = math.tanh %545 : vector<1x16xf32>
    %547 = arith.mulf %542, %546 : vector<1x16xf32>
    %548 = arith.index_cast %c5_i32_150 : i32 to index
    %c0_158 = arith.constant 0 : index
    %549 = vector.load %arg21[%548, %c0_158] : memref<6x16xf32, #tpu.memory_space<vmem>>, vector<1x16xf32>
    tpu.vector_store %arg21[%548, %c0_158], %528 {strides = array<i32>} : memref<6x16xf32, #tpu.memory_space<vmem>>, vector<1x16xf32>,
    %550 = arith.index_cast %509 : i32 to index
    %c0_159 = arith.constant 0 : index
    %551 = vector.load %arg22[%550, %c0_159] : memref<6x16xf32, #tpu.memory_space<vmem>>, vector<1x16xf32>
    tpu.vector_store %arg22[%550, %c0_159], %547 {strides = array<i32>} : memref<6x16xf32, #tpu.memory_space<vmem>>, vector<1x16xf32>,
    %c6_i32_160 = arith.constant 6 : i32
    %c0_161 = arith.constant 0 : index
    %c0_162 = arith.constant 0 : index
    %552 = vector.load %arg21[%c0_161, %c0_162] : memref<6x16xf32, #tpu.memory_space<vmem>>, vector<6x16xf32>
    %c0_163 = arith.constant 0 : index
    %c0_164 = arith.constant 0 : index
    %553 = vector.load %arg22[%c0_163, %c0_164] : memref<6x16xf32, #tpu.memory_space<vmem>>, vector<6x16xf32>
    %554 = tpu.concatenate %552, %553 in 1 : vector<6x16xf32>, vector<6x16xf32> -> vector<6x32xf32>
    %c0_165 = arith.constant 0 : index
    %c0_166 = arith.constant 0 : index
    %555 = vector.load %arg14[%c0_165, %c0_166] : memref<32x32xf32, #tpu.memory_space<vmem>>, vector<32x32xf32>
    %cst_167 = arith.constant dense<0.000000e+00> : vector<6x32xf32>
    %556 = tpu.matmul %554, %555, %cst_167 {dimension_numbers = #tpu.dot_dimension_numbers<[1], [0], [0], [1], [0, 0, 1, 1], [], []>} : vector<6x32xf32>, vector<32x32xf32>, vector<6x32xf32> -> vector<6x32xf32>
    %c0_168 = arith.constant 0 : index
    %c0_169 = arith.constant 0 : index
    %557 = vector.load %arg15[%c0_168, %c0_169] : memref<1x32xf32, #tpu.memory_space<vmem>>, vector<1x32xf32>
    %558 = vector.broadcast %557 : vector<1x32xf32> to vector<6x32xf32>
    %559 = arith.addf %556, %558 : vector<6x32xf32>
    %cst_170 = arith.constant 0.000000e+00 : f32
    %560 = vector.broadcast %cst_170 : f32 to vector<6x32xf32>
    %561 = arith.maximumf %559, %560 : vector<6x32xf32>
    %c0_171 = arith.constant 0 : index
    %c0_172 = arith.constant 0 : index
    %562 = vector.load %arg16[%c0_171, %c0_172] : memref<32x32xf32, #tpu.memory_space<vmem>>, vector<32x32xf32>
    %cst_173 = arith.constant dense<0.000000e+00> : vector<6x32xf32>
    %563 = tpu.matmul %561, %562, %cst_173 {dimension_numbers = #tpu.dot_dimension_numbers<[1], [0], [0], [1], [0, 0, 1, 1], [], []>} : vector<6x32xf32>, vector<32x32xf32>, vector<6x32xf32> -> vector<6x32xf32>
    %c0_174 = arith.constant 0 : index
    %c0_175 = arith.constant 0 : index
    %564 = vector.load %arg17[%c0_174, %c0_175] : memref<1x32xf32, #tpu.memory_space<vmem>>, vector<1x32xf32>
    %565 = vector.broadcast %564 : vector<1x32xf32> to vector<6x32xf32>
    %566 = arith.addf %563, %565 : vector<6x32xf32>
    %c0_176 = arith.constant 0 : index
    %c0_177 = arith.constant 0 : index
    %567 = vector.load %arg18[%c0_176, %c0_177] : memref<6x32xf32, #tpu.memory_space<vmem>>, vector<6x32xf32>
    tpu.vector_store %arg18[%c0_176, %c0_177], %566 {strides = array<i32>} : memref<6x32xf32, #tpu.memory_space<vmem>>, vector<6x32xf32>,
    return
  }
  func.func @transform_0(%arg0: i32) -> (i32, i32) {
    %c0_i32 = arith.constant 0 : i32
    %c0_i32_0 = arith.constant 0 : i32
    %c0_i32_1 = arith.constant 0 : i32
    return %c0_i32, %c0_i32_0 : i32, i32
  }
  func.func @transform_1(%arg0: i32) -> (i32, i32) {
    %c0_i32 = arith.constant 0 : i32
    %c0_i32_0 = arith.constant 0 : i32
    %c0_i32_1 = arith.constant 0 : i32
    return %c0_i32, %c0_i32_0 : i32, i32
  }
  func.func @transform_2(%arg0: i32) -> (i32, i32) {
    %c0_i32 = arith.constant 0 : i32
    %c0_i32_0 = arith.constant 0 : i32
    %c0_i32_1 = arith.constant 0 : i32
    return %c0_i32, %c0_i32_0 : i32, i32
  }
  func.func @transform_3(%arg0: i32) -> (i32, i32) {
    %c0_i32 = arith.constant 0 : i32
    %c0_i32_0 = arith.constant 0 : i32
    %c0_i32_1 = arith.constant 0 : i32
    return %c0_i32, %c0_i32_0 : i32, i32
  }
  func.func @transform_4(%arg0: i32) -> (i32, i32) {
    %c0_i32 = arith.constant 0 : i32
    %c0_i32_0 = arith.constant 0 : i32
    %c0_i32_1 = arith.constant 0 : i32
    return %c0_i32, %c0_i32_0 : i32, i32
  }
  func.func @transform_5(%arg0: i32) -> (i32, i32) {
    %c0_i32 = arith.constant 0 : i32
    %c0_i32_0 = arith.constant 0 : i32
    %c0_i32_1 = arith.constant 0 : i32
    return %c0_i32, %c0_i32_0 : i32, i32
  }
  func.func @transform_6(%arg0: i32) -> (i32, i32) {
    %c0_i32 = arith.constant 0 : i32
    %c0_i32_0 = arith.constant 0 : i32
    %c0_i32_1 = arith.constant 0 : i32
    return %c0_i32, %c0_i32_0 : i32, i32
  }
  func.func @transform_7(%arg0: i32) -> (i32, i32) {
    %c0_i32 = arith.constant 0 : i32
    %c0_i32_0 = arith.constant 0 : i32
    %c0_i32_1 = arith.constant 0 : i32
    return %c0_i32, %c0_i32_0 : i32, i32
  }
  func.func @transform_8(%arg0: i32) -> (i32, i32) {
    %c0_i32 = arith.constant 0 : i32
    %c0_i32_0 = arith.constant 0 : i32
    %c0_i32_1 = arith.constant 0 : i32
    return %c0_i32, %c0_i32_0 : i32, i32
  }
  func.func @transform_9(%arg0: i32) -> (i32, i32) {
    %c0_i32 = arith.constant 0 : i32
    %c0_i32_0 = arith.constant 0 : i32
    %c0_i32_1 = arith.constant 0 : i32
    return %c0_i32, %c0_i32_0 : i32, i32
  }
  func.func @transform_10(%arg0: i32) -> (i32, i32) {
    %c0_i32 = arith.constant 0 : i32
    %c0_i32_0 = arith.constant 0 : i32
    %c0_i32_1 = arith.constant 0 : i32
    return %c0_i32, %c0_i32_0 : i32, i32
  }
  func.func @transform_11(%arg0: i32) -> (i32, i32) {
    %c0_i32 = arith.constant 0 : i32
    %c0_i32_0 = arith.constant 0 : i32
    %c0_i32_1 = arith.constant 0 : i32
    return %c0_i32, %c0_i32_0 : i32, i32
  }
  func.func @transform_12(%arg0: i32) -> (i32, i32) {
    %c0_i32 = arith.constant 0 : i32
    %c0_i32_0 = arith.constant 0 : i32
    %c0_i32_1 = arith.constant 0 : i32
    return %c0_i32, %c0_i32_0 : i32, i32
  }
  func.func @transform_13(%arg0: i32) -> (i32, i32) {
    %c0_i32 = arith.constant 0 : i32
    %c0_i32_0 = arith.constant 0 : i32
    %c0_i32_1 = arith.constant 0 : i32
    return %c0_i32, %c0_i32_0 : i32, i32
  }
  func.func @transform_14(%arg0: i32) -> (i32, i32) {
    %c0_i32 = arith.constant 0 : i32
    %c0_i32_0 = arith.constant 0 : i32
    %c0_i32_1 = arith.constant 0 : i32
    return %c0_i32, %c0_i32_0 : i32, i32
  }
  func.func @transform_15(%arg0: i32) -> (i32, i32) {
    %c0_i32 = arith.constant 0 : i32
    %c0_i32_0 = arith.constant 0 : i32
    %c0_i32_1 = arith.constant 0 : i32
    return %c0_i32, %c0_i32_0 : i32, i32
  }
  func.func @transform_16(%arg0: i32) -> (i32, i32) {
    %c0_i32 = arith.constant 0 : i32
    %c0_i32_0 = arith.constant 0 : i32
    %c0_i32_1 = arith.constant 0 : i32
    return %c0_i32, %c0_i32_0 : i32, i32
  }
  func.func @transform_17(%arg0: i32) -> (i32, i32) {
    %c0_i32 = arith.constant 0 : i32
    %c0_i32_0 = arith.constant 0 : i32
    %c0_i32_1 = arith.constant 0 : i32
    return %c0_i32, %c0_i32_0 : i32, i32
  }
}

module attributes {stable_mosaic.version = 11 : i64} {
  func.func @lm_loss_kernel(%arg0: i32, %arg1: memref<2xi32, #tpu.memory_space<smem>>, %arg2: memref<1x24x32xf32, #tpu.memory_space<vmem>>, %arg3: memref<1x1x24xf32, #tpu.memory_space<vmem>>, %arg4: memref<1x24x1xi32, #tpu.memory_space<vmem>>, %arg5: memref<1x32xf32, #tpu.memory_space<vmem>>, %arg6: memref<1x32xf32, #tpu.memory_space<vmem>>, %arg7: memref<32x96xbf16, #tpu.memory_space<vmem>>, %arg8: memref<1x96xf32, #tpu.memory_space<vmem>>, %arg9: memref<32x32xbf16, #tpu.memory_space<vmem>>, %arg10: memref<1x32xf32, #tpu.memory_space<vmem>>, %arg11: memref<1x32xf32, #tpu.memory_space<vmem>>, %arg12: memref<1x32xf32, #tpu.memory_space<vmem>>, %arg13: memref<32x64xbf16, #tpu.memory_space<vmem>>, %arg14: memref<1x64xf32, #tpu.memory_space<vmem>>, %arg15: memref<64x32xbf16, #tpu.memory_space<vmem>>, %arg16: memref<1x32xf32, #tpu.memory_space<vmem>>, %arg17: memref<1x32xf32, #tpu.memory_space<vmem>>, %arg18: memref<1x32xf32, #tpu.memory_space<vmem>>, %arg19: memref<32x128xbf16, #tpu.memory_space<vmem>>, %arg20: memref<1x128xf32, #tpu.memory_space<vmem>>, %arg21: memref<1x1x128xf32, #tpu.memory_space<vmem>>) attributes {dimension_semantics = [#tpu.dimension_semantics<parallel>], iteration_bounds = array<i64: 2>, scalar_prefetch = 1 : i64, scratch_operands = 0 : i64, tpu.core_type = #tpu.core_type<tc>, window_params = [{transform_indices = @transform_0, window_bounds = array<i64: 1, 24, 32>}, {transform_indices = @transform_1, window_bounds = array<i64: 1, 1, 24>}, {transform_indices = @transform_2, window_bounds = array<i64: 1, 24, 1>}, {pipeline_mode = #tpu.pipeline_mode<synchronous>, transform_indices = @transform_3, window_bounds = array<i64: 1, 32>}, {pipeline_mode = #tpu.pipeline_mode<synchronous>, transform_indices = @transform_4, window_bounds = array<i64: 1, 32>}, {pipeline_mode = #tpu.pipeline_mode<synchronous>, transform_indices = @transform_5, window_bounds = array<i64: 32, 96>}, {pipeline_mode = #tpu.pipeline_mode<synchronous>, transform_indices = @transform_6, window_bounds = array<i64: 1, 96>}, {pipeline_mode = #tpu.pipeline_mode<synchronous>, transform_indices = @transform_7, window_bounds = array<i64: 32, 32>}, {pipeline_mode = #tpu.pipeline_mode<synchronous>, transform_indices = @transform_8, window_bounds = array<i64: 1, 32>}, {pipeline_mode = #tpu.pipeline_mode<synchronous>, transform_indices = @transform_9, window_bounds = array<i64: 1, 32>}, {pipeline_mode = #tpu.pipeline_mode<synchronous>, transform_indices = @transform_10, window_bounds = array<i64: 1, 32>}, {pipeline_mode = #tpu.pipeline_mode<synchronous>, transform_indices = @transform_11, window_bounds = array<i64: 32, 64>}, {pipeline_mode = #tpu.pipeline_mode<synchronous>, transform_indices = @transform_12, window_bounds = array<i64: 1, 64>}, {pipeline_mode = #tpu.pipeline_mode<synchronous>, transform_indices = @transform_13, window_bounds = array<i64: 64, 32>}, {pipeline_mode = #tpu.pipeline_mode<synchronous>, transform_indices = @transform_14, window_bounds = array<i64: 1, 32>}, {pipeline_mode = #tpu.pipeline_mode<synchronous>, transform_indices = @transform_15, window_bounds = array<i64: 1, 32>}, {pipeline_mode = #tpu.pipeline_mode<synchronous>, transform_indices = @transform_16, window_bounds = array<i64: 1, 32>}, {pipeline_mode = #tpu.pipeline_mode<synchronous>, transform_indices = @transform_17, window_bounds = array<i64: 32, 128>}, {pipeline_mode = #tpu.pipeline_mode<synchronous>, transform_indices = @transform_18, window_bounds = array<i64: 1, 128>}, {transform_indices = @transform_19, window_bounds = array<i64: 1, 1, 128>}]} {
    %c0 = arith.constant 0 : index
    %c0_0 = arith.constant 0 : index
    %c0_1 = arith.constant 0 : index
    %0 = vector.load %arg2[%c0, %c0_0, %c0_1] : memref<1x24x32xf32, #tpu.memory_space<vmem>>, vector<1x24x32xf32>
    %1 = vector.shape_cast %0 : vector<1x24x32xf32> to vector<24x32xf32>
    %c0_2 = arith.constant 0 : index
    %c0_3 = arith.constant 0 : index
    %c0_4 = arith.constant 0 : index
    %2 = vector.load %arg3[%c0_2, %c0_3, %c0_4] : memref<1x1x24xf32, #tpu.memory_space<vmem>>, vector<1x1x24xf32>
    %3 = vector.shape_cast %2 : vector<1x1x24xf32> to vector<1x24xf32>
    %c0_5 = arith.constant 0 : index
    %c0_6 = arith.constant 0 : index
    %c0_7 = arith.constant 0 : index
    %4 = vector.load %arg4[%c0_5, %c0_6, %c0_7] : memref<1x24x1xi32, #tpu.memory_space<vmem>>, vector<1x24x1xi32>
    %5 = vector.shape_cast %4 : vector<1x24x1xi32> to vector<24x1xi32>
    %cst = arith.constant dense<0.000000e+00> : vector<24xf32>
    %6 = vector.multi_reduction <add>, %1, %cst [1] : vector<24x32xf32> to vector<24xf32>
    %7 = vector.shape_cast %6 : vector<24xf32> to vector<24x1xf32>
    %cst_8 = arith.constant 3.200000e+01 : f32
    %8 = vector.broadcast %cst_8 : f32 to vector<24x1xf32>
    %9 = arith.divf %7, %8 : vector<24x1xf32>
    %10 = vector.broadcast %9 : vector<24x1xf32> to vector<24x32xf32>
    %11 = arith.subf %1, %10 : vector<24x32xf32>
    %12 = arith.mulf %11, %11 : vector<24x32xf32>
    %cst_9 = arith.constant dense<0.000000e+00> : vector<24xf32>
    %13 = vector.multi_reduction <add>, %12, %cst_9 [1] : vector<24x32xf32> to vector<24xf32>
    %14 = vector.shape_cast %13 : vector<24xf32> to vector<24x1xf32>
    %cst_10 = arith.constant 3.200000e+01 : f32
    %15 = vector.broadcast %cst_10 : f32 to vector<24x1xf32>
    %16 = arith.divf %14, %15 : vector<24x1xf32>
    %17 = vector.broadcast %9 : vector<24x1xf32> to vector<24x32xf32>
    %18 = arith.subf %1, %17 : vector<24x32xf32>
    %cst_11 = arith.constant 9.99999974E-6 : f32
    %19 = vector.broadcast %cst_11 : f32 to vector<24x1xf32>
    %20 = arith.addf %16, %19 : vector<24x1xf32>
    %21 = math.rsqrt %20 : vector<24x1xf32>
    %22 = vector.broadcast %21 : vector<24x1xf32> to vector<24x32xf32>
    %23 = arith.mulf %18, %22 : vector<24x32xf32>
    %c0_12 = arith.constant 0 : index
    %c0_13 = arith.constant 0 : index
    %24 = vector.load %arg5[%c0_12, %c0_13] : memref<1x32xf32, #tpu.memory_space<vmem>>, vector<1x32xf32>
    %25 = vector.broadcast %24 : vector<1x32xf32> to vector<24x32xf32>
    %26 = arith.mulf %23, %25 : vector<24x32xf32>
    %c0_14 = arith.constant 0 : index
    %c0_15 = arith.constant 0 : index
    %27 = vector.load %arg6[%c0_14, %c0_15] : memref<1x32xf32, #tpu.memory_space<vmem>>, vector<1x32xf32>
    %28 = vector.broadcast %27 : vector<1x32xf32> to vector<24x32xf32>
    %29 = arith.addf %26, %28 : vector<24x32xf32>
    %30 = arith.truncf %29 : vector<24x32xf32> to vector<24x32xbf16>
    %c0_16 = arith.constant 0 : index
    %c0_17 = arith.constant 0 : index
    %31 = vector.load %arg7[%c0_16, %c0_17] : memref<32x96xbf16, #tpu.memory_space<vmem>>, vector<32x96xbf16>
    %cst_18 = arith.constant dense<0.000000e+00> : vector<24x96xf32>
    %32 = tpu.matmul %30, %31, %cst_18 {dimension_numbers = #tpu.dot_dimension_numbers<[1], [0], [0], [1], [0, 0, 1, 1], [], []>} : vector<24x32xbf16>, vector<32x96xbf16>, vector<24x96xf32> -> vector<24x96xf32>
    %c0_19 = arith.constant 0 : index
    %c0_20 = arith.constant 0 : index
    %33 = vector.load %arg8[%c0_19, %c0_20] : memref<1x96xf32, #tpu.memory_space<vmem>>, vector<1x96xf32>
    %34 = vector.broadcast %33 : vector<1x96xf32> to vector<24x96xf32>
    %35 = arith.addf %32, %34 : vector<24x96xf32>
    %36 = vector.extract_strided_slice %35 {offsets = [0, 0], sizes = [24, 32], strides = [1, 1]} : vector<24x96xf32> to vector<24x32xf32>
    %37 = vector.extract_strided_slice %35 {offsets = [0, 32], sizes = [24, 32], strides = [1, 1]} : vector<24x96xf32> to vector<24x32xf32>
    %38 = vector.extract_strided_slice %35 {offsets = [0, 64], sizes = [24, 32], strides = [1, 1]} : vector<24x96xf32> to vector<24x32xf32>
    %39 = vector.extract_strided_slice %36 {offsets = [0, 0], sizes = [24, 8], strides = [1, 1]} : vector<24x32xf32> to vector<24x8xf32>
    %40 = vector.shape_cast %39 : vector<24x8xf32> to vector<1x24x8xf32>
    %41 = vector.extract_strided_slice %36 {offsets = [0, 8], sizes = [24, 8], strides = [1, 1]} : vector<24x32xf32> to vector<24x8xf32>
    %42 = vector.shape_cast %41 : vector<24x8xf32> to vector<1x24x8xf32>
    %43 = vector.extract_strided_slice %36 {offsets = [0, 16], sizes = [24, 8], strides = [1, 1]} : vector<24x32xf32> to vector<24x8xf32>
    %44 = vector.shape_cast %43 : vector<24x8xf32> to vector<1x24x8xf32>
    %45 = vector.extract_strided_slice %36 {offsets = [0, 24], sizes = [24, 8], strides = [1, 1]} : vector<24x32xf32> to vector<24x8xf32>
    %46 = vector.shape_cast %45 : vector<24x8xf32> to vector<1x24x8xf32>
    %47 = tpu.concatenate %40, %42, %44, %46 in 0 : vector<1x24x8xf32>, vector<1x24x8xf32>, vector<1x24x8xf32>, vector<1x24x8xf32> -> vector<4x24x8xf32>
    %48 = arith.truncf %47 : vector<4x24x8xf32> to vector<4x24x8xbf16>
    %49 = vector.extract_strided_slice %37 {offsets = [0, 0], sizes = [24, 8], strides = [1, 1]} : vector<24x32xf32> to vector<24x8xf32>
    %50 = vector.shape_cast %49 : vector<24x8xf32> to vector<1x24x8xf32>
    %51 = vector.extract_strided_slice %37 {offsets = [0, 8], sizes = [24, 8], strides = [1, 1]} : vector<24x32xf32> to vector<24x8xf32>
    %52 = vector.shape_cast %51 : vector<24x8xf32> to vector<1x24x8xf32>
    %53 = vector.extract_strided_slice %37 {offsets = [0, 16], sizes = [24, 8], strides = [1, 1]} : vector<24x32xf32> to vector<24x8xf32>
    %54 = vector.shape_cast %53 : vector<24x8xf32> to vector<1x24x8xf32>
    %55 = vector.extract_strided_slice %37 {offsets = [0, 24], sizes = [24, 8], strides = [1, 1]} : vector<24x32xf32> to vector<24x8xf32>
    %56 = vector.shape_cast %55 : vector<24x8xf32> to vector<1x24x8xf32>
    %57 = tpu.concatenate %50, %52, %54, %56 in 0 : vector<1x24x8xf32>, vector<1x24x8xf32>, vector<1x24x8xf32>, vector<1x24x8xf32> -> vector<4x24x8xf32>
    %58 = arith.truncf %57 : vector<4x24x8xf32> to vector<4x24x8xbf16>
    %59 = vector.extract_strided_slice %38 {offsets = [0, 0], sizes = [24, 8], strides = [1, 1]} : vector<24x32xf32> to vector<24x8xf32>
    %60 = vector.shape_cast %59 : vector<24x8xf32> to vector<1x24x8xf32>
    %61 = vector.extract_strided_slice %38 {offsets = [0, 8], sizes = [24, 8], strides = [1, 1]} : vector<24x32xf32> to vector<24x8xf32>
    %62 = vector.shape_cast %61 : vector<24x8xf32> to vector<1x24x8xf32>
    %63 = vector.extract_strided_slice %38 {offsets = [0, 16], sizes = [24, 8], strides = [1, 1]} : vector<24x32xf32> to vector<24x8xf32>
    %64 = vector.shape_cast %63 : vector<24x8xf32> to vector<1x24x8xf32>
    %65 = vector.extract_strided_slice %38 {offsets = [0, 24], sizes = [24, 8], strides = [1, 1]} : vector<24x32xf32> to vector<24x8xf32>
    %66 = vector.shape_cast %65 : vector<24x8xf32> to vector<1x24x8xf32>
    %67 = tpu.concatenate %60, %62, %64, %66 in 0 : vector<1x24x8xf32>, vector<1x24x8xf32>, vector<1x24x8xf32>, vector<1x24x8xf32> -> vector<4x24x8xf32>
    %68 = arith.truncf %67 : vector<4x24x8xf32> to vector<4x24x8xbf16>
    %69 = tpu.iota {dimensions = array<i32: 0>} : vector<24x24xi32>
    %70 = tpu.iota {dimensions = array<i32: 1>} : vector<24x24xi32>
    %71 = arith.cmpi sge, %69, %70 : vector<24x24xi32>
    %cst_21 = arith.constant 5.000000e-01 : f32
    %72 = vector.broadcast %cst_21 : f32 to vector<1x24xf32>
    %73 = arith.cmpf ogt, %3, %72 : vector<1x24xf32>
    %74 = vector.broadcast %73 : vector<1x24xi1> to vector<24x24xi1>
    %75 = arith.andi %71, %74 : vector<24x24xi1>
    "tpu.trace_start"() <{level = 10 : i32, message = "hqd,hkd->hqk"}> : () -> ()
    %cst_22 = arith.constant dense<0.000000e+00> : vector<4x24x24xf32>
    %76 = tpu.matmul %48, %58, %cst_22 {dimension_numbers = #tpu.dot_dimension_numbers<[2], [2], [1], [1], [0, 0, 0, 1, 1, 1], [0], [0]>} : vector<4x24x8xbf16>, vector<4x24x8xbf16>, vector<4x24x24xf32> -> vector<4x24x24xf32>
    "tpu.trace_stop"() : () -> ()
    %cst_23 = arith.constant 0.353553385 : f32
    %77 = vector.broadcast %cst_23 : f32 to vector<4x24x24xf32>
    %78 = arith.mulf %76, %77 : vector<4x24x24xf32>
    %79 = vector.shape_cast %75 : vector<24x24xi1> to vector<1x24x24xi1>
    %cst_24 = arith.constant -1.000000e+09 : f32
    %80 = vector.shape_cast %79 : vector<1x24x24xi1> to vector<1x24x24xi1>
    %81 = vector.broadcast %80 : vector<1x24x24xi1> to vector<4x24x24xi1>
    %82 = vector.broadcast %cst_24 : f32 to vector<4x24x24xf32>
    %83 = arith.select %81, %78, %82 : vector<4x24x24xi1>, vector<4x24x24xf32>
    %cst_25 = arith.constant dense<0xFF800000> : vector<4x24xf32>
    %84 = vector.multi_reduction <maximumf>, %83, %cst_25 [2] : vector<4x24x24xf32> to vector<4x24xf32>
    %85 = vector.shape_cast %84 : vector<4x24xf32> to vector<4x24x1xf32>
    %86 = vector.broadcast %85 : vector<4x24x1xf32> to vector<4x24x24xf32>
    %87 = arith.subf %83, %86 : vector<4x24x24xf32>
    %88 = math.exp %87 : vector<4x24x24xf32>
    %cst_26 = arith.constant dense<0.000000e+00> : vector<4x24xf32>
    %89 = vector.multi_reduction <add>, %88, %cst_26 [2] : vector<4x24x24xf32> to vector<4x24xf32>
    %90 = vector.shape_cast %89 : vector<4x24xf32> to vector<4x24x1xf32>
    %91 = vector.broadcast %90 : vector<4x24x1xf32> to vector<4x24x24xf32>
    %92 = arith.divf %88, %91 : vector<4x24x24xf32>
    %93 = arith.truncf %92 : vector<4x24x24xf32> to vector<4x24x24xbf16>
    "tpu.trace_start"() <{level = 10 : i32, message = "hqk,hkd->hqd"}> : () -> ()
    %cst_27 = arith.constant dense<0.000000e+00> : vector<4x24x8xf32>
    %94 = tpu.matmul %93, %68, %cst_27 {dimension_numbers = #tpu.dot_dimension_numbers<[2], [1], [1], [2], [0, 0, 0, 1, 1, 2], [0], [0]>} : vector<4x24x24xbf16>, vector<4x24x8xbf16>, vector<4x24x8xf32> -> vector<4x24x8xf32>
    "tpu.trace_stop"() : () -> ()
    %95 = vector.extract_strided_slice %94 {offsets = [0, 0, 0], sizes = [1, 24, 8], strides = [1, 1, 1]} : vector<4x24x8xf32> to vector<1x24x8xf32>
    %96 = vector.shape_cast %95 : vector<1x24x8xf32> to vector<24x8xf32>
    %97 = vector.extract_strided_slice %94 {offsets = [1, 0, 0], sizes = [1, 24, 8], strides = [1, 1, 1]} : vector<4x24x8xf32> to vector<1x24x8xf32>
    %98 = vector.shape_cast %97 : vector<1x24x8xf32> to vector<24x8xf32>
    %99 = vector.extract_strided_slice %94 {offsets = [2, 0, 0], sizes = [1, 24, 8], strides = [1, 1, 1]} : vector<4x24x8xf32> to vector<1x24x8xf32>
    %100 = vector.shape_cast %99 : vector<1x24x8xf32> to vector<24x8xf32>
    %101 = vector.extract_strided_slice %94 {offsets = [3, 0, 0], sizes = [1, 24, 8], strides = [1, 1, 1]} : vector<4x24x8xf32> to vector<1x24x8xf32>
    %102 = vector.shape_cast %101 : vector<1x24x8xf32> to vector<24x8xf32>
    %103 = tpu.concatenate %96, %98, %100, %102 in 1 : vector<24x8xf32>, vector<24x8xf32>, vector<24x8xf32>, vector<24x8xf32> -> vector<24x32xf32>
    %104 = arith.truncf %103 : vector<24x32xf32> to vector<24x32xbf16>
    %c0_28 = arith.constant 0 : index
    %c0_29 = arith.constant 0 : index
    %105 = vector.load %arg9[%c0_28, %c0_29] : memref<32x32xbf16, #tpu.memory_space<vmem>>, vector<32x32xbf16>
    %cst_30 = arith.constant dense<0.000000e+00> : vector<24x32xf32>
    %106 = tpu.matmul %104, %105, %cst_30 {dimension_numbers = #tpu.dot_dimension_numbers<[1], [0], [0], [1], [0, 0, 1, 1], [], []>} : vector<24x32xbf16>, vector<32x32xbf16>, vector<24x32xf32> -> vector<24x32xf32>
    %107 = arith.addf %1, %106 : vector<24x32xf32>
    %c0_31 = arith.constant 0 : index
    %c0_32 = arith.constant 0 : index
    %108 = vector.load %arg10[%c0_31, %c0_32] : memref<1x32xf32, #tpu.memory_space<vmem>>, vector<1x32xf32>
    %109 = vector.broadcast %108 : vector<1x32xf32> to vector<24x32xf32>
    %110 = arith.addf %107, %109 : vector<24x32xf32>
    %cst_33 = arith.constant dense<0.000000e+00> : vector<24xf32>
    %111 = vector.multi_reduction <add>, %110, %cst_33 [1] : vector<24x32xf32> to vector<24xf32>
    %112 = vector.shape_cast %111 : vector<24xf32> to vector<24x1xf32>
    %cst_34 = arith.constant 3.200000e+01 : f32
    %113 = vector.broadcast %cst_34 : f32 to vector<24x1xf32>
    %114 = arith.divf %112, %113 : vector<24x1xf32>
    %115 = vector.broadcast %114 : vector<24x1xf32> to vector<24x32xf32>
    %116 = arith.subf %110, %115 : vector<24x32xf32>
    %117 = arith.mulf %116, %116 : vector<24x32xf32>
    %cst_35 = arith.constant dense<0.000000e+00> : vector<24xf32>
    %118 = vector.multi_reduction <add>, %117, %cst_35 [1] : vector<24x32xf32> to vector<24xf32>
    %119 = vector.shape_cast %118 : vector<24xf32> to vector<24x1xf32>
    %cst_36 = arith.constant 3.200000e+01 : f32
    %120 = vector.broadcast %cst_36 : f32 to vector<24x1xf32>
    %121 = arith.divf %119, %120 : vector<24x1xf32>
    %122 = vector.broadcast %114 : vector<24x1xf32> to vector<24x32xf32>
    %123 = arith.subf %110, %122 : vector<24x32xf32>
    %cst_37 = arith.constant 9.99999974E-6 : f32
    %124 = vector.broadcast %cst_37 : f32 to vector<24x1xf32>
    %125 = arith.addf %121, %124 : vector<24x1xf32>
    %126 = math.rsqrt %125 : vector<24x1xf32>
    %127 = vector.broadcast %126 : vector<24x1xf32> to vector<24x32xf32>
    %128 = arith.mulf %123, %127 : vector<24x32xf32>
    %c0_38 = arith.constant 0 : index
    %c0_39 = arith.constant 0 : index
    %129 = vector.load %arg11[%c0_38, %c0_39] : memref<1x32xf32, #tpu.memory_space<vmem>>, vector<1x32xf32>
    %130 = vector.broadcast %129 : vector<1x32xf32> to vector<24x32xf32>
    %131 = arith.mulf %128, %130 : vector<24x32xf32>
    %c0_40 = arith.constant 0 : index
    %c0_41 = arith.constant 0 : index
    %132 = vector.load %arg12[%c0_40, %c0_41] : memref<1x32xf32, #tpu.memory_space<vmem>>, vector<1x32xf32>
    %133 = vector.broadcast %132 : vector<1x32xf32> to vector<24x32xf32>
    %134 = arith.addf %131, %133 : vector<24x32xf32>
    %135 = arith.truncf %134 : vector<24x32xf32> to vector<24x32xbf16>
    %c0_42 = arith.constant 0 : index
    %c0_43 = arith.constant 0 : index
    %136 = vector.load %arg13[%c0_42, %c0_43] : memref<32x64xbf16, #tpu.memory_space<vmem>>, vector<32x64xbf16>
    %cst_44 = arith.constant dense<0.000000e+00> : vector<24x64xf32>
    %137 = tpu.matmul %135, %136, %cst_44 {dimension_numbers = #tpu.dot_dimension_numbers<[1], [0], [0], [1], [0, 0, 1, 1], [], []>} : vector<24x32xbf16>, vector<32x64xbf16>, vector<24x64xf32> -> vector<24x64xf32>
    %c0_45 = arith.constant 0 : index
    %c0_46 = arith.constant 0 : index
    %138 = vector.load %arg14[%c0_45, %c0_46] : memref<1x64xf32, #tpu.memory_space<vmem>>, vector<1x64xf32>
    %139 = vector.broadcast %138 : vector<1x64xf32> to vector<24x64xf32>
    %140 = arith.addf %137, %139 : vector<24x64xf32>
    %cst_47 = arith.constant 0.000000e+00 : f32
    %141 = vector.broadcast %cst_47 : f32 to vector<24x64xf32>
    %142 = arith.maximumf %140, %141 : vector<24x64xf32>
    %143 = arith.truncf %142 : vector<24x64xf32> to vector<24x64xbf16>
    %c0_48 = arith.constant 0 : index
    %c0_49 = arith.constant 0 : index
    %144 = vector.load %arg15[%c0_48, %c0_49] : memref<64x32xbf16, #tpu.memory_space<vmem>>, vector<64x32xbf16>
    %cst_50 = arith.constant dense<0.000000e+00> : vector<24x32xf32>
    %145 = tpu.matmul %143, %144, %cst_50 {dimension_numbers = #tpu.dot_dimension_numbers<[1], [0], [0], [1], [0, 0, 1, 1], [], []>} : vector<24x64xbf16>, vector<64x32xbf16>, vector<24x32xf32> -> vector<24x32xf32>
    %146 = arith.addf %110, %145 : vector<24x32xf32>
    %c0_51 = arith.constant 0 : index
    %c0_52 = arith.constant 0 : index
    %147 = vector.load %arg16[%c0_51, %c0_52] : memref<1x32xf32, #tpu.memory_space<vmem>>, vector<1x32xf32>
    %148 = vector.broadcast %147 : vector<1x32xf32> to vector<24x32xf32>
    %149 = arith.addf %146, %148 : vector<24x32xf32>
    %cst_53 = arith.constant dense<0.000000e+00> : vector<24xf32>
    %150 = vector.multi_reduction <add>, %149, %cst_53 [1] : vector<24x32xf32> to vector<24xf32>
    %151 = vector.shape_cast %150 : vector<24xf32> to vector<24x1xf32>
    %cst_54 = arith.constant 3.200000e+01 : f32
    %152 = vector.broadcast %cst_54 : f32 to vector<24x1xf32>
    %153 = arith.divf %151, %152 : vector<24x1xf32>
    %154 = vector.broadcast %153 : vector<24x1xf32> to vector<24x32xf32>
    %155 = arith.subf %149, %154 : vector<24x32xf32>
    %156 = arith.mulf %155, %155 : vector<24x32xf32>
    %cst_55 = arith.constant dense<0.000000e+00> : vector<24xf32>
    %157 = vector.multi_reduction <add>, %156, %cst_55 [1] : vector<24x32xf32> to vector<24xf32>
    %158 = vector.shape_cast %157 : vector<24xf32> to vector<24x1xf32>
    %cst_56 = arith.constant 3.200000e+01 : f32
    %159 = vector.broadcast %cst_56 : f32 to vector<24x1xf32>
    %160 = arith.divf %158, %159 : vector<24x1xf32>
    %161 = vector.broadcast %153 : vector<24x1xf32> to vector<24x32xf32>
    %162 = arith.subf %149, %161 : vector<24x32xf32>
    %cst_57 = arith.constant 9.99999974E-6 : f32
    %163 = vector.broadcast %cst_57 : f32 to vector<24x1xf32>
    %164 = arith.addf %160, %163 : vector<24x1xf32>
    %165 = math.rsqrt %164 : vector<24x1xf32>
    %166 = vector.broadcast %165 : vector<24x1xf32> to vector<24x32xf32>
    %167 = arith.mulf %162, %166 : vector<24x32xf32>
    %c0_58 = arith.constant 0 : index
    %c0_59 = arith.constant 0 : index
    %168 = vector.load %arg17[%c0_58, %c0_59] : memref<1x32xf32, #tpu.memory_space<vmem>>, vector<1x32xf32>
    %169 = vector.broadcast %168 : vector<1x32xf32> to vector<24x32xf32>
    %170 = arith.mulf %167, %169 : vector<24x32xf32>
    %c0_60 = arith.constant 0 : index
    %c0_61 = arith.constant 0 : index
    %171 = vector.load %arg18[%c0_60, %c0_61] : memref<1x32xf32, #tpu.memory_space<vmem>>, vector<1x32xf32>
    %172 = vector.broadcast %171 : vector<1x32xf32> to vector<24x32xf32>
    %173 = arith.addf %170, %172 : vector<24x32xf32>
    %174 = arith.truncf %173 : vector<24x32xf32> to vector<24x32xbf16>
    %c0_62 = arith.constant 0 : index
    %c0_63 = arith.constant 0 : index
    %175 = vector.load %arg19[%c0_62, %c0_63] : memref<32x128xbf16, #tpu.memory_space<vmem>>, vector<32x128xbf16>
    %cst_64 = arith.constant dense<0.000000e+00> : vector<24x128xf32>
    %176 = tpu.matmul %174, %175, %cst_64 {dimension_numbers = #tpu.dot_dimension_numbers<[1], [0], [0], [1], [0, 0, 1, 1], [], []>} : vector<24x32xbf16>, vector<32x128xbf16>, vector<24x128xf32> -> vector<24x128xf32>
    %c0_65 = arith.constant 0 : index
    %c0_66 = arith.constant 0 : index
    %177 = vector.load %arg20[%c0_65, %c0_66] : memref<1x128xf32, #tpu.memory_space<vmem>>, vector<1x128xf32>
    %178 = vector.broadcast %177 : vector<1x128xf32> to vector<24x128xf32>
    %179 = arith.addf %176, %178 : vector<24x128xf32>
    %180 = arith.index_cast %arg0 : i32 to index
    %181 = memref.load %arg1[%180] : memref<2xi32, #tpu.memory_space<smem>>
    %182 = vector.extract_strided_slice %5 {offsets = [1, 0], sizes = [23, 1], strides = [1, 1]} : vector<24x1xi32> to vector<23x1xi32>
    %c0_i32 = arith.constant 0 : i32
    %183 = vector.broadcast %c0_i32 : i32 to vector<1x1xi32>
    %184 = tpu.concatenate %182, %183 in 0 : vector<23x1xi32>, vector<1x1xi32> -> vector<24x1xi32>
    %cst_67 = arith.constant dense<0xFF800000> : vector<24xf32>
    %185 = vector.multi_reduction <maximumf>, %179, %cst_67 [1] : vector<24x128xf32> to vector<24xf32>
    %186 = vector.shape_cast %185 : vector<24xf32> to vector<24x1xf32>
    %187 = vector.broadcast %186 : vector<24x1xf32> to vector<24x128xf32>
    %188 = arith.subf %179, %187 : vector<24x128xf32>
    %189 = math.exp %188 : vector<24x128xf32>
    %cst_68 = arith.constant dense<0.000000e+00> : vector<24xf32>
    %190 = vector.multi_reduction <add>, %189, %cst_68 [1] : vector<24x128xf32> to vector<24xf32>
    %191 = vector.shape_cast %190 : vector<24xf32> to vector<24x1xf32>
    %192 = math.log %191 : vector<24x1xf32>
    %193 = arith.addf %186, %192 : vector<24x1xf32>
    %194 = tpu.iota {dimensions = array<i32: 1>} : vector<24x128xi32>
    %195 = vector.broadcast %184 : vector<24x1xi32> to vector<24x128xi32>
    %196 = arith.cmpi eq, %194, %195 : vector<24x128xi32>
    %cst_69 = arith.constant 0.000000e+00 : f32
    %197 = vector.broadcast %cst_69 : f32 to vector<24x128xf32>
    %198 = arith.select %196, %179, %197 : vector<24x128xi1>, vector<24x128xf32>
    %cst_70 = arith.constant dense<0.000000e+00> : vector<24xf32>
    %199 = vector.multi_reduction <add>, %198, %cst_70 [1] : vector<24x128xf32> to vector<24xf32>
    %200 = vector.shape_cast %199 : vector<24xf32> to vector<24x1xf32>
    %201 = tpu.iota {dimensions = array<i32: 0>} : vector<24x1xi32>
    %202 = vector.broadcast %181 : i32 to vector<24x1xi32>
    %203 = arith.cmpi sge, %201, %202 : vector<24x1xi32>
    %c22_i32 = arith.constant 22 : i32
    %204 = vector.broadcast %c22_i32 : i32 to vector<24x1xi32>
    %205 = arith.cmpi sle, %201, %204 : vector<24x1xi32>
    %206 = arith.andi %203, %205 : vector<24x1xi1>
    %c0_i32_71 = arith.constant 0 : i32
    %207 = vector.broadcast %c0_i32_71 : i32 to vector<24x1xi32>
    %208 = arith.cmpi ne, %184, %207 : vector<24x1xi32>
    %209 = arith.andi %206, %208 : vector<24x1xi1>
    %210 = arith.subf %193, %200 : vector<24x1xf32>
    %cst_72 = arith.constant 0.000000e+00 : f32
    %211 = vector.broadcast %cst_72 : f32 to vector<24x1xf32>
    %212 = arith.select %209, %210, %211 : vector<24x1xi1>, vector<24x1xf32>
    %213 = vector.shape_cast %212 : vector<24x1xf32> to vector<1x24x1xf32>
    %cst_73 = arith.constant dense<0.000000e+00> : vector<1xf32>
    %214 = vector.multi_reduction <add>, %213, %cst_73 [1, 2] : vector<1x24x1xf32> to vector<1xf32>
    %215 = vector.shape_cast %214 : vector<1xf32> to vector<1x1x1xf32>
    %216 = vector.extract %215[0, 0, 0] : f32 from vector<1x1x1xf32>
    %217 = vector.broadcast %216 : f32 to vector<1x128xf32>
    %c0_74 = arith.constant 0 : index
    %c0_75 = arith.constant 0 : index
    %c0_76 = arith.constant 0 : index
    %218 = vector.load %arg21[%c0_74, %c0_75, %c0_76] : memref<1x1x128xf32, #tpu.memory_space<vmem>>, vector<1x1x128xf32>
    %219 = vector.shape_cast %218 : vector<1x1x128xf32> to vector<1x128xf32>
    %220 = vector.shape_cast %217 : vector<1x128xf32> to vector<1x1x128xf32>
    tpu.vector_store %arg21[%c0_74, %c0_75, %c0_76], %220 {strides = array<i32>} : memref<1x1x128xf32, #tpu.memory_space<vmem>>, vector<1x1x128xf32>,
    return
  }
  func.func @transform_0(%arg0: i32, %arg1: memref<2xi32, #tpu.memory_space<smem>>) -> (i32, i32, i32) {
    %c0_i32 = arith.constant 0 : i32
    %c0_i32_0 = arith.constant 0 : i32
    %c0_i32_1 = arith.constant 0 : i32
    return %arg0, %c0_i32, %c0_i32_0 : i32, i32, i32
  }
  func.func @transform_1(%arg0: i32, %arg1: memref<2xi32, #tpu.memory_space<smem>>) -> (i32, i32, i32) {
    %c0_i32 = arith.constant 0 : i32
    %c0_i32_0 = arith.constant 0 : i32
    %c0_i32_1 = arith.constant 0 : i32
    return %arg0, %c0_i32, %c0_i32_0 : i32, i32, i32
  }
  func.func @transform_2(%arg0: i32, %arg1: memref<2xi32, #tpu.memory_space<smem>>) -> (i32, i32, i32) {
    %c0_i32 = arith.constant 0 : i32
    %c0_i32_0 = arith.constant 0 : i32
    %c0_i32_1 = arith.constant 0 : i32
    return %arg0, %c0_i32, %c0_i32_0 : i32, i32, i32
  }
  func.func @transform_3(%arg0: i32, %arg1: memref<2xi32, #tpu.memory_space<smem>>) -> (i32, i32) {
    %c0_i32 = arith.constant 0 : i32
    %c0_i32_0 = arith.constant 0 : i32
    %c0_i32_1 = arith.constant 0 : i32
    return %c0_i32, %c0_i32_0 : i32, i32
  }
  func.func @transform_4(%arg0: i32, %arg1: memref<2xi32, #tpu.memory_space<smem>>) -> (i32, i32) {
    %c0_i32 = arith.constant 0 : i32
    %c0_i32_0 = arith.constant 0 : i32
    %c0_i32_1 = arith.constant 0 : i32
    return %c0_i32, %c0_i32_0 : i32, i32
  }
  func.func @transform_5(%arg0: i32, %arg1: memref<2xi32, #tpu.memory_space<smem>>) -> (i32, i32) {
    %c0_i32 = arith.constant 0 : i32
    %c0_i32_0 = arith.constant 0 : i32
    %c0_i32_1 = arith.constant 0 : i32
    return %c0_i32, %c0_i32_0 : i32, i32
  }
  func.func @transform_6(%arg0: i32, %arg1: memref<2xi32, #tpu.memory_space<smem>>) -> (i32, i32) {
    %c0_i32 = arith.constant 0 : i32
    %c0_i32_0 = arith.constant 0 : i32
    %c0_i32_1 = arith.constant 0 : i32
    return %c0_i32, %c0_i32_0 : i32, i32
  }
  func.func @transform_7(%arg0: i32, %arg1: memref<2xi32, #tpu.memory_space<smem>>) -> (i32, i32) {
    %c0_i32 = arith.constant 0 : i32
    %c0_i32_0 = arith.constant 0 : i32
    %c0_i32_1 = arith.constant 0 : i32
    return %c0_i32, %c0_i32_0 : i32, i32
  }
  func.func @transform_8(%arg0: i32, %arg1: memref<2xi32, #tpu.memory_space<smem>>) -> (i32, i32) {
    %c0_i32 = arith.constant 0 : i32
    %c0_i32_0 = arith.constant 0 : i32
    %c0_i32_1 = arith.constant 0 : i32
    return %c0_i32, %c0_i32_0 : i32, i32
  }
  func.func @transform_9(%arg0: i32, %arg1: memref<2xi32, #tpu.memory_space<smem>>) -> (i32, i32) {
    %c0_i32 = arith.constant 0 : i32
    %c0_i32_0 = arith.constant 0 : i32
    %c0_i32_1 = arith.constant 0 : i32
    return %c0_i32, %c0_i32_0 : i32, i32
  }
  func.func @transform_10(%arg0: i32, %arg1: memref<2xi32, #tpu.memory_space<smem>>) -> (i32, i32) {
    %c0_i32 = arith.constant 0 : i32
    %c0_i32_0 = arith.constant 0 : i32
    %c0_i32_1 = arith.constant 0 : i32
    return %c0_i32, %c0_i32_0 : i32, i32
  }
  func.func @transform_11(%arg0: i32, %arg1: memref<2xi32, #tpu.memory_space<smem>>) -> (i32, i32) {
    %c0_i32 = arith.constant 0 : i32
    %c0_i32_0 = arith.constant 0 : i32
    %c0_i32_1 = arith.constant 0 : i32
    return %c0_i32, %c0_i32_0 : i32, i32
  }
  func.func @transform_12(%arg0: i32, %arg1: memref<2xi32, #tpu.memory_space<smem>>) -> (i32, i32) {
    %c0_i32 = arith.constant 0 : i32
    %c0_i32_0 = arith.constant 0 : i32
    %c0_i32_1 = arith.constant 0 : i32
    return %c0_i32, %c0_i32_0 : i32, i32
  }
  func.func @transform_13(%arg0: i32, %arg1: memref<2xi32, #tpu.memory_space<smem>>) -> (i32, i32) {
    %c0_i32 = arith.constant 0 : i32
    %c0_i32_0 = arith.constant 0 : i32
    %c0_i32_1 = arith.constant 0 : i32
    return %c0_i32, %c0_i32_0 : i32, i32
  }
  func.func @transform_14(%arg0: i32, %arg1: memref<2xi32, #tpu.memory_space<smem>>) -> (i32, i32) {
    %c0_i32 = arith.constant 0 : i32
    %c0_i32_0 = arith.constant 0 : i32
    %c0_i32_1 = arith.constant 0 : i32
    return %c0_i32, %c0_i32_0 : i32, i32
  }
  func.func @transform_15(%arg0: i32, %arg1: memref<2xi32, #tpu.memory_space<smem>>) -> (i32, i32) {
    %c0_i32 = arith.constant 0 : i32
    %c0_i32_0 = arith.constant 0 : i32
    %c0_i32_1 = arith.constant 0 : i32
    return %c0_i32, %c0_i32_0 : i32, i32
  }
  func.func @transform_16(%arg0: i32, %arg1: memref<2xi32, #tpu.memory_space<smem>>) -> (i32, i32) {
    %c0_i32 = arith.constant 0 : i32
    %c0_i32_0 = arith.constant 0 : i32
    %c0_i32_1 = arith.constant 0 : i32
    return %c0_i32, %c0_i32_0 : i32, i32
  }
  func.func @transform_17(%arg0: i32, %arg1: memref<2xi32, #tpu.memory_space<smem>>) -> (i32, i32) {
    %c0_i32 = arith.constant 0 : i32
    %c0_i32_0 = arith.constant 0 : i32
    %c0_i32_1 = arith.constant 0 : i32
    return %c0_i32, %c0_i32_0 : i32, i32
  }
  func.func @transform_18(%arg0: i32, %arg1: memref<2xi32, #tpu.memory_space<smem>>) -> (i32, i32) {
    %c0_i32 = arith.constant 0 : i32
    %c0_i32_0 = arith.constant 0 : i32
    %c0_i32_1 = arith.constant 0 : i32
    return %c0_i32, %c0_i32_0 : i32, i32
  }
  func.func @transform_19(%arg0: i32, %arg1: memref<2xi32, #tpu.memory_space<smem>>) -> (i32, i32, i32) {
    %c0_i32 = arith.constant 0 : i32
    %c0_i32_0 = arith.constant 0 : i32
    %c0_i32_1 = arith.constant 0 : i32
    return %arg0, %c0_i32, %c0_i32_0 : i32, i32, i32
  }
}

</mosaic_0001>

<bundles_post_ra>
// kernel: stagecs_forward.3
= control target key start
LH: loop header
LB: loop body
LE: loop exit
PB: predicated region body
PF: predicated region fallthrough
CT: control target
= control target key end

     0   :  { %s3175_s0 = inlined_call_operand.vmem [shape: s32[2], index: 0, kind: input, shape index: {}]   ;;  %s3176_s1 = inlined_call_operand.vmem [shape: f32[2,24,32], index: 1, kind: input, shape index: {}]   ;;  %s3177_s2 = inlined_call_operand.vmem [shape: f32[2,1,24], index: 2, kind: input, shape index: {}]   ;;  %s3178_s3 = inlined_call_operand.vmem [shape: s32[2,24,1], index: 3, kind: input, shape index: {}]   ;;  %s3179_s4 = inlined_call_operand.vmem [shape: f32[1,32], index: 4, kind: input, shape index: {}]   ;;  %s3180_s5 = inlined_call_operand.vmem [shape: f32[1,32], index: 5, kind: input, shape index: {}]   ;;  %s3181_s6 = inlined_call_operand.vmem [shape: bf16[32,96], index: 6, kind: input, shape index: {}]   ;;  %s3182_s7 = inlined_call_operand.vmem [shape: f32[1,96], index: 7, kind: input, shape index: {}]   ;;  %s3183_s8 = inlined_call_operand.vmem [shape: bf16[32,32], index: 8, kind: input, shape index: {}]   ;;  %s3184_s9 = inlined_call_operand.vmem [shape: f32[1,32], index: 9, kind: input, shape index: {}]   ;;  %s3185_s10 = inlined_call_operand.vmem [shape: f32[1,32], index: 10, kind: input, shape index: {}]   ;;  %s3186_s11 = inlined_call_operand.vmem [shape: f32[1,32], index: 11, kind: input, shape index: {}]   ;;  %s3187_s12 = inlined_call_operand.vmem [shape: bf16[32,64], index: 12, kind: input, shape index: {}]   ;;  %s3188_s13 = inlined_call_operand.vmem [shape: f32[1,64], index: 13, kind: input, shape index: {}]   ;;  %s3189_s14 = inlined_call_operand.vmem [shape: bf16[64,32], index: 14, kind: input, shape index: {}]   ;;  %s3190_s15 = inlined_call_operand.vmem [shape: f32[1,32], index: 15, kind: input, shape index: {}]   ;;  %s3191_s16 = inlined_call_operand.vmem [shape: f32[1,32], index: 16, kind: input, shape index: {}]   ;;  %s3192_s17 = inlined_call_operand.vmem [shape: f32[1,32], index: 17, kind: input, shape index: {}]   ;;  %s3193_s18 = inlined_call_operand.vmem [shape: bf16[32,128], index: 18, kind: input, shape index: {}]   ;;  %s3194_s19 = inlined_call_operand.vmem [shape: f32[1,128], index: 19, kind: input, shape index: {}]   ;;  %s3195_s20 = inlined_call_operand.vmem [shape: f32[2,1,128], index: 20, kind: output, shape index: {}]  }
   0x1   :  { %3196 = sst [smem:[#allocation5_spill]] %s3175_s0 }
   0x2   :  { %3197 = sst [smem:[#allocation6_spill]] %s3176_s1  ;;  %s3202_s23 = sld [smem:[#allocation5_spill]] }
   0x3   :  { %3198 = sst [smem:[#allocation7_spill]] %s3177_s2 }
   0x4   :  { %3199 = sst [smem:[#allocation8_spill]] %s3178_s3 }
   0x5   :  { %3200 = sst [smem:[#allocation9_spill]] %s3179_s4 }
   0x6   :  { %3201 = sst [smem:[#allocation10_spill]] %s3188_s13 }
   0x8   :  { %s25_s13 = sshll.u32 %s3202_s23, 4  ;;  %s26_s13 = int_to_ptr.vmem [resolvable:$true] %s25_s13 }
   0x9   :  { %s2583_s24 = scalar_lea.vmem %s26_s13, 16  ;;  %p2588_p1 = scmp.lt.s32.totalorder %s26_s13, %s26_s13 }
   0xa   :  { %p2584_p0 = scmp.ne.s32.totalorder %s26_s13, %s2583_s24  ;;  %p2589_p2 = scmp.lt.s32.totalorder %s2583_s24, %s2583_s24 }
   0xc   :  { %p2590_p3 = por %p2589_p2, %p2588_p1 }
   0xe   :  { %p2591_p4 = pnand %p2590_p3, %p2584_p0 }
  0x10   :  { %2594 = shalt.err (!%p2591_p4)  }
  0x11   :  { %s2605_s2 = smov [#allocation3]  }
  0x12   :  { %28 = dma.vmem_to_smem %s26_s13, 16, %s2605_s2, [#allocation2] }
  0x13   :  { %2599 = dma.done.wait [#allocation2], 16 }
  0x14   :  { %2600 = vsyncadd [#allocation2], 4294967280 }
  0x15   :  { %30 = sfence }
  0x16   :  { %s2723_s25 = smov 0  }
  0x17 LB: > { %s2729_s3 = sadd.s32 4294967295, %s2603_s25   ;;  %p2212_p5 = scmp.ge.s32.totalorder %s2603_s25, 1  ;;  %s2603_s25 = sphi %s2723_s25, %s36_s25  }
  0x18   : > { %p562_p6 = scmp.lt.s32.totalorder %s2603_s25, 3 }
  0x1a   : > { %p563_p7 = pnand %p2212_p5, %p562_p6 }
  0x1b   : > { %p624_p8 = scmp.lt.s32.totalorder (!%p563_p7), %s2729_s3, 1  ;;  %vm648_vm0 = vcmask (!%p563_p7), 261120   ;;  %s3203_s4 = sld [smem:[#allocation6_spill]] (!%p563_p7)  ;;  %v2493_v21 = vld [vmem:[%s3181_s6] sm:$0xff] (!%p563_p7)   ;;  %v2494_v22 = vld [vmem:[%s3181_s6 + $0x8] sm:$0xff] (!%p563_p7)   ;;  %vm851_vm1 = vcmask (!%p563_p7), 64512  }
  0x1c   : > { %566 = sbr.rel (%p563_p7) target bundleno = 3770 (0xeba), region = 96  ;;  %2320 = vmatprep.subr.bf16.mxu0 (!%p563_p7), %v2493_v21  ;;  %s3204_s24 = sld [smem:[#allocation9_spill]] (!%p563_p7)  ;;  %v2216_v40 = vld [vmem:[%s3180_s5] ss:$0 sm:$0xff] (!%p563_p7)  ;;  %vm1140_vm8 = vcmask (!%p563_p7), 195584   ;;  %vm1292_vm11 = vcmask (!%p563_p7), 1043456  }
  0x1d   : > { %2321 = vmatpush3.bf16.msra.mxu0 (!%p563_p7), %v2493_v21  ;;  %v2217_v48 = vld [vmem:[%s3182_s7] ss:$0 sm:$0xff] (!%p563_p7)  ;;  %s2607_s30 = smov (!%p563_p7), 112   ;;  %s2608_s0 = smov (!%p563_p7), 104   ;;  %vm1569_vm12 = vcmask (!%p563_p7), 130048   ;;  %vm1836_vm13 = vcmask (!%p563_p7), 523264  }
  0x1e   : > { %2322 = vmatprep.subr.bf16.mxu0 (!%p563_p7), %v2494_v22  ;;  %s2609_s21 = smov (!%p563_p7), 96   ;;  %s3205_s23 = sld [smem:[#allocation7_spill]] (!%p563_p7)  ;;  %vm2043_vm14 = vcmask (!%p563_p7), 1046528  }
  0x1f   : > { %s2611_s2 = smov (!%p563_p7), 64  }
  0x21   : > { %2323 = vmatpush3.bf16.msra.mxu0 (!%p563_p7), %v2494_v22 }
  0x22   : > { %v2215_v34 = vld [vmem:[%s3204_s24] ss:$0 sm:$0xff] (!%p563_p7) }
  0x23   : > { %s2735_s13 = scalar_select %p624_p8, %s2729_s3, 1 }
  0x25   : > { %s2440_s26 = smul.u32 24, %s2735_s13  ;;  %s631_s24 = scalar_lea.vmem %s3205_s23, %s2735_s13 }
  0x26   : > { %s639_s23 = scalar_lea.vmem %s3195_s20, %s2735_s13 }
  0x27   : > { %s628_s29 = scalar_lea.vmem %s3203_s4, %s2440_s26  ;;  %s2612_s4 = smov 8  }
  0x28   : > { %v2743_v0 = vld [vmem:[%s628_s29] sm:$0xff]  ;;  %v2745_v1 = vld [vmem:[%s628_s29 + $0x10] sm:$0xff]  ;;  %v2747_v2 = vld [vmem:[%s628_s29 + $0x8] sm:$0xff]  ;;  %s2606_s29 = smov 120  }
  0x29   : > { %v649_v3 = vsel %vm648_vm0, %v2743_v0, 0.0  ;;  %v655_v4 = vsel %vm648_vm0, %v2745_v1, 0.0  ;;  %v652_v5 = vsel %vm648_vm0, %v2747_v2, 0.0 }
  0x2a   : > { %650 = vadd.xlane.f32.xlu0 %v649_v3  ;;  %656 = vadd.xlane.f32.xlu1 %v655_v4 }
  0x2e   : > { %653 = vadd.xlane.f32.xlu0 %v652_v5 }
  0xb7   : > { %v651_v6 = vpop.xlane.xlu0 %650  ;;  %v657_v7 = vpop.xlane.xlu1 %656 }
  0xb8   : > { %v659_v8 = vmul.f32 0.03125, %v651_v6  ;;  %v661_v9 = vmul.f32 0.03125, %v657_v7 }
  0xba   : > { %v662_v10 = vsub.f32 %v2743_v0, %v659_v8  ;;  %v664_v11 = vsub.f32 %v2745_v1, %v661_v9 }
  0xbb   : > { %v654_v12 = vpop.xlane.xlu0 %653 }
  0xbc   : > { %v660_v13 = vmul.f32 0.03125, %v654_v12  ;;  %v665_v14 = vmul.f32 %v662_v10, %v662_v10  ;;  %v667_v15 = vmul.f32 %v664_v11, %v664_v11 }
  0xbe   : > { %v663_v16 = vsub.f32 %v2747_v2, %v660_v13  ;;  %v668_v17 = vsel %vm648_vm0, %v665_v14, 0.0  ;;  %v674_v18 = vsel %vm648_vm0, %v667_v15, 0.0 }
  0xbf   : > { %669 = vadd.xlane.f32.xlu1 %v668_v17 }
  0xc0   : > { %v666_v19 = vmul.f32 %v663_v16, %v663_v16 }
  0xc2   : > { %v671_v20 = vsel %vm648_vm0, %v666_v19, 0.0 }
  0xc3   : > { %675 = vadd.xlane.f32.xlu1 %v674_v18  ;;  %672 = vadd.xlane.f32.xlu0 %v671_v20  ;;  %v2610_v20 = vmov 0  }
  0xc4   : > { %2491 = vset.pattern.permute.xlu1 %v2610_v20  ;;  %2492 = vset.pattern.permute.xlu0 %v2610_v20 }
 0x14c   : > { %v670_v23 = vpop.xlane.xlu1 %669 }
 0x14d   : > { %v677_v24 = vmul.f32 0.03125, %v670_v23 }
 0x14f   : > { %v680_v25 = vadd.f32 1e-05, %v677_v24 }
 0x150   : > { %v676_v26 = vpop.xlane.xlu1 %675  ;;  %v673_v27 = vpop.xlane.xlu0 %672 }
 0x151   : > { %2505 = vrsqrt.f32 %v680_v25  ;;  %v679_v28 = vmul.f32 0.03125, %v676_v26  ;;  %v678_v29 = vmul.f32 0.03125, %v673_v27 }
 0x153   : > { %v682_v30 = vadd.f32 1e-05, %v679_v28  ;;  %v681_v31 = vadd.f32 1e-05, %v678_v29 }
 0x155   : > { %2507 = vrsqrt.f32 %v682_v30 }
 0x156   : > { %2509 = vrsqrt.f32 %v681_v31 }
 0x15b   : > { %v2506_v32 = vpop.eup %2505 }
 0x15c   : > { %v686_v33 = vmul.f32 %v2506_v32, %v662_v10 }
 0x15e   : > { %v696_v39 = vmul.f32 %v2215_v34, %v686_v33  ;;  %v826_v33 = vlaneseq }
 0x15f   : > { %v2508_v35 = vpop.eup %2507 }
 0x160   : > { %v2510_v36 = vpop.eup %2509  ;;  %v688_v37 = vmul.f32 %v2508_v35, %v664_v11  ;;  %v706_v44 = vadd.f32 %v2216_v40, %v696_v39  ;;  %v2846_v35 = vshrl.u32 %v826_v33, 7  ;;  %v2852_v39 = vand.u32 127, %v826_v33 }
 0x161   : > { %v687_v38 = vmul.f32 %v2510_v36, %v663_v16 }
 0x162   : > { %v698_v41 = vmul.f32 %v2215_v34, %v688_v37  ;;  %v839_v36 = vsub.s32 0, %v2846_v35  ;;  %vm832_vm5 = vcmp.ge.s32.totalorder %v2846_v35, %v2852_v39 }
 0x163   : > { %v697_v42 = vmul.f32 %v2215_v34, %v687_v38  ;;  %v644_v34 = vld [vmem:[%s631_s24] sm:$0x1]  ;;  %v2850_v38 = vadd.s32 16, %v2846_v35 }
 0x164   : > { %v708_v43 = vadd.f32 %v2216_v40, %v698_v41  ;;  %vm835_vm2 = vcmp.gt.f32.partialorder %v644_v34, 0.5  ;;  %v2855_v41 = vadd.s32 8, %v2846_v35 }
 0x165   : > { %v707_v45 = vadd.f32 %v2216_v40, %v697_v42  ;;  %v836_v37 = vsel %vm835_vm2, 1, %v2610_v20  ;;  %vm834_vm3 = vcmp.ge.s32.totalorder %v2850_v38, %v2852_v39 }
 0x166   : > { %v710_v46 = vpack.c.bf16 %v708_v43, %v708_v43  ;;  %v840_v40 = vrot.slane %v836_v37, %v839_v36  ;;  %vm833_vm7 = vcmp.ge.s32.totalorder %v2855_v41, %v2852_v39 }
 0x167   : > { %v709_v47 = vpack.c.bf16 %v707_v45, %v706_v44 }
 0x168   : > { %vm841_vm4 = vcmp.eq.s32.totalorder %v840_v40, 1 }
 0x169   : > { %2324 = vmatprep.mubr.msk.bf16.mxu0 %vm648_vm0, %v709_v47  ;;  %vm2861_vm6 = vmand %vm834_vm3, %vm841_vm4 }
 0x16a   : > { %2325 = vmatmul.mubr.msk.bf16.vlgmr.msra.gmra.mrb[0].mxu0 %vm648_vm0, %v710_v46  ;;  %vm2867_vm9 = vmand %vm832_vm5, %vm841_vm4  ;;  %vm2107_vm5 = vcmp.le.s32.totalorder %v2850_v38, 22 }
 0x16b   : > { %vm2875_vm10 = vmand %vm833_vm7, %vm841_vm4 }
 0x23d   : > { %v2326_v49 = vpop.f32.mrb[0].mxu0 }
 0x23e   : > { %v783_v50 = vadd.f32 %v2326_v49, %v2217_v48  ;;  %v774_v51 = vpop.f32.mrb[1].mxu0 }
 0x23f   : > { %v2327_v52 = vpop.f32.mrb[2].mxu0  ;;  %v775_v54 = vadd.f32 %v2217_v48, %v774_v51 }
 0x240   : > { %795 = vrot.lane.b32.xlu1 %v783_v50, %s2606_s29  ;;  %v777_v53 = vpop.f32.mrb[3].mxu0  ;;  %v2784_v58 = vpack.c.bf16 %v783_v50, %v783_v50 }
 0x241   : > { %v778_v55 = vadd.f32 %v2217_v48, %v777_v53 }
 0x243   : > { %v2466_v56 = vpack.i.bf16 %v778_v55, %v775_v54  ;;  %v2778_v57 = vpack.c.bf16 %v778_v55, %v775_v54 }
 0x245   : > { %2467 = vrot.lane.b32.xlu1 %v2466_v56, %s2607_s30  ;;  %2462 = vrot.lane.b32.xlu0 %v2466_v56, %s2606_s29  ;;  %s3212_s29 = sld [smem:[#allocation10_spill]] }
 0x246   : > { %2332 = vmatprep.mubr.msk.bf16.mxu1 %vm851_vm1, %v2778_v57 }
 0x249   : > { %2472 = vrot.lane.b32.xlu1 %v2466_v56, %s2608_s0  ;;  %804 = vrot.lane.b32.xlu0 %v783_v50, %s2607_s30 }
 0x24d   : > { %813 = vrot.lane.b32.xlu1 %v783_v50, %s2608_s0  ;;  %847 = vrot.lane.b32.xlu0 %v2778_v57, %s2609_s21  ;;  %s2613_s0 = smov 16  }
 0x251   : > { %849 = vrot.lane.b32.xlu0 %v2784_v58, %s2609_s21 }
 0x2b2   : > { %v796_v59 = vpop.permute.xlu1 %795 }
 0x2b3   : > { %v2798_v9 = vpack.c.bf16 %v796_v59, %v796_v59 }
 0x2b7   : > { %v2468_v60 = vpop.permute.xlu1 %2467  ;;  %v2463_v61 = vpop.permute.xlu0 %2462 }
 0x2b8   : > { %v2470_v62 = vunpack.i.h.bf16 %v2468_v60  ;;  %v2469_v63 = vunpack.i.l.bf16 %v2468_v60  ;;  %v2465_v3 = vunpack.i.h.bf16 %v2463_v61  ;;  %v2464_v4 = vunpack.i.l.bf16 %v2463_v61 }
 0x2ba   : > { %v2788_v5 = vpack.c.bf16 %v2470_v62, %v2469_v63  ;;  %v2790_v6 = vpack.c.bf16 %v2465_v3, %v2464_v4 }
 0x2bb   : > { %v2473_v7 = vpop.permute.xlu1 %2472  ;;  %v805_v8 = vpop.permute.xlu0 %804 }
 0x2bc   : > { %914 = vrot.lane.b32.xlu1 %v2790_v6, %s2609_s21  ;;  %2340 = vmatprep.mubr.msk.bf16.mxu0 %vm851_vm1, %v2790_v6  ;;  %v2475_v10 = vunpack.i.h.bf16 %v2473_v7  ;;  %v2474_v11 = vunpack.i.l.bf16 %v2473_v7  ;;  %v2800_v12 = vpack.c.bf16 %v805_v8, %v805_v8 }
 0x2bd   : > { %980 = vrot.lane.b32.xlu0 %v2788_v5, %s2609_s21 }
 0x2be   : > { %v2808_v15 = vpack.c.bf16 %v2475_v10, %v2474_v11 }
 0x2bf   : > { %v848_v13 = vpop.permute.xlu0 %847  ;;  %v814_v16 = vpop.permute.xlu1 %813 }
 0x2c0   : > { %916 = vrot.lane.b32.xlu1 %v2798_v9, %s2609_s21  ;;  %2428 = vmatprep.subr.msk.bf16.mxu1 %vm851_vm1, %v848_v13  ;;  %v859_v14 = vsel %vm851_vm1, %v848_v13, 0  ;;  %v2813_v18 = vpack.c.bf16 %v814_v16, %v814_v16 }
 0x2c1   : > { %982 = vrot.lane.b32.xlu0 %v2800_v12, %s2609_s21  ;;  %2329 = vmatpush3.bf16.xpose.msra.mxu1 %v859_v14 }
 0x2c3   : > { %v850_v17 = vpop.permute.xlu0 %849 }
 0x2c4   : > { %1046 = vrot.lane.b32.xlu1 %v2808_v15, %s2609_s21  ;;  %2429 = vmatprep.subr.msk.bf16.mxu1 %vm851_vm1, %v850_v17  ;;  %v862_v19 = vsel %vm851_vm1, %v850_v17, 0 }
 0x2c8   : > { %1048 = vrot.lane.b32.xlu1 %v2813_v18, %s2609_s21  ;;  %s2614_s21 = smov 24  }
 0x2c9   : > { %2331 = vmatpush3.bf16.xpose.msra.mxu1 %v862_v19 }
 0x2d0   : > { %2333 = vmatmul.mubr.msk.bf16.vlgmr.msra.gmra.mrb[0].mxu1 %vm851_vm1, %v2784_v58 }
 0x2d1   : > { %2348 = vmatprep.mubr.msk.bf16.mxu1 %vm851_vm1, %v2788_v5 }
 0x32e   : > { %v915_v21 = vpop.permute.xlu1 %914 }
 0x32f   : > { %v925_v22 = vsel %vm851_vm1, %v915_v21, 0  ;;  %v981_v23 = vpop.permute.xlu0 %980  ;;  %2430 = vmatprep.subr.msk.bf16.mxu0 %vm851_vm1, %v915_v21 }
 0x330   : > { %v991_v24 = vsel %vm851_vm1, %v981_v23, 0  ;;  %2432 = vmatprep.subr.msk.bf16.mxu1 %vm851_vm1, %v981_v23  ;;  %2337 = vmatpush3.bf16.xpose.msra.mxu0 %v925_v22 }
 0x331   : > { %2345 = vmatpush3.bf16.xpose.msra.mxu1 %v991_v24 }
 0x332   : > { %v917_v25 = vpop.permute.xlu1 %916 }
 0x333   : > { %v983_v26 = vpop.permute.xlu0 %982  ;;  %2431 = vmatprep.subr.msk.bf16.mxu0 %vm851_vm1, %v917_v25  ;;  %v928_v27 = vsel %vm851_vm1, %v917_v25, 0 }
 0x334   : > { %2433 = vmatprep.subr.msk.bf16.mxu1 %vm851_vm1, %v983_v26  ;;  %v994_v28 = vsel %vm851_vm1, %v983_v26, 0 }
 0x336   : > { %v1047_v29 = vpop.permute.xlu1 %1046 }
 0x337   : > { %v1057_v30 = vsel %vm851_vm1, %v1047_v29, 0 }
 0x338   : > { %2339 = vmatpush3.bf16.xpose.msra.mxu0 %v928_v27 }
 0x339   : > { %2347 = vmatpush3.bf16.xpose.msra.mxu1 %v994_v28  ;;  %2434 = vmatprep.subr.msk.bf16.mxu0 %vm851_vm1, %v1047_v29 }
 0x33a   : > { %v1049_v31 = vpop.permute.xlu1 %1048 }
 0x33b   : > { %v1060_v32 = vsel %vm851_vm1, %v1049_v31, 0 }
 0x33f   : > { %2341 = vmatmul.mubr.msk.bf16.vlgmr.msra.gmra.mrb[4].mxu0 %vm851_vm1, %v2798_v9 }
 0x340   : > { %2349 = vmatmul.mubr.msk.bf16.vlgmr.msra.gmra.mrb[4].mxu1 %vm851_vm1, %v2800_v12  ;;  %2353 = vmatpush3.bf16.xpose.msra.mxu0 %v1057_v30 }
 0x341   : > { %2356 = vmatprep.mubr.msk.bf16.mxu0 %vm851_vm1, %v2808_v15  ;;  %2435 = vmatprep.subr.msk.bf16.mxu0 %vm851_vm1, %v1049_v31 }
 0x348   : > { %2355 = vmatpush3.bf16.xpose.msra.mxu0 %v1060_v32 }
 0x34f   : > { %2357 = vmatmul.mubr.msk.bf16.vlgmr.msra.gmra.mrb[8].mxu0 %vm851_vm1, %v2813_v18 }
 0x3a3   : > { %v2334_v42 = vpop.f32.mrb[0].mxu1 }
 0x3a4   : > { %v1112_v44 = vmul.f32 0.35355338, %v2334_v42  ;;  %v898_v45 = vpop.f32.mrb[1].mxu1 }
 0x3a5   : > { %v1110_v46 = vmul.f32 0.35355338, %v898_v45  ;;  %v2335_v47 = vpop.f32.mrb[2].mxu1 }
 0x3a6   : > { %v901_v49 = vpop.f32.mrb[3].mxu1  ;;  %v2873_v50 = vsel %vm2861_vm6, %v1112_v44, -1e+09 }
 0x3a7   : > { %v1111_v52 = vmul.f32 0.35355338, %v901_v49  ;;  %v1147_v53 = vsel %vm1140_vm8, %v2873_v50, -inf  ;;  %v2883_v54 = vsel %vm2867_vm9, %v1110_v46, -1e+09 }
 0x3a8   : > { %1148 = vmax.xlane.f32.xlu0 %v1147_v53  ;;  %v1141_v59 = vsel %vm1140_vm8, %v2883_v54, -inf }
 0x3a9   : > { %v2887_v55 = vsel %vm2875_vm10, %v1111_v52, -1e+09 }
 0x3aa   : > { %v1144_v56 = vsel %vm1140_vm8, %v2887_v55, -inf }
 0x3ab   : > { %1145 = vmax.xlane.f32.xlu1 %v1144_v56 }
 0x3ac   : > { %1142 = vmax.xlane.f32.xlu0 %v1141_v59 }
 0x412   : > { %v2342_v60 = vpop.f32.mrb[4].mxu0 }
 0x413   : > { %v1115_v61 = vmul.f32 0.35355338, %v2342_v60  ;;  %v2350_v62 = vpop.f32.mrb[4].mxu1  ;;  %v964_v63 = vpop.f32.mrb[5].mxu0 }
 0x414   : > { %v1113_v3 = vmul.f32 0.35355338, %v964_v63  ;;  %v1030_v4 = vpop.f32.mrb[5].mxu1  ;;  %v2343_v7 = vpop.f32.mrb[6].mxu0  ;;  %v1118_v26 = vmul.f32 0.35355338, %v2350_v62 }
 0x415   : > { %v1116_v8 = vmul.f32 0.35355338, %v1030_v4  ;;  %v2351_v10 = vpop.f32.mrb[6].mxu1  ;;  %v967_v11 = vpop.f32.mrb[7].mxu0  ;;  %v2895_v13 = vsel %vm2861_vm6, %v1115_v61, -1e+09 }
 0x416   : > { %v1033_v14 = vpop.f32.mrb[7].mxu1  ;;  %v1156_v16 = vsel %vm1140_vm8, %v2895_v13, -inf  ;;  %v2901_v17 = vsel %vm2867_vm9, %v1113_v3, -1e+09  ;;  %v1114_v21 = vmul.f32 0.35355338, %v967_v11 }
 0x417   : > { %v1117_v19 = vmul.f32 0.35355338, %v1033_v14  ;;  %1157 = vmax.xlane.f32.xlu1 %v1156_v16  ;;  %v1150_v20 = vsel %vm1140_vm8, %v2901_v17, -inf  ;;  %v2907_v22 = vsel %vm2867_vm9, %v1116_v8, -1e+09 }
 0x418   : > { %1151 = vmax.xlane.f32.xlu0 %v1150_v20  ;;  %v1159_v25 = vsel %vm1140_vm8, %v2907_v22, -inf  ;;  %v2919_v27 = vsel %vm2875_vm10, %v1114_v21, -1e+09  ;;  %v2925_v29 = vsel %vm2861_vm6, %v1118_v26, -1e+09 }
 0x419   : > { %v2911_v23 = vsel %vm2875_vm10, %v1117_v19, -1e+09  ;;  %v1153_v28 = vsel %vm1140_vm8, %v2919_v27, -inf  ;;  %v1165_v32 = vsel %vm1140_vm8, %v2925_v29, -inf }
 0x41a   : > { %v1162_v24 = vsel %vm1140_vm8, %v2911_v23, -inf }
 0x41b   : > { %1163 = vmax.xlane.f32.xlu1 %v1162_v24 }
 0x41c   : > { %1160 = vmax.xlane.f32.xlu0 %v1159_v25 }
 0x420   : > { %1154 = vmax.xlane.f32.xlu0 %v1153_v28 }
 0x422   : > { %v2358_v30 = vpop.f32.mrb[8].mxu0 }
 0x423   : > { %v1096_v31 = vpop.f32.mrb[9].mxu0  ;;  %v1121_v33 = vmul.f32 0.35355338, %v2358_v30 }
 0x424   : > { %v1119_v34 = vmul.f32 0.35355338, %v1096_v31  ;;  %v2359_v36 = vpop.f32.mrb[10].mxu0  ;;  %1166 = vmax.xlane.f32.xlu0 %v1165_v32 }
 0x425   : > { %v1099_v37 = vpop.f32.mrb[11].mxu0  ;;  %v2941_v46 = vsel %vm2861_vm6, %v1121_v33, -1e+09 }
 0x426   : > { %v1120_v40 = vmul.f32 0.35355338, %v1099_v37  ;;  %v2931_v42 = vsel %vm2867_vm9, %v1119_v34, -1e+09  ;;  %v1174_v48 = vsel %vm1140_vm8, %v2941_v46, -inf }
 0x427   : > { %v1168_v44 = vsel %vm1140_vm8, %v2931_v42, -inf }
 0x428   : > { %1169 = vmax.xlane.f32.xlu1 %v1168_v44  ;;  %v2937_v45 = vsel %vm2875_vm10, %v1120_v40, -1e+09 }
 0x429   : > { %v1171_v47 = vsel %vm1140_vm8, %v2937_v45, -inf }
 0x42a   : > { %1172 = vmax.xlane.f32.xlu0 %v1171_v47 }
 0x42c   : > { %1175 = vmax.xlane.f32.xlu1 %v1174_v48 }
 0x435   : > { %v1149_v43 = vpop.xlane.xlu0 %1148 }
 0x436   : > { %v1179_v49 = vsub.f32 %v2873_v50, %v1149_v43 }
 0x439   : > { %v1143_v51 = vpop.xlane.xlu0 %1142 }
 0x43a   : > { %v1177_v52 = vsub.f32 %v2883_v54, %v1143_v51 }
 0x43c   : > { %v1189_v53 = vmul.f32 1.442695, %v1177_v52 }
 0x43d   : > { %1344 = vrot.lane.b32.xlu1 %v2790_v6, %s2611_s2  ;;  %v1193_v6 = vmul.f32 1.442695, %v1179_v49 }
 0x43f   : > { %2511 = vpow2.f32 %v1193_v6 }
 0x440   : > { %1281 = vrot.lane.b32.xlu0 %v2778_v57, %s2611_s2  ;;  %v1146_v57 = vpop.xlane.xlu1 %1145  ;;  %2513 = vpow2.f32 %v1189_v53 }
 0x441   : > { %1283 = vrot.lane.b32.xlu1 %v2784_v58, %s2611_s2  ;;  %v1178_v58 = vsub.f32 %v2887_v55, %v1146_v57 }
 0x444   : > { %1406 = vrot.lane.b32.xlu0 %v2788_v5, %s2611_s2  ;;  %v1191_v5 = vmul.f32 1.442695, %v1178_v58 }
 0x445   : > { %1346 = vrot.lane.b32.xlu1 %v2798_v9, %s2611_s2 }
 0x446   : > { %2515 = vpow2.f32 %v1191_v5 }
 0x449   : > { %1468 = vrot.lane.b32.xlu1 %v2808_v15, %s2611_s2  ;;  %v2962_v56 = vpop.eup %2511 }
 0x44a   : > { %v1219_v9 = vsel %vm1140_vm8, %v2962_v56, 0.0  ;;  %v2966_v15 = vpop.eup %2513 }
 0x44b   : > { %v1213_v50 = vsel %vm1140_vm8, %v2966_v15, 0.0 }
 0x450   : > { %v2970_v54 = vpop.eup %2515 }
 0x451   : > { %v1216_v55 = vsel %vm1140_vm8, %v2970_v54, 0.0 }
 0x463   : > { %1220 = vadd.xlane.f32.xlu0 %v1219_v9 }
 0x467   : > { %1214 = vadd.xlane.f32.xlu0 %v1213_v50 }
 0x46d   : > { %1217 = vadd.xlane.f32.xlu1 %v1216_v55 }
 0x4a4   : > { %v1158_v59 = vpop.xlane.xlu1 %1157 }
 0x4a5   : > { %v1182_v60 = vsub.f32 %v2895_v13, %v1158_v59  ;;  %v1152_v61 = vpop.xlane.xlu0 %1151 }
 0x4a6   : > { %v1180_v62 = vsub.f32 %v2901_v17, %v1152_v61 }
 0x4a7   : > { %v1199_v63 = vmul.f32 1.442695, %v1182_v60 }
 0x4a8   : > { %v1195_v3 = vmul.f32 1.442695, %v1180_v62  ;;  %v1164_v4 = vpop.xlane.xlu1 %1163 }
 0x4a9   : > { %2517 = vpow2.f32 %v1199_v63  ;;  %v1184_v7 = vsub.f32 %v2911_v23, %v1164_v4  ;;  %v1161_v8 = vpop.xlane.xlu0 %1160 }
 0x4aa   : > { %2519 = vpow2.f32 %v1195_v3  ;;  %v1183_v14 = vsub.f32 %v2907_v22, %v1161_v8 }
 0x4ab   : > { %v1203_v10 = vmul.f32 1.442695, %v1184_v7 }
 0x4ac   : > { %v1201_v20 = vmul.f32 1.442695, %v1183_v14 }
 0x4ad   : > { %v1155_v11 = vpop.xlane.xlu0 %1154  ;;  %2521 = vpow2.f32 %v1203_v10 }
 0x4ae   : > { %v1181_v17 = vsub.f32 %v2919_v27, %v1155_v11 }
 0x4b0   : > { %v1197_v28 = vmul.f32 1.442695, %v1181_v17 }
 0x4b1   : > { %v1167_v16 = vpop.xlane.xlu0 %1166 }
 0x4b2   : > { %v1185_v19 = vsub.f32 %v2925_v29, %v1167_v16 }
 0x4b3   : > { %v2979_v13 = vpop.eup %2517 }
 0x4b4   : > { %v1205_v21 = vmul.f32 1.442695, %v1185_v19  ;;  %v1228_v24 = vsel %vm1140_vm8, %v2979_v13, 0.0  ;;  %v2984_v23 = vpop.eup %2519 }
 0x4b5   : > { %1229 = vadd.xlane.f32.xlu1 %v1228_v24  ;;  %v1170_v25 = vpop.xlane.xlu1 %1169  ;;  %v1222_v30 = vsel %vm1140_vm8, %v2984_v23, 0.0 }
 0x4b6   : > { %2523 = vpow2.f32 %v1205_v21  ;;  %v1186_v26 = vsub.f32 %v2931_v42, %v1170_v25 }
 0x4b7   : > { %v1173_v22 = vpop.xlane.xlu0 %1172  ;;  %2525 = vpow2.f32 %v1201_v20  ;;  %v2990_v27 = vpop.eup %2521 }
 0x4b8   : > { %v1187_v29 = vsub.f32 %v2937_v45, %v1173_v22  ;;  %v1207_v33 = vmul.f32 1.442695, %v1186_v26  ;;  %2527 = vpow2.f32 %v1197_v28  ;;  %v1234_v40 = vsel %vm1140_vm8, %v2990_v27, 0.0 }
 0x4b9   : > { %1223 = vadd.xlane.f32.xlu1 %v1222_v30  ;;  %v1176_v31 = vpop.xlane.xlu1 %1175 }
 0x4ba   : > { %v1188_v32 = vsub.f32 %v2941_v46, %v1176_v31  ;;  %v1209_v36 = vmul.f32 1.442695, %v1187_v29 }
 0x4bb   : > { %v1282_v34 = vpop.permute.xlu0 %1281 }
 0x4bc   : > { %v1211_v37 = vmul.f32 1.442695, %v1188_v32  ;;  %2360 = vmatprep.subr.bf16.mxu1 %v1282_v34 }
 0x4bd   : > { %2361 = vmatpush3.bf16.msra.mxu1 %v1282_v34  ;;  %1235 = vadd.xlane.f32.xlu1 %v1234_v40  ;;  %v1345_v42 = vpop.permute.xlu1 %1344 }
 0x4be   : > { %2529 = vpow2.f32 %v1211_v37  ;;  %2368 = vmatprep.subr.bf16.mxu0 %v1345_v42 }
 0x4bf   : > { %2531 = vpow2.f32 %v1207_v33  ;;  %2369 = vmatpush3.bf16.msra.mxu0 %v1345_v42  ;;  %v1407_v43 = vpop.permute.xlu0 %1406 }
 0x4c0   : > { %v2995_v44 = vpop.eup %2523  ;;  %2533 = vpow2.f32 %v1209_v36 }
 0x4c1   : > { %v1284_v45 = vpop.permute.xlu1 %1283  ;;  %v1237_v46 = vsel %vm1140_vm8, %v2995_v44, 0.0  ;;  %v2999_v47 = vpop.eup %2525 }
 0x4c2   : > { %v1294_v48 = vsel %vm1292_vm11, %v1284_v45, 0  ;;  %1238 = vadd.xlane.f32.xlu0 %v1237_v46  ;;  %2436 = vmatprep.subr.msk.bf16.mxu1 %vm1292_vm11, %v1284_v45  ;;  %v1231_v51 = vsel %vm1140_vm8, %v2999_v47, 0.0  ;;  %v3005_v6 = vpop.eup %2527 }
 0x4c3   : > { %2363 = vmatpush3.bf16.msra.mxu1 %v1294_v48  ;;  %v1225_v5 = vsel %vm1140_vm8, %v3005_v6, 0.0 }
 0x4c4   : > { %2376 = vmatprep.subr.bf16.mxu1 %v1407_v43 }
 0x4c5   : > { %v1347_v49 = vpop.permute.xlu1 %1346 }
 0x4c6   : > { %v1356_v52 = vsel %vm1292_vm11, %v1347_v49, 0  ;;  %1232 = vadd.xlane.f32.xlu0 %v1231_v51  ;;  %2437 = vmatprep.subr.msk.bf16.mxu0 %vm1292_vm11, %v1347_v49 }
 0x4c7   : > { %2371 = vmatpush3.bf16.msra.mxu0 %v1356_v52 }
 0x4c8   : > { %v3009_v57 = vpop.eup %2529 }
 0x4c9   : > { %v3011_v53 = vpop.eup %2531  ;;  %v3013_v58 = vpop.permute.xlu1 %1468  ;;  %v1246_v9 = vsel %vm1140_vm8, %v3009_v57, 0.0 }
 0x4ca   : > { %v3019_v50 = vpop.eup %2533  ;;  %1226 = vadd.xlane.f32.xlu0 %v1225_v5  ;;  %1247 = vadd.xlane.f32.xlu1 %v1246_v9  ;;  %v1240_v59 = vsel %vm1140_vm8, %v3011_v53, 0.0 }
 0x4cb   : > { %2384 = vmatprep.subr.bf16.mxu0 %v3013_v58  ;;  %v1243_v55 = vsel %vm1140_vm8, %v3019_v50, 0.0 }
 0x4ce   : > { %1244 = vadd.xlane.f32.xlu0 %v1243_v55  ;;  %1241 = vadd.xlane.f32.xlu1 %v1240_v59 }
 0x4df   : > { %1470 = vrot.lane.b32.xlu1 %v2813_v18, %s2611_s2 }
 0x4e4   : > { %1408 = vrot.lane.b32.xlu0 %v2800_v12, %s2611_s2 }
 0x4f0   : > { %v1221_v60 = vpop.xlane.xlu0 %1220 }
 0x4f1   : > { %2535 = vrcp.f32 %v1221_v60 }
 0x4f4   : > { %v1215_v61 = vpop.xlane.xlu0 %1214 }
 0x4f5   : > { %2537 = vrcp.f32 %v1215_v61 }
 0x4fa   : > { %v1218_v62 = vpop.xlane.xlu1 %1217 }
 0x4fb   : > { %2539 = vrcp.f32 %v1218_v62  ;;  %v2536_v63 = vpop.eup %2535 }
 0x4fc   : > { %v1254_v7 = vmul.f32 %v2536_v63, %v2962_v56 }
 0x4fe   : > { %v1274_v18 = vpack.c.bf16 %v1254_v7, %v1254_v7  ;;  %v2496_v7 = vld [vmem:[%s3183_s8 + $0x8] sm:$0xff]  }
 0x4ff   : > { %v2538_v3 = vpop.eup %2537 }
 0x500   : > { %v1250_v8 = vmul.f32 %v2538_v3, %v2966_v15 }
 0x505   : > { %v2540_v4 = vpop.eup %2539 }
 0x506   : > { %v1252_v10 = vmul.f32 %v2540_v4, %v2970_v54 }
 0x508   : > { %v1273_v11 = vpack.c.bf16 %v1252_v10, %v1250_v8 }
 0x50a   : > { %2364 = vmatprep.mubr.msk.bf16.mxu1 %vm1140_vm8, %v1273_v11 }
 0x50b   : > { %2365 = vmatmul.mubr.msk.bf16.vlgmr.msra.gmra.mrb[8].mxu1 %vm1140_vm8, %v1274_v18 }
 0x50c   : > { %2377 = vmatpush3.bf16.msra.mxu1 %v1407_v43 }
 0x542   : > { %v1230_v12 = vpop.xlane.xlu1 %1229 }
 0x546   : > { %v1224_v14 = vpop.xlane.xlu1 %1223 }
 0x54a   : > { %v1236_v16 = vpop.xlane.xlu1 %1235 }
 0x54f   : > { %v1239_v19 = vpop.xlane.xlu0 %1238 }
 0x550   : > { %2541 = vrcp.f32 %v1239_v19 }
 0x551   : > { %2543 = vrcp.f32 %v1236_v16 }
 0x553   : > { %v1233_v20 = vpop.xlane.xlu0 %1232 }
 0x554   : > { %2545 = vrcp.f32 %v1233_v20 }
 0x555   : > { %2547 = vrcp.f32 %v1230_v12 }
 0x556   : > { %2549 = vrcp.f32 %v1224_v14 }
 0x557   : > { %v1227_v56 = vpop.xlane.xlu0 %1226  ;;  %v1248_v15 = vpop.xlane.xlu1 %1247 }
 0x558   : > { %2551 = vrcp.f32 %v1227_v56 }
 0x559   : > { %2553 = vrcp.f32 %v1248_v15 }
 0x55a   : > { %v2542_v54 = vpop.eup %2541 }
 0x55b   : > { %v1245_v17 = vpop.xlane.xlu0 %1244  ;;  %v1242_v21 = vpop.xlane.xlu1 %1241  ;;  %v1266_v26 = vmul.f32 %v2542_v54, %v2995_v44 }
 0x55c   : > { %v2544_v24 = vpop.eup %2543  ;;  %2555 = vrcp.f32 %v1245_v17 }
 0x55d   : > { %2557 = vrcp.f32 %v1242_v21  ;;  %v1264_v30 = vmul.f32 %v2544_v24, %v2990_v27  ;;  %v1278_v37 = vpack.c.bf16 %v1266_v26, %v1266_v26 }
 0x55e   : > { %v2546_v25 = vpop.eup %2545 }
 0x55f   : > { %v2548_v22 = vpop.eup %2547  ;;  %v1409_v28 = vpop.permute.xlu0 %1408  ;;  %v1262_v29 = vmul.f32 %v2546_v25, %v2999_v47 }
 0x560   : > { %v2550_v31 = vpop.eup %2549  ;;  %v1418_v32 = vsel %vm1292_vm11, %v1409_v28, 0  ;;  %2438 = vmatprep.subr.msk.bf16.mxu1 %vm1292_vm11, %v1409_v28  ;;  %v1260_v36 = vmul.f32 %v2548_v22, %v2979_v13  ;;  %v1471_v43 = vpop.permute.xlu1 %1470 }
 0x561   : > { %2379 = vmatpush3.bf16.msra.mxu1 %v1418_v32  ;;  %v1277_v33 = vpack.c.bf16 %v1264_v30, %v1262_v29  ;;  %v1256_v40 = vmul.f32 %v2550_v31, %v2984_v23  ;;  %v1480_v51 = vsel %vm1292_vm11, %v1471_v43, 0 }
 0x562   : > { %v2552_v34 = vpop.eup %2551  ;;  %v1276_v46 = vpack.c.bf16 %v1260_v36, %v1260_v36 }
 0x563   : > { %2380 = vmatprep.mubr.msk.bf16.mxu1 %vm1140_vm8, %v1277_v33  ;;  %v1258_v42 = vmul.f32 %v2552_v34, %v3005_v6  ;;  %v2554_v27 = vpop.eup %2553 }
 0x564   : > { %2381 = vmatmul.mubr.msk.bf16.vlgmr.msra.gmra.mrb[12].mxu1 %vm1140_vm8, %v1278_v37  ;;  %v1272_v23 = vmul.f32 %v2554_v27, %v3009_v57  ;;  %v2495_v57 = vld [vmem:[%s3183_s8] sm:$0xff]  }
 0x565   : > { %v1275_v44 = vpack.c.bf16 %v1258_v42, %v1256_v40  ;;  %2392 = vmatprep.subr.bf16.mxu1 %v2495_v57  ;;  %v2242_v27 = vld [vmem:[%s3184_s9] ss:$0 sm:$0xff] }
 0x566   : > { %v2556_v45 = vpop.eup %2555  ;;  %v1280_v6 = vpack.c.bf16 %v1272_v23, %v1272_v23  ;;  %2393 = vmatpush3.bf16.msra.mxu1 %v2495_v57 }
 0x567   : > { %v2558_v47 = vpop.eup %2557  ;;  %2372 = vmatprep.mubr.msk.bf16.mxu0 %vm1140_vm8, %v1275_v44  ;;  %v1270_v48 = vmul.f32 %v2556_v45, %v3019_v50  ;;  %2394 = vmatprep.subr.bf16.mxu1 %v2496_v7 }
 0x568   : > { %2373 = vmatmul.mubr.msk.bf16.vlgmr.msra.gmra.mrb[12].mxu0 %vm1140_vm8, %v1276_v46  ;;  %v1268_v13 = vmul.f32 %v2558_v47, %v3011_v53 }
 0x569   : > { %2385 = vmatpush3.bf16.msra.mxu0 %v3013_v58 }
 0x56a   : > { %2439 = vmatprep.subr.msk.bf16.mxu0 %vm1292_vm11, %v1471_v43  ;;  %v1279_v49 = vpack.c.bf16 %v1270_v48, %v1268_v13  ;;  %2395 = vmatpush3.bf16.msra.mxu1 %v2496_v7  ;;  %v2499_v7 = vld [vmem:[%s3189_s14] sm:$0xff]  }
 0x56b   : > { %2408 = vmatprep.subr.bf16.mxu1 %v2499_v7 }
 0x56c   : > { %2388 = vmatprep.mubr.msk.bf16.mxu0 %vm1140_vm8, %v1279_v49 }
 0x56d   : > { %2387 = vmatpush3.bf16.msra.mxu0 %v1480_v51 }
 0x570   : > { %2389 = vmatmul.mubr.msk.bf16.vlgmr.msra.gmra.mrb[16].mxu0 %vm1140_vm8, %v1280_v6 }
 0x5de   : > { %v2366_v52 = vpop.f32.mrb[8].mxu1 }
 0x5df   : > { %v1330_v5 = vpop.f32.mrb[9].mxu1 }
 0x5e0   : > { %v2367_v9 = vpop.f32.mrb[10].mxu1 }
 0x5e1   : > { %v1333_v53 = vpop.f32.mrb[11].mxu1 }
 0x637   : > { %v2382_v50 = vpop.f32.mrb[12].mxu1 }
 0x638   : > { %v1454_v55 = vpop.f32.mrb[13].mxu1 }
 0x639   : > { %v2383_v58 = vpop.f32.mrb[14].mxu1 }
 0x63a   : > { %v1457_v59 = vpop.f32.mrb[15].mxu1 }
 0x63b   : > { %v2481_v60 = vpack.i.bf16 %v1457_v59, %v1454_v55  ;;  %v2374_v61 = vpop.f32.mrb[12].mxu0 }
 0x63c   : > { %1537 = vrot.lane.b32.xlu1 %v2374_v61, %s2612_s4  ;;  %v1392_v62 = vpop.f32.mrb[13].mxu0 }
 0x63d   : > { %v2375_v63 = vpop.f32.mrb[14].mxu0 }
 0x63e   : > { %v1395_v3 = vpop.f32.mrb[15].mxu0 }
 0x63f   : > { %v2476_v4 = vpack.i.bf16 %v1395_v3, %v1392_v62  ;;  %v2497_v3 = vld [vmem:[%s3187_s12] sm:$0xff]  }
 0x640   : > { %1549 = vrot.lane.b32.xlu1 %v2382_v50, %s2613_s0  ;;  %2400 = vmatprep.subr.bf16.mxu0 %v2497_v3 }
 0x641   : > { %2477 = vrot.lane.b32.xlu0 %v2476_v4, %s2612_s4  ;;  %v2498_v4 = vld [vmem:[%s3187_s12 + $0x8] sm:$0xff]   ;;  %2401 = vmatpush3.bf16.msra.mxu0 %v2497_v3 }
 0x642   : > { %2402 = vmatprep.subr.bf16.mxu0 %v2498_v4 }
 0x643   : > { %v2390_v8 = vpop.f32.mrb[16].mxu0 }
 0x644   : > { %1561 = vrot.lane.b32.xlu1 %v2390_v8, %s2614_s21  ;;  %v1516_v10 = vpop.f32.mrb[17].mxu0  ;;  %v2500_v8 = vld [vmem:[%s3189_s14 + $0x8] sm:$0xff]  }
 0x645   : > { %2482 = vrot.lane.b32.xlu0 %v2481_v60, %s2613_s0  ;;  %v2391_v11 = vpop.f32.mrb[18].mxu0  ;;  %2403 = vmatpush3.bf16.msra.mxu0 %v2498_v4 }
 0x646   : > { %v1519_v18 = vpop.f32.mrb[19].mxu0 }
 0x647   : > { %v2486_v12 = vpack.i.bf16 %v1519_v18, %v1516_v10 }
 0x649   : > { %2487 = vrot.lane.b32.xlu0 %v2486_v12, %s2614_s21  ;;  %s3213_s21 = sld [smem:[#allocation8_spill]] }
 0x64f   : > { %s636_s1 = scalar_lea.vmem %s3213_s21, %s2440_s26  ;;  %s2042_s26 = sld [smem:[#allocation3 + %s2729_s3]] }
 0x6ae   : > { %v1538_v14 = vpop.permute.xlu1 %1537 }
 0x6af   : > { %v1568_v21 = vsel %vm851_vm1, %v2366_v52, %v1538_v14 }
 0x6b2   : > { %v1550_v19 = vpop.permute.xlu1 %1549 }
 0x6b3   : > { %v2478_v16 = vpop.permute.xlu0 %2477  ;;  %v1572_v25 = vsel %vm1569_vm12, %v1568_v21, %v1550_v19 }
 0x6b4   : > { %v2480_v56 = vunpack.i.h.bf16 %v2478_v16  ;;  %v2479_v15 = vunpack.i.l.bf16 %v2478_v16 }
 0x6b6   : > { %v1562_v24 = vpop.permute.xlu1 %1561  ;;  %v1567_v22 = vsel %vm851_vm1, %v1333_v53, %v2480_v56  ;;  %v1566_v28 = vsel %vm851_vm1, %v1330_v5, %v2479_v15 }
 0x6b7   : > { %v2483_v20 = vpop.permute.xlu0 %2482  ;;  %v1575_v31 = vsel %vm1140_vm8, %v1572_v25, %v1562_v24 }
 0x6b8   : > { %v2485_v54 = vunpack.i.h.bf16 %v2483_v20  ;;  %v2484_v17 = vunpack.i.l.bf16 %v2483_v20  ;;  %v1577_v40 = vpack.c.bf16 %v1575_v31, %v1575_v31 }
 0x6ba   : > { %v1571_v32 = vsel %vm1569_vm12, %v1567_v22, %v2485_v54  ;;  %v1570_v33 = vsel %vm1569_vm12, %v1566_v28, %v2484_v17  ;;  %v2243_v17 = vld [vmem:[%s3185_s10] ss:$0 sm:$0xff]  ;;  %vm2123_vm12 = vcmask 7168  }
 0x6bb   : > { %v2488_v26 = vpop.permute.xlu0 %2487  ;;  %v2244_v28 = vld [vmem:[%s3186_s11] ss:$0 sm:$0xff] }
 0x6bc   : > { %v2490_v29 = vunpack.i.h.bf16 %v2488_v26  ;;  %v2489_v30 = vunpack.i.l.bf16 %v2488_v26 }
 0x6be   : > { %v1574_v34 = vsel %vm1140_vm8, %v1571_v32, %v2490_v29  ;;  %v1573_v36 = vsel %vm1140_vm8, %v1570_v33, %v2489_v30 }
 0x6bf   : > { %v1576_v37 = vpack.c.bf16 %v1574_v34, %v1573_v36 }
 0x6c1   : > { %2396 = vmatprep.mubr.msk.bf16.mxu1 %vm648_vm0, %v1576_v37  ;;  %v2501_v37 = vld [vmem:[%s3189_s14 + $0x10] sm:$0xff]  }
 0x6c2   : > { %2397 = vmatmul.mubr.msk.bf16.vlgmr.msra.gmra.mrb[16].mxu1 %vm648_vm0, %v1577_v40  ;;  %v2502_v40 = vld [vmem:[%s3189_s14 + $0x18] sm:$0xff]  }
 0x6c3   : > { %2409 = vmatpush3.bf16.msra.mxu1 %v2499_v7 }
 0x6c4   : > { %2410 = vmatprep.subr.bf16.mxu1 %v2500_v8 }
 0x6c7   : > { %2411 = vmatpush3.bf16.msra.mxu1 %v2500_v8 }
 0x6c8   : > { %2412 = vmatprep.subr.bf16.mxu1 %v2501_v37 }
 0x6cb   : > { %2413 = vmatpush3.bf16.msra.mxu1 %v2501_v37 }
 0x6cc   : > { %2414 = vmatprep.subr.bf16.mxu1 %v2502_v40 }
 0x6cf   : > { %2415 = vmatpush3.bf16.msra.mxu1 %v2502_v40 }
 0x795   : > { %v2398_v42 = vpop.f32.mrb[16].mxu1 }
 0x796   : > { %v1634_v44 = vpop.f32.mrb[17].mxu1  ;;  %v1650_v45 = vadd.f32 %v2398_v42, %v2745_v1  ;;  %v2245_v42 = vld [vmem:[%s3212_s29] ss:$0 sm:$0xff] }
 0x797   : > { %v1648_v46 = vadd.f32 %v1634_v44, %v2743_v0  ;;  %v2399_v47 = vpop.f32.mrb[18].mxu1 }
 0x798   : > { %v1637_v48 = vpop.f32.mrb[19].mxu1  ;;  %v3077_v23 = vadd.f32 %v2242_v27, %v1650_v45 }
 0x799   : > { %v3074_v13 = vadd.f32 %v2242_v27, %v1648_v46  ;;  %v1649_v43 = vadd.f32 %v1637_v48, %v2747_v2 }
 0x79a   : > { %v1667_v0 = vsel %vm648_vm0, %v3077_v23, 0.0 }
 0x79b   : > { %v3079_v49 = vadd.f32 %v2242_v27, %v1649_v43  ;;  %v1661_v51 = vsel %vm648_vm0, %v3074_v13, 0.0 }
 0x79c   : > { %1662 = vadd.xlane.f32.xlu0 %v1661_v51 }
 0x79d   : > { %v1664_v6 = vsel %vm648_vm0, %v3079_v49, 0.0 }
 0x79e   : > { %1665 = vadd.xlane.f32.xlu1 %v1664_v6 }
 0x7a0   : > { %1668 = vadd.xlane.f32.xlu0 %v1667_v0 }
 0x829   : > { %v1663_v1 = vpop.xlane.xlu0 %1662 }
 0x82a   : > { %v1670_v52 = vmul.f32 0.03125, %v1663_v1 }
 0x82b   : > { %v1666_v5 = vpop.xlane.xlu1 %1665 }
 0x82c   : > { %v1673_v2 = vsub.f32 %v3074_v13, %v1670_v52  ;;  %v1671_v9 = vmul.f32 0.03125, %v1666_v5 }
 0x82d   : > { %v1669_v53 = vpop.xlane.xlu0 %1668 }
 0x82e   : > { %v1674_v50 = vsub.f32 %v3079_v49, %v1671_v9  ;;  %v1672_v55 = vmul.f32 0.03125, %v1669_v53  ;;  %v1676_v58 = vmul.f32 %v1673_v2, %v1673_v2  ;;  %v2256_v9 = vld [vmem:[%s3190_s15] ss:$0 sm:$0xff] }
 0x830   : > { %v1675_v59 = vsub.f32 %v3077_v23, %v1672_v55  ;;  %v1679_v57 = vsel %vm648_vm0, %v1676_v58, 0.0  ;;  %v1677_v60 = vmul.f32 %v1674_v50, %v1674_v50 }
 0x831   : > { %1680 = vadd.xlane.f32.xlu0 %v1679_v57 }
 0x832   : > { %v1678_v61 = vmul.f32 %v1675_v59, %v1675_v59  ;;  %v1682_v63 = vsel %vm648_vm0, %v1677_v60, 0.0 }
 0x834   : > { %v1685_v62 = vsel %vm648_vm0, %v1678_v61, 0.0 }
 0x835   : > { %1686 = vadd.xlane.f32.xlu1 %v1685_v62  ;;  %1683 = vadd.xlane.f32.xlu0 %v1682_v63 }
 0x8be   : > { %v1681_v10 = vpop.xlane.xlu0 %1680 }
 0x8bf   : > { %v1688_v11 = vmul.f32 0.03125, %v1681_v10 }
 0x8c1   : > { %v1691_v18 = vadd.f32 1e-05, %v1688_v11 }
 0x8c2   : > { %v1684_v12 = vpop.xlane.xlu0 %1683  ;;  %v1687_v14 = vpop.xlane.xlu1 %1686 }
 0x8c3   : > { %2559 = vrsqrt.f32 %v1691_v18  ;;  %v1689_v16 = vmul.f32 0.03125, %v1684_v12  ;;  %v1690_v19 = vmul.f32 0.03125, %v1687_v14 }
 0x8c5   : > { %v1692_v20 = vadd.f32 1e-05, %v1689_v16  ;;  %v1693_v56 = vadd.f32 1e-05, %v1690_v19 }
 0x8c7   : > { %2561 = vrsqrt.f32 %v1692_v20 }
 0x8c8   : > { %2563 = vrsqrt.f32 %v1693_v56 }
 0x8cd   : > { %v2560_v15 = vpop.eup %2559 }
 0x8ce   : > { %v1697_v54 = vmul.f32 %v2560_v15, %v1673_v2  ;;  %v2503_v15 = vld [vmem:[%s3193_s18] sm:$0xff]  }
 0x8cf   : > { %2420 = vmatprep.subr.bf16.mxu0 %v2503_v15 }
 0x8d0   : > { %v1707_v26 = vmul.f32 %v2243_v17, %v1697_v54  ;;  %v2504_v54 = vld [vmem:[%s3193_s18 + $0x8] sm:$0xff]  }
 0x8d1   : > { %v2562_v21 = vpop.eup %2561 }
 0x8d2   : > { %v2564_v24 = vpop.eup %2563  ;;  %v1698_v25 = vmul.f32 %v2562_v21, %v1674_v50  ;;  %v1717_v31 = vadd.f32 %v2244_v28, %v1707_v26 }
 0x8d3   : > { %v1699_v22 = vmul.f32 %v2564_v24, %v1675_v59 }
 0x8d4   : > { %v1708_v29 = vmul.f32 %v2243_v17, %v1698_v25 }
 0x8d5   : > { %v1709_v30 = vmul.f32 %v2243_v17, %v1699_v22 }
 0x8d6   : > { %v1718_v32 = vadd.f32 %v2244_v28, %v1708_v29 }
 0x8d7   : > { %v1719_v33 = vadd.f32 %v2244_v28, %v1709_v30 }
 0x8d8   : > { %v1720_v34 = vpack.c.bf16 %v1718_v32, %v1717_v31  ;;  %v2257_v32 = vld [vmem:[%s3191_s16] ss:$0 sm:$0xff] }
 0x8d9   : > { %v1721_v36 = vpack.c.bf16 %v1719_v33, %v1719_v33 }
 0x8da   : > { %2404 = vmatprep.mubr.msk.bf16.mxu0 %vm648_vm0, %v1720_v34 }
 0x8db   : > { %2405 = vmatmul.mubr.msk.bf16.vlgmr.msra.gmra.mrb[20].mxu0 %vm648_vm0, %v1721_v36 }
 0x8dc   : > { %2421 = vmatpush3.bf16.msra.mxu0 %v2503_v15 }
 0x8dd   : > { %2422 = vmatprep.subr.bf16.mxu0 %v2504_v54 }
 0x8e0   : > { %2423 = vmatpush3.bf16.msra.mxu0 %v2504_v54 }
 0x9ae   : > { %v2406_v27 = vpop.f32.mrb[20].mxu0 }
 0x9af   : > { %v1794_v44 = vadd.f32 %v2406_v27, %v2245_v42  ;;  %v1785_v45 = vpop.f32.mrb[21].mxu0 }
 0x9b0   : > { %v1786_v46 = vadd.f32 %v2245_v42, %v1785_v45  ;;  %v2407_v47 = vpop.f32.mrb[22].mxu0 }
 0x9b1   : > { %v1788_v48 = vpop.f32.mrb[23].mxu0  ;;  %v1801_v51 = vmax.f32 %v1794_v44, 0.0 }
 0x9b2   : > { %v1789_v43 = vadd.f32 %v2245_v42, %v1788_v48  ;;  %v1799_v6 = vmax.f32 %v1786_v46, 0.0  ;;  %v2258_v42 = vld [vmem:[%s3192_s17] ss:$0 sm:$0xff] }
 0x9b3   : > { %v1803_v52 = vpack.c.bf16 %v1801_v51, %v1801_v51 }
 0x9b4   : > { %v1800_v0 = vmax.f32 %v1789_v43, 0.0 }
 0x9b6   : > { %v1802_v1 = vpack.c.bf16 %v1800_v0, %v1799_v6  ;;  %v2259_v6 = vld [vmem:[%s3194_s19] ss:$0 sm:$0xff] }
 0x9b8   : > { %2416 = vmatprep.mubr.msk.bf16.mxu1 %vm1836_vm13, %v1802_v1 }
 0x9b9   : > { %2417 = vmatmul.mubr.msk.bf16.vlgmr.msra.gmra.mrb[20].mxu1 %vm1836_vm13, %v1803_v52 }
 0xa8c   : > { %v2418_v5 = vpop.f32.mrb[20].mxu1 }
 0xa8d   : > { %v1877_v2 = vpop.f32.mrb[21].mxu1  ;;  %v1893_v53 = vadd.f32 %v2418_v5, %v3077_v23 }
 0xa8e   : > { %v1891_v50 = vadd.f32 %v1877_v2, %v3074_v13  ;;  %v2419_v55 = vpop.f32.mrb[22].mxu1 }
 0xa8f   : > { %v1880_v58 = vpop.f32.mrb[23].mxu1  ;;  %v1903_v62 = vadd.f32 %v2256_v9, %v1893_v53  ;;  %v646_v55 = vld [vmem:[%s636_s1 + $0x8] sm:$0xff] }
 0xa90   : > { %v1892_v59 = vadd.f32 %v1880_v58, %v3079_v49  ;;  %v1901_v57 = vadd.f32 %v2256_v9, %v1891_v50  ;;  %v645_v50 = vld [vmem:[%s636_s1] sm:$0xff] }
 0xa91   : > { %v1910_v3 = vsel %vm648_vm0, %v1903_v62, 0.0  ;;  %v2044_v58 = vrot.slane %v645_v50, 1 }
 0xa92   : > { %v1904_v60 = vsel %vm648_vm0, %v1901_v57, 0.0  ;;  %v1902_v61 = vadd.f32 %v2256_v9, %v1892_v59  ;;  %v2045_v59 = vrot.slane %v646_v55, 1 }
 0xa93   : > { %1905 = vadd.xlane.f32.xlu0 %v1904_v60 }
 0xa94   : > { %v1907_v63 = vsel %vm648_vm0, %v1902_v61, 0.0  ;;  %v2046_v60 = vsel %vm2043_vm14, %v2044_v58, %v2045_v59 }
 0xa95   : > { %1908 = vadd.xlane.f32.xlu1 %v1907_v63  ;;  %vm2111_vm2 = vcmp.ne.s32.totalorder %v2046_v60, 0 }
 0xa97   : > { %1911 = vadd.xlane.f32.xlu0 %v1910_v3 }
 0xb20   : > { %v1906_v4 = vpop.xlane.xlu0 %1905 }
 0xb21   : > { %v1913_v23 = vmul.f32 0.03125, %v1906_v4 }
 0xb22   : > { %v1909_v7 = vpop.xlane.xlu1 %1908 }
 0xb23   : > { %v1916_v13 = vsub.f32 %v1901_v57, %v1913_v23  ;;  %v1914_v8 = vmul.f32 0.03125, %v1909_v7  ;;  %v647_v57 = vld [vmem:[%s636_s1 + $0x10] sm:$0xff] }
 0xb24   : > { %v1912_v10 = vpop.xlane.xlu0 %1911 }
 0xb25   : > { %v1917_v11 = vsub.f32 %v1902_v61, %v1914_v8  ;;  %v1915_v49 = vmul.f32 0.03125, %v1912_v10  ;;  %v1919_v18 = vmul.f32 %v1916_v13, %v1916_v13  ;;  %v2047_v61 = vrot.slane %v647_v57, 1 }
 0xb27   : > { %v1918_v12 = vsub.f32 %v1903_v62, %v1915_v49  ;;  %v1922_v14 = vsel %vm648_vm0, %v1919_v18, 0.0  ;;  %v1920_v16 = vmul.f32 %v1917_v11, %v1917_v11  ;;  %v3156_v62 = vsel %vm2043_vm14, %v2047_v61, 0 }
 0xb28   : > { %1923 = vadd.xlane.f32.xlu1 %v1922_v14  ;;  %v2048_v63 = vsel %vm2043_vm14, %v2045_v59, %v2047_v61  ;;  %vm2113_vm9 = vcmp.ne.s32.totalorder %v3156_v62, 0 }
 0xb29   : > { %v1925_v19 = vsel %vm648_vm0, %v1920_v16, 0.0  ;;  %v1921_v20 = vmul.f32 %v1918_v12, %v1918_v12  ;;  %vm2112_vm6 = vcmp.ne.s32.totalorder %v2048_v63, 0 }
 0xb2a   : > { %1926 = vadd.xlane.f32.xlu0 %v1925_v19 }
 0xb2b   : > { %v1928_v56 = vsel %vm648_vm0, %v1921_v20, 0.0 }
 0xb2c   : > { %1929 = vadd.xlane.f32.xlu1 %v1928_v56 }
 0xbb5   : > { %v1924_v17 = vpop.xlane.xlu1 %1923 }
 0xbb6   : > { %v1931_v21 = vmul.f32 0.03125, %v1924_v17 }
 0xbb7   : > { %v1927_v24 = vpop.xlane.xlu0 %1926 }
 0xbb8   : > { %v1934_v25 = vadd.f32 1e-05, %v1931_v21  ;;  %v1932_v26 = vmul.f32 0.03125, %v1927_v24 }
 0xbb9   : > { %v1930_v22 = vpop.xlane.xlu1 %1929 }
 0xbba   : > { %2565 = vrsqrt.f32 %v1934_v25  ;;  %v1935_v28 = vadd.f32 1e-05, %v1932_v26  ;;  %v1933_v29 = vmul.f32 0.03125, %v1930_v22  ;;  %v2101_v26 = vstv %s2042_s26 }
 0xbbb   : > { %vm2102_vm3 = vcmp.ge.s32.totalorder %v2846_v35, %v2101_v26  ;;  %vm2104_vm4 = vcmp.ge.s32.totalorder %v2850_v38, %v2101_v26  ;;  %vm2103_vm7 = vcmp.ge.s32.totalorder %v2855_v41, %v2101_v26 }
 0xbbc   : > { %2567 = vrsqrt.f32 %v1935_v28  ;;  %v1936_v30 = vadd.f32 1e-05, %v1933_v29  ;;  %vm2114_vm8 = vmand %vm2102_vm3, %vm2111_vm2 }
 0xbbd   : > { %vm2110_vm10 = vmand %vm2104_vm4, %vm2107_vm5 }
 0xbbe   : > { %2569 = vrsqrt.f32 %v1936_v30  ;;  %vm2115_vm11 = vmand %vm2103_vm7, %vm2112_vm6 }
 0xbbf   : > { %vm2116_vm13 = vmand %vm2110_vm10, %vm2113_vm9 }
 0xbc4   : > { %v2566_v31 = vpop.eup %2565 }
 0xbc5   : > { %v1940_v33 = vmul.f32 %v2566_v31, %v1916_v13 }
 0xbc6   : > { %v2568_v34 = vpop.eup %2567 }
 0xbc7   : > { %v1941_v36 = vmul.f32 %v2568_v34, %v1917_v11  ;;  %v1950_v37 = vmul.f32 %v2257_v32, %v1940_v33 }
 0xbc8   : > { %v2570_v40 = vpop.eup %2569 }
 0xbc9   : > { %v1942_v27 = vmul.f32 %v2570_v40, %v1918_v12  ;;  %v1951_v44 = vmul.f32 %v2257_v32, %v1941_v36  ;;  %v1960_v45 = vadd.f32 %v2258_v42, %v1950_v37 }
 0xbcb   : > { %v1961_v46 = vadd.f32 %v2258_v42, %v1951_v44  ;;  %v1952_v47 = vmul.f32 %v2257_v32, %v1942_v27 }
 0xbcd   : > { %v1963_v48 = vpack.c.bf16 %v1961_v46, %v1960_v45  ;;  %v1962_v43 = vadd.f32 %v2258_v42, %v1952_v47 }
 0xbcf   : > { %2424 = vmatprep.mubr.msk.bf16.mxu0 %vm648_vm0, %v1963_v48  ;;  %v1964_v51 = vpack.c.bf16 %v1962_v43, %v1962_v43 }
 0xbd1   : > { %2425 = vmatmul.mubr.msk.bf16.vlgmr.msra.gmra.mrb[24].mxu0 %vm648_vm0, %v1964_v51 }
 0xca4   : > { %v2426_v0 = vpop.f32.mrb[24].mxu0 }
 0xca5   : > { %v2028_v1 = vpop.f32.mrb[25].mxu0  ;;  %v2037_v53 = vadd.f32 %v2426_v0, %v2259_v6 }
 0xca6   : > { %v2029_v52 = vadd.f32 %v2259_v6, %v2028_v1  ;;  %v2427_v5 = vpop.f32.mrb[26].mxu0 }
 0xca7   : > { %v2031_v2 = vpop.f32.mrb[27].mxu0 }
 0xca8   : > { %v2032_v9 = vadd.f32 %v2259_v6, %v2031_v2  ;;  %2050 = vmax.xlane.f32.xlu0 %v2029_v52 }
 0xcaa   : > { %2052 = vmax.xlane.f32.xlu1 %v2032_v9 }
 0xcac   : > { %2054 = vmax.xlane.f32.xlu0 %v2037_v53 }
 0xcbb   : > { %2081 = vperm.xlu1 %2491, %v2046_v60  }
 0xcbf   : > { %2087 = vperm.xlu1 %2491, %v3156_v62  }
 0xcc2   : > { %2084 = vperm.xlu0 %2492, %v2048_v63  }
 0xd35   : > { %v2051_v3 = vpop.xlane.xlu0 %2050 }
 0xd36   : > { %v2056_v4 = vsub.f32 %v2029_v52, %v2051_v3 }
 0xd37   : > { %v2053_v23 = vpop.xlane.xlu1 %2052 }
 0xd38   : > { %v2059_v7 = vmul.f32 1.442695, %v2056_v4  ;;  %v2057_v13 = vsub.f32 %v2032_v9, %v2053_v23 }
 0xd39   : > { %v2055_v8 = vpop.xlane.xlu0 %2054 }
 0xd3a   : > { %2571 = vpow2.f32 %v2059_v7  ;;  %v2061_v10 = vmul.f32 1.442695, %v2057_v13  ;;  %v2058_v11 = vsub.f32 %v2037_v53, %v2055_v8 }
 0xd3b   : > { %v2082_v14 = vpop.permute.xlu1 %2081 }
 0xd3c   : > { %2573 = vpow2.f32 %v2061_v10  ;;  %v2063_v49 = vmul.f32 1.442695, %v2058_v11  ;;  %vm2089_vm15 = vcmp.eq.s32.totalorder %v2852_v39, %v2082_v14 }
 0xd3d   : > { %v2092_v20 = vsel %vm2089_vm15, %v2029_v52, 0.0 }
 0xd3e   : > { %2575 = vpow2.f32 %v2063_v49 }
 0xd3f   : > { %v2088_v56 = vpop.permute.xlu1 %2087 }
 0xd40   : > { %vm2091_vm1 = vcmp.eq.s32.totalorder %v2852_v39, %v2088_v56 }
 0xd41   : > { %v2085_v19 = vpop.permute.xlu0 %2084  ;;  %v2094_v54 = vsel %vm2091_vm1, %v2037_v53, 0.0 }
 0xd42   : > { %vm2090_vm0 = vcmp.eq.s32.totalorder %v2852_v39, %v2085_v19 }
 0xd43   : > { %v2093_v15 = vsel %vm2090_vm0, %v2032_v9, 0.0 }
 0xd44   : > { %v2572_v18 = vpop.eup %2571 }
 0xd45   : > { %2065 = vadd.xlane.f32.xlu1 %v2572_v18 }
 0xd46   : > { %v2574_v12 = vpop.eup %2573 }
 0xd47   : > { %2067 = vadd.xlane.f32.xlu0 %v2574_v12 }
 0xd48   : > { %v2576_v16 = vpop.eup %2575 }
 0xd49   : > { %2069 = vadd.xlane.f32.xlu1 %v2576_v16 }
 0xd4d   : > { %2095 = vadd.xlane.f32.xlu1 %v2092_v20 }
 0xd51   : > { %2097 = vadd.xlane.f32.xlu1 %v2093_v15 }
 0xd55   : > { %2099 = vadd.xlane.f32.xlu1 %v2094_v54 }
 0xdd2   : > { %v2066_v17 = vpop.xlane.xlu1 %2065 }
 0xdd3   : > { %2577 = vlog2.f32 %v2066_v17 }
 0xdd4   : > { %v2068_v21 = vpop.xlane.xlu0 %2067 }
 0xdd5   : > { %2579 = vlog2.f32 %v2068_v21 }
 0xdd6   : > { %v2070_v24 = vpop.xlane.xlu1 %2069 }
 0xdd7   : > { %2581 = vlog2.f32 %v2070_v24 }
 0xdda   : > { %v2096_v25 = vpop.xlane.xlu1 %2095 }
 0xddd   : > { %v2578_v22 = vpop.eup %2577 }
 0xdde   : > { %v2072_v28 = vmul.f32 0.6931472, %v2578_v22  ;;  %v2098_v30 = vpop.xlane.xlu1 %2097 }
 0xddf   : > { %v2580_v29 = vpop.eup %2579 }
 0xde0   : > { %v2074_v39 = vmul.f32 0.6931472, %v2580_v29  ;;  %v2077_v31 = vadd.f32 %v2072_v28, %v2051_v3 }
 0xde1   : > { %v2582_v32 = vpop.eup %2581 }
 0xde2   : > { %v2076_v33 = vmul.f32 0.6931472, %v2582_v32  ;;  %v2117_v34 = vsub.f32 %v2077_v31, %v2096_v25  ;;  %v2078_v36 = vadd.f32 %v2074_v39, %v2053_v23  ;;  %v2100_v38 = vpop.xlane.xlu1 %2099 }
 0xde4   : > { %v2120_v35 = vsel %vm2114_vm8, %v2117_v34, 0.0  ;;  %v2118_v37 = vsub.f32 %v2078_v36, %v2098_v30  ;;  %v2079_v40 = vadd.f32 %v2076_v33, %v2055_v8 }
 0xde5   : > { %v2124_v44 = vsel %vm2123_vm12, %v2120_v35, 0.0 }
 0xde6   : > { %v2121_v42 = vsel %vm2115_vm11, %v2118_v37, 0.0  ;;  %v2119_v27 = vsub.f32 %v2079_v40, %v2100_v38 }
 0xde7   : > { %v2125_v41 = vsel %vm2123_vm12, %v2121_v42, 0.0 }
 0xde8   : > { %v2122_v45 = vsel %vm2116_vm13, %v2119_v27, 0.0  ;;  %v2126_v46 = vadd.f32 %v2125_v41, %v2124_v44 }
 0xde9   : > { %v2127_v47 = vsel %vm2123_vm12, %v2122_v45, 0.0 }
 0xdea   : > { %v2128_v48 = vadd.f32 %v2127_v47, %v2126_v46 }
 0xdec   : > { %2129 = vadd.xlane.f32.xlu1 %v2128_v48 }
 0xe79   : > { %v2130_v43 = vpop.xlane.xlu1 %2129 }
 0xe7a   : > { %v2131_v51 = vrot.slane %v2130_v43, 4 }
 0xe7c   : > { %v2132_v6 = vadd.f32 %v2131_v51, %v2130_v43 }
 0xe7e   : > { %v2133_v0 = vrot.slane %v2132_v6, 2 }
 0xe80   : > { %v2134_v1 = vadd.f32 %v2133_v0, %v2132_v6 }
 0xe82   : > { %v2135_v52 = vrot.slane %v2134_v1, 1 }
 0xe84   : > { %v2136_v5 = vadd.f32 %v2135_v52, %v2134_v1 }
 0xe86   : > { %2441 = vpush %v2136_v5 }
 0xeb7   : > { %s2442_s24 = spop %2441 }
 0xeb8   : > { %v2138_v2 = vstv %s2442_s24 }
 0xeb9   : > { %2139 = vst [vmem:[%s639_s23] sm:$0x1] %v2138_v2 }
 0xeba PF: > { %s36_s25 = sadd.s32 1, %s2603_s25  }
 0xebb   : > { %p33_p9 = scmp.ge.s32.totalorder %s36_s25, 4  }
 0xebd   :  { %35 = sbr.rel (!%p33_p9) target bundleno = 23 (0x17), region = 132 }

// kernel: stagecs_forward.2
= control target key start
LH: loop header
LB: loop body
LE: loop exit
PB: predicated region body
PF: predicated region fallthrough
CT: control target
= control target key end

     0   :  { %v3760_v0 = vmov 0.0|0.0   ;;  %vm3761_vm0 = vmmov 0   ;;  %v3762_v8 = vmov 0.0   ;;  %vm68_vm1 = vcmask 261120   ;;  %s3765_s23 = smov 32   ;;  %s3766_s24 = smov 80   ;;  %s4273_s4 = inlined_call_operand.vmem [shape: f32[32,64], index: 4, kind: input, shape index: {}]   ;;  %s4274_s1 = inlined_call_operand.vmem [shape: f32[32,64], index: 1, kind: input, shape index: {}]   ;;  %s4275_s5 = inlined_call_operand.vmem [shape: f32[16,64], index: 5, kind: input, shape index: {}]   ;;  %s4276_s2 = inlined_call_operand.vmem [shape: f32[16,64], index: 2, kind: input, shape index: {}]   ;;  %s4277_s0 = inlined_call_operand.vmem [shape: f32[6,32], index: 0, kind: input, shape index: {}]   ;;  %s4278_s6 = inlined_call_operand.vmem [shape: f32[1,64], index: 6, kind: input, shape index: {}]   ;;  %s4279_s3 = inlined_call_operand.vmem [shape: f32[1,64], index: 3, kind: input, shape index: {}]   ;;  %s4280_s7 = inlined_call_operand.vmem [shape: f32[32,64], index: 7, kind: input, shape index: {}]   ;;  %s4281_s10 = inlined_call_operand.vmem [shape: f32[32,64], index: 10, kind: input, shape index: {}]   ;;  %s4282_s11 = inlined_call_operand.vmem [shape: f32[16,64], index: 11, kind: input, shape index: {}]   ;;  %s4283_s8 = inlined_call_operand.vmem [shape: f32[16,64], index: 8, kind: input, shape index: {}]   ;;  %s4284_s9 = inlined_call_operand.vmem [shape: f32[1,64], index: 9, kind: input, shape index: {}]   ;;  %s4285_s12 = inlined_call_operand.vmem [shape: f32[1,64], index: 12, kind: input, shape index: {}]   ;;  %s4286_s13 = inlined_call_operand.vmem [shape: f32[32,32], index: 13, kind: input, shape index: {}]   ;;  %s4287_s15 = inlined_call_operand.vmem [shape: f32[32,32], index: 15, kind: input, shape index: {}]   ;;  %s4288_s14 = inlined_call_operand.vmem [shape: f32[1,32], index: 14, kind: input, shape index: {}]   ;;  %s4289_s16 = inlined_call_operand.vmem [shape: f32[1,32], index: 16, kind: input, shape index: {}]   ;;  %s4290_s17 = inlined_call_operand.vmem [shape: f32[6,32], index: 17, kind: output, shape index: {}]  }
   0x1   :  { %4293 = sst [smem:[#allocation7_spill]] %s4273_s4  ;;  %3459 = vmatprep.subr.bf16.mxu1 %v3760_v0  ;;  %3453 = vmatprep.subr.bf16.mxu0 %v3760_v0  ;;  %v228_v14 = vld [vmem:[%s4275_s5] sm:$0xff]  ;;  %v229_v15 = vld [vmem:[%s4275_s5 + $0x8] sm:$0xff]  ;;  %vm142_vm2 = vcmask 521216   ;;  %vm430_vm3 = vcmask 122880   ;;  %vm231_vm4 = vcmask 130048  }
   0x2   :  { %4294 = sst [smem:[#allocation8_spill]] %s4274_s1  ;;  %s4295_s26 = sld [smem:[#allocation7_spill]]  ;;  %3238 = vmatprep.mubr.msk.f32.mxu1 %vm3761_vm0, %v3762_v8  ;;  %3227 = vmatprep.mubr.msk.f32.mxu0 %vm3761_vm0, %v3762_v8  ;;  %v226_v16 = vld [vmem:[%s4276_s2] sm:$0xff]  ;;  %v227_v17 = vld [vmem:[%s4276_s2 + $0x8] sm:$0xff]  ;;  %v3904_v19 = vpack.c.bf16 %v229_v15, %v228_v14  ;;  %vm1474_vm5 = vcmask 259072  }
   0x3   :  { %s4296_s30 = sld [smem:[#allocation8_spill]]  ;;  %v56_v18 = vld [vmem:[%s4277_s0] sm:$0x3f]  ;;  %v3907_v20 = vpack.c.bf16 %v227_v17, %v226_v16 }
   0x4   :  { %v3063_v21 = vld [vmem:[%s4278_s6] ss:$0 sm:$0xff]  ;;  %s3764_s6 = smov 16  }
   0x5   :  { %v3061_v22 = vld [vmem:[%s4279_s3] ss:$0 sm:$0xff]  ;;  %s3763_s3 = smov 96  }
   0x8   :  { %v144_v1 = vld [vmem:[%s4295_s26] sm:$0xff]  ;;  %v145_v2 = vld [vmem:[%s4295_s26 + $0x8] sm:$0xff]  ;;  %v146_v6 = vld [vmem:[%s4295_s26 + $0x10] sm:$0xff] }
   0x9   :  { %v57_v3 = vld [vmem:[%s4296_s30] sm:$0xff]  ;;  %v3460_v4 = vpack.c.bf16 %v145_v2, %v144_v1  ;;  %v58_v5 = vld [vmem:[%s4296_s30 + $0x8] sm:$0xff]  ;;  %v147_v7 = vld [vmem:[%s4295_s26 + $0x18] sm:$0xff] }
   0xa   :  { %v3454_v9 = vpack.c.bf16 %v58_v5, %v57_v3  ;;  %v59_v10 = vld [vmem:[%s4296_s30 + $0x10] sm:$0xff]  ;;  %v60_v11 = vld [vmem:[%s4296_s30 + $0x18] sm:$0xff]  ;;  %v3463_v12 = vpack.c.bf16 %v147_v7, %v146_v6 }
   0xb   :  { %3461 = vmatpush3.bf16.msra.mxu1 %v3460_v4  ;;  %v3457_v13 = vpack.c.bf16 %v60_v11, %v59_v10 }
   0xc   :  { %3462 = vmatprep.subr.bf16.mxu1 %v3760_v0  ;;  %3455 = vmatpush3.bf16.msra.mxu0 %v3454_v9 }
   0xd   :  { %3456 = vmatprep.subr.bf16.mxu0 %v3760_v0 }
   0xf   :  { %3464 = vmatpush3.bf16.msra.mxu1 %v3463_v12 }
  0x10   :  { %3458 = vmatpush3.bf16.msra.mxu0 %v3457_v13  ;;  %3468 = vmatprep.subr.bf16.mxu1 %v3760_v0 }
  0x11   :  { %3465 = vmatprep.subr.bf16.mxu0 %v3760_v0 }
  0x12   :  { %3239 = vmatmul.mubr.msk.f32.vlgmr.msra.gmra.mrb[0].mxu1 %vm68_vm1, %v56_v18 }
  0x13   :  { %3228 = vmatmul.mubr.msk.f32.vlgmr.msra.gmra.mrb[0].mxu0 %vm68_vm1, %v56_v18  ;;  %3470 = vmatpush3.bf16.msra.mxu1 %v3904_v19 }
  0x14   :  { %3252 = vmatprep.mubr.msk.f32.mxu1 %vm3761_vm0, %v3762_v8  ;;  %3467 = vmatpush3.bf16.msra.mxu0 %v3907_v20 }
  0x15   :  { %3245 = vmatprep.mubr.msk.f32.mxu0 %vm3761_vm0, %v3762_v8  ;;  %3474 = vmatprep.subr.bf16.mxu1 %v3760_v0 }
  0x16   :  { %3253 = vmatmul.mubr.f32.vlgmr.msra.gmra.mrb[2].mxu1 %v3762_v8  ;;  %3471 = vmatprep.subr.bf16.mxu0 %v3760_v0 }
  0x17   :  { %3246 = vmatmul.mubr.f32.vlgmr.msra.gmra.mrb[2].mxu0 %v3762_v8  ;;  %3476 = vmatpush3.bf16.msra.mxu1 %v3904_v19 }
  0x18   :  { %3266 = vmatprep.mubr.msk.f32.mxu1 %vm3761_vm0, %v3762_v8  ;;  %3473 = vmatpush3.bf16.msra.mxu0 %v3907_v20 }
  0x19   :  { %3259 = vmatprep.mubr.msk.f32.mxu0 %vm3761_vm0, %v3762_v8  ;;  %3480 = vmatprep.subr.bf16.mxu1 %v3760_v0 }
  0x1a   :  { %3477 = vmatprep.subr.bf16.mxu0 %v3760_v0 }
  0xe5   :  { %v221_v23 = vpop.f32.mrb[0].mxu1 }
  0xe6   :  { %v222_v24 = vadd.f32 %v3063_v21, %v221_v23  ;;  %v3240_v25 = vpop.f32.mrb[1].mxu1  ;;  %v138_v26 = vpop.f32.mrb[0].mxu0 }
  0xe7   :  { %v139_v27 = vadd.f32 %v3061_v22, %v138_v26  ;;  %v3229_v28 = vpop.f32.mrb[1].mxu0 }
  0xe8   :  { %225 = vst.msk [vmem:[#allocation3] sm:$0x3f] %vm142_vm2, %v222_v24 }
  0xe9   :  { %143 = vst.msk [vmem:[#allocation2] sm:$0x3f] %vm142_vm2, %v139_v27  ;;  %v397_v29 = vpop.f32.mrb[2].mxu1 }
  0xea   :  { %v3254_v30 = vpop.f32.mrb[3].mxu1  ;;  %v301_v31 = vpop.f32.mrb[2].mxu0 }
  0xeb   :  { %v3247_v32 = vpop.f32.mrb[3].mxu0 }
  0xef   :  { %v330_v33 = vld [vmem:[#allocation3 + $0x5] sm:$0x1]  ;;  %v535_v2 = vld [vmem:[#allocation3 + $0x4] sm:$0x1] }
  0xf0   :  { %v401_v34 = vadd.f32 %v397_v29, %v330_v33  ;;  %v230_v35 = vld [vmem:[#allocation2] sm:$0x1]  ;;  %v437_v6 = vld [vmem:[#allocation2 + $0x1] sm:$0x1] }
  0xf1   :  { %v305_v36 = vadd.f32 %v301_v31, %v230_v35 }
  0xf2   :  { %3568 = vtanh.f32 %v401_v34  ;;  %v3066_v39 = vmul.f32 -1.442695, %v401_v34 }
  0xf3   :  { %3570 = vtanh.f32 %v305_v36  ;;  %v3065_v40 = vmul.f32 -1.442695, %v305_v36 }
  0xf4   :  { %3572 = vpow2.f32 %v3066_v39 }
  0xf5   :  { %3574 = vpow2.f32 %v3065_v40 }
  0xfc   :  { %v3569_v37 = vpop.eup %3568 }
  0xfd   :  { %411 = vrot.lane.b32.xlu0 %v3569_v37, %s3763_s3  ;;  %v3571_v38 = vpop.eup %3570 }
  0xfe   :  { %v3573_v41 = vpop.eup %3572 }
  0xff   :  { %v3575_v42 = vpop.eup %3574  ;;  %v405_v43 = vadd.f32 1.0, %v3573_v41  ;;  %v741_v41 = vld [vmem:[#allocation3 + $0x3] sm:$0x1] }
 0x100   :  { %v309_v44 = vadd.f32 1.0, %v3575_v42 }
 0x101   :  { %315 = vrot.lane.b32.xlu0 %v3571_v38, %s3763_s3  ;;  %3576 = vrcp.f32 %v405_v43 }
 0x102   :  { %3578 = vrcp.f32 %v309_v44 }
 0x10b   :  { %v3577_v45 = vpop.eup %3576 }
 0x10c   :  { %v3579_v48 = vpop.eup %3578  ;;  %v409_v51 = vmul.f32 0.0, %v3577_v45 }
 0x10d   :  { %v313_v54 = vmul.f32 0.0, %v3579_v48 }
 0x16f   :  { %v412_v46 = vpop.permute.xlu0 %411 }
 0x170   :  { %v414_v47 = vmul.f32 %v3577_v45, %v412_v46 }
 0x172   :  { %416 = vrot.lane.b32.xlu1 %v414_v47, %s3764_s6 }
 0x173   :  { %v316_v49 = vpop.permute.xlu0 %315 }
 0x174   :  { %v318_v50 = vmul.f32 %v3579_v48, %v316_v49 }
 0x176   :  { %320 = vrot.lane.b32.xlu1 %v318_v50, %s3764_s6 }
 0x1e4   :  { %v417_v52 = vpop.permute.xlu1 %416 }
 0x1e5   :  { %v3942_v53 = vadd.f32 %v417_v52, %v409_v51 }
 0x1e7   :  { %3580 = vtanh.f32 %v3942_v53 }
 0x1e8   :  { %v321_v55 = vpop.permute.xlu1 %320 }
 0x1e9   :  { %v3945_v56 = vadd.f32 %v321_v55, %v313_v54 }
 0x1eb   :  { %3582 = vtanh.f32 %v3945_v56 }
 0x1f1   :  { %v3581_v57 = vpop.eup %3580 }
 0x1f2   :  { %422 = vrot.lane.b32.xlu0 %v3581_v57, %s3765_s23 }
 0x1f5   :  { %v3583_v58 = vpop.eup %3582 }
 0x1f6   :  { %326 = vrot.lane.b32.xlu1 %v3583_v58, %s3765_s23 }
 0x264   :  { %v423_v59 = vpop.permute.xlu0 %422 }
 0x265   :  { %v425_v60 = vmul.f32 %v3577_v45, %v423_v59  ;;  %v643_v45 = vld [vmem:[#allocation2 + $0x2] sm:$0x1] }
 0x267   :  { %433 = vrot.lane.b32.xlu0 %v425_v60, %s3766_s24 }
 0x268   :  { %v327_v61 = vpop.permute.xlu1 %326 }
 0x269   :  { %v329_v62 = vmul.f32 %v3579_v48, %v327_v61 }
 0x26b   :  { %427 = vrot.lane.b32.xlu1 %v329_v62, %s3766_s24 }
 0x2d9   :  { %v434_v63 = vpop.permute.xlu0 %433 }
 0x2da   :  { %436 = vst.msk [vmem:[#allocation5 + $0x5] sm:$0x1] %vm430_vm3, %v434_v63  ;;  %3267 = vmatmul.mubr.msk.f32.vlgmr.msra.gmra.mrb[4].mxu1 %vm231_vm4, %v434_v63 }
 0x2db   :  { %3482 = vmatpush3.bf16.msra.mxu1 %v3904_v19  ;;  %3280 = vmatprep.mubr.msk.f32.mxu1 %vm3761_vm0, %v3762_v8 }
 0x2dc   :  { %3486 = vmatprep.subr.bf16.mxu1 %v3760_v0 }
 0x2dd   :  { %v428_v1 = vpop.permute.xlu1 %427 }
 0x2de   :  { %431 = vst.msk [vmem:[#allocation4] sm:$0x1] %vm430_vm3, %v428_v1  ;;  %3260 = vmatmul.mubr.msk.f32.vlgmr.msra.gmra.mrb[4].mxu0 %vm231_vm4, %v428_v1 }
 0x2df   :  { %3479 = vmatpush3.bf16.msra.mxu0 %v3907_v20  ;;  %3273 = vmatprep.mubr.msk.f32.mxu0 %vm3761_vm0, %v3762_v8 }
 0x2e0   :  { %3483 = vmatprep.subr.bf16.mxu0 %v3760_v0 }
 0x3ad   :  { %v604_v3 = vpop.f32.mrb[4].mxu1 }
 0x3ae   :  { %v608_v4 = vadd.f32 %v604_v3, %v535_v2  ;;  %v3268_v5 = vpop.f32.mrb[5].mxu1 }
 0x3b0   :  { %3584 = vtanh.f32 %v608_v4  ;;  %v3070_v13 = vmul.f32 -1.442695, %v608_v4 }
 0x3b1   :  { %v506_v7 = vpop.f32.mrb[4].mxu0 }
 0x3b2   :  { %v510_v9 = vadd.f32 %v506_v7, %v437_v6  ;;  %v3261_v10 = vpop.f32.mrb[5].mxu0 }
 0x3b4   :  { %3586 = vtanh.f32 %v510_v9  ;;  %v3068_v14 = vmul.f32 -1.442695, %v510_v9 }
 0x3b5   :  { %3588 = vpow2.f32 %v3070_v13 }
 0x3b6   :  { %3590 = vpow2.f32 %v3068_v14 }
 0x3ba   :  { %v3585_v11 = vpop.eup %3584 }
 0x3bb   :  { %618 = vrot.lane.b32.xlu0 %v3585_v11, %s3763_s3 }
 0x3be   :  { %v3587_v12 = vpop.eup %3586 }
 0x3bf   :  { %520 = vrot.lane.b32.xlu1 %v3587_v12, %s3763_s3  ;;  %v3589_v15 = vpop.eup %3588 }
 0x3c0   :  { %v612_v16 = vadd.f32 1.0, %v3589_v15  ;;  %v3591_v17 = vpop.eup %3590  ;;  %v947_v15 = vld [vmem:[#allocation3 + $0x2] sm:$0x1] }
 0x3c1   :  { %v514_v18 = vadd.f32 1.0, %v3591_v17 }
 0x3c2   :  { %3592 = vrcp.f32 %v612_v16 }
 0x3c3   :  { %3594 = vrcp.f32 %v514_v18 }
 0x3cc   :  { %v3593_v21 = vpop.eup %3592 }
 0x3cd   :  { %v3595_v24 = vpop.eup %3594  ;;  %v616_v27 = vmul.f32 %v3593_v21, %v3942_v53 }
 0x3ce   :  { %v518_v30 = vmul.f32 %v3595_v24, %v3945_v56 }
 0x42d   :  { %v619_v22 = vpop.permute.xlu0 %618 }
 0x42e   :  { %v621_v23 = vmul.f32 %v3593_v21, %v619_v22 }
 0x430   :  { %623 = vrot.lane.b32.xlu0 %v621_v23, %s3764_s6 }
 0x431   :  { %v521_v25 = vpop.permute.xlu1 %520 }
 0x432   :  { %v523_v26 = vmul.f32 %v3595_v24, %v521_v25 }
 0x434   :  { %525 = vrot.lane.b32.xlu1 %v523_v26, %s3764_s6 }
 0x4a2   :  { %v624_v28 = vpop.permute.xlu0 %623 }
 0x4a3   :  { %v626_v29 = vadd.f32 %v624_v28, %v616_v27 }
 0x4a5   :  { %3596 = vtanh.f32 %v626_v29 }
 0x4a6   :  { %v526_v31 = vpop.permute.xlu1 %525 }
 0x4a7   :  { %v528_v32 = vadd.f32 %v526_v31, %v518_v30 }
 0x4a9   :  { %3598 = vtanh.f32 %v528_v32 }
 0x4af   :  { %v3597_v33 = vpop.eup %3596 }
 0x4b0   :  { %629 = vrot.lane.b32.xlu0 %v3597_v33, %s3765_s23 }
 0x4b3   :  { %v3599_v34 = vpop.eup %3598 }
 0x4b4   :  { %531 = vrot.lane.b32.xlu1 %v3599_v34, %s3765_s23 }
 0x522   :  { %v630_v35 = vpop.permute.xlu0 %629 }
 0x523   :  { %v632_v36 = vmul.f32 %v3593_v21, %v630_v35  ;;  %v849_v21 = vld [vmem:[#allocation2 + $0x3] sm:$0x1] }
 0x525   :  { %639 = vrot.lane.b32.xlu0 %v632_v36, %s3766_s24 }
 0x526   :  { %v532_v37 = vpop.permute.xlu1 %531 }
 0x527   :  { %v534_v38 = vmul.f32 %v3595_v24, %v532_v37 }
 0x529   :  { %634 = vrot.lane.b32.xlu1 %v534_v38, %s3766_s24 }
 0x597   :  { %v640_v39 = vpop.permute.xlu0 %639 }
 0x598   :  { %642 = vst.msk [vmem:[#allocation5 + $0x4] sm:$0x1] %vm430_vm3, %v640_v39  ;;  %3281 = vmatmul.mubr.msk.f32.vlgmr.msra.gmra.mrb[6].mxu1 %vm231_vm4, %v640_v39 }
 0x599   :  { %3488 = vmatpush3.bf16.msra.mxu1 %v3904_v19  ;;  %3294 = vmatprep.mubr.msk.f32.mxu1 %vm3761_vm0, %v3762_v8 }
 0x59a   :  { %3492 = vmatprep.subr.bf16.mxu1 %v3760_v0 }
 0x59b   :  { %v635_v40 = vpop.permute.xlu1 %634 }
 0x59c   :  { %637 = vst.msk [vmem:[#allocation4 + $0x1] sm:$0x1] %vm430_vm3, %v635_v40  ;;  %3274 = vmatmul.mubr.msk.f32.vlgmr.msra.gmra.mrb[6].mxu0 %vm231_vm4, %v635_v40 }
 0x59d   :  { %3485 = vmatpush3.bf16.msra.mxu0 %v3907_v20  ;;  %3287 = vmatprep.mubr.msk.f32.mxu0 %vm3761_vm0, %v3762_v8 }
 0x59e   :  { %3489 = vmatprep.subr.bf16.mxu0 %v3760_v0 }
 0x66b   :  { %v810_v42 = vpop.f32.mrb[6].mxu1 }
 0x66c   :  { %v814_v43 = vadd.f32 %v810_v42, %v741_v41  ;;  %v3282_v44 = vpop.f32.mrb[7].mxu1 }
 0x66e   :  { %3600 = vtanh.f32 %v814_v43  ;;  %v3074_v51 = vmul.f32 -1.442695, %v814_v43 }
 0x66f   :  { %v712_v46 = vpop.f32.mrb[6].mxu0 }
 0x670   :  { %v716_v47 = vadd.f32 %v712_v46, %v643_v45  ;;  %v3275_v48 = vpop.f32.mrb[7].mxu0 }
 0x672   :  { %3602 = vtanh.f32 %v716_v47  ;;  %v3072_v52 = vmul.f32 -1.442695, %v716_v47 }
 0x673   :  { %3604 = vpow2.f32 %v3074_v51 }
 0x674   :  { %3606 = vpow2.f32 %v3072_v52 }
 0x678   :  { %v3601_v49 = vpop.eup %3600 }
 0x679   :  { %824 = vrot.lane.b32.xlu0 %v3601_v49, %s3763_s3 }
 0x67c   :  { %v3603_v50 = vpop.eup %3602 }
 0x67d   :  { %726 = vrot.lane.b32.xlu1 %v3603_v50, %s3763_s3  ;;  %v3605_v53 = vpop.eup %3604 }
 0x67e   :  { %v818_v54 = vadd.f32 1.0, %v3605_v53  ;;  %v3607_v55 = vpop.eup %3606  ;;  %v1153_v53 = vld [vmem:[#allocation3 + $0x1] sm:$0x1] }
 0x67f   :  { %v720_v56 = vadd.f32 1.0, %v3607_v55 }
 0x680   :  { %3608 = vrcp.f32 %v818_v54 }
 0x681   :  { %3610 = vrcp.f32 %v720_v56  ;;  %v1055_v56 = vld [vmem:[#allocation2 + $0x4] sm:$0x1] }
 0x68a   :  { %v3609_v57 = vpop.eup %3608 }
 0x68b   :  { %v3611_v60 = vpop.eup %3610  ;;  %v822_v63 = vmul.f32 %v3609_v57, %v626_v29 }
 0x68c   :  { %v724_v3 = vmul.f32 %v3611_v60, %v528_v32 }
 0x6eb   :  { %v825_v58 = vpop.permute.xlu0 %824 }
 0x6ec   :  { %v827_v59 = vmul.f32 %v3609_v57, %v825_v58 }
 0x6ee   :  { %829 = vrot.lane.b32.xlu0 %v827_v59, %s3764_s6 }
 0x6ef   :  { %v727_v61 = vpop.permute.xlu1 %726 }
 0x6f0   :  { %v729_v62 = vmul.f32 %v3611_v60, %v727_v61 }
 0x6f2   :  { %731 = vrot.lane.b32.xlu1 %v729_v62, %s3764_s6 }
 0x760   :  { %v830_v1 = vpop.permute.xlu0 %829 }
 0x761   :  { %v832_v2 = vadd.f32 %v830_v1, %v822_v63 }
 0x763   :  { %3612 = vtanh.f32 %v832_v2 }
 0x764   :  { %v732_v4 = vpop.permute.xlu1 %731 }
 0x765   :  { %v734_v5 = vadd.f32 %v732_v4, %v724_v3 }
 0x767   :  { %3614 = vtanh.f32 %v734_v5 }
 0x76d   :  { %v3613_v6 = vpop.eup %3612 }
 0x76e   :  { %835 = vrot.lane.b32.xlu0 %v3613_v6, %s3765_s23 }
 0x771   :  { %v3615_v7 = vpop.eup %3614 }
 0x772   :  { %737 = vrot.lane.b32.xlu1 %v3615_v7, %s3765_s23 }
 0x7e0   :  { %v836_v9 = vpop.permute.xlu0 %835 }
 0x7e1   :  { %v838_v10 = vmul.f32 %v3609_v57, %v836_v9 }
 0x7e3   :  { %845 = vrot.lane.b32.xlu0 %v838_v10, %s3766_s24 }
 0x7e4   :  { %v738_v11 = vpop.permute.xlu1 %737 }
 0x7e5   :  { %v740_v12 = vmul.f32 %v3611_v60, %v738_v11 }
 0x7e7   :  { %840 = vrot.lane.b32.xlu1 %v740_v12, %s3766_s24 }
 0x855   :  { %v846_v13 = vpop.permute.xlu0 %845 }
 0x856   :  { %848 = vst.msk [vmem:[#allocation5 + $0x3] sm:$0x1] %vm430_vm3, %v846_v13  ;;  %3295 = vmatmul.mubr.msk.f32.vlgmr.msra.gmra.mrb[8].mxu1 %vm231_vm4, %v846_v13 }
 0x857   :  { %3494 = vmatpush3.bf16.msra.mxu1 %v3904_v19  ;;  %3308 = vmatprep.mubr.msk.f32.mxu1 %vm3761_vm0, %v3762_v8 }
 0x858   :  { %3498 = vmatprep.subr.bf16.mxu1 %v3760_v0 }
 0x859   :  { %v841_v14 = vpop.permute.xlu1 %840 }
 0x85a   :  { %843 = vst.msk [vmem:[#allocation4 + $0x2] sm:$0x1] %vm430_vm3, %v841_v14  ;;  %3288 = vmatmul.mubr.msk.f32.vlgmr.msra.gmra.mrb[8].mxu0 %vm231_vm4, %v841_v14 }
 0x85b   :  { %3491 = vmatpush3.bf16.msra.mxu0 %v3907_v20  ;;  %3301 = vmatprep.mubr.msk.f32.mxu0 %vm3761_vm0, %v3762_v8 }
 0x85c   :  { %3495 = vmatprep.subr.bf16.mxu0 %v3760_v0 }
 0x929   :  { %v1016_v16 = vpop.f32.mrb[8].mxu1 }
 0x92a   :  { %v1020_v17 = vadd.f32 %v1016_v16, %v947_v15  ;;  %v3296_v18 = vpop.f32.mrb[9].mxu1 }
 0x92c   :  { %3616 = vtanh.f32 %v1020_v17  ;;  %v3078_v27 = vmul.f32 -1.442695, %v1020_v17 }
 0x92d   :  { %v918_v22 = vpop.f32.mrb[8].mxu0 }
 0x92e   :  { %v922_v23 = vadd.f32 %v918_v22, %v849_v21  ;;  %v3289_v24 = vpop.f32.mrb[9].mxu0 }
 0x930   :  { %3618 = vtanh.f32 %v922_v23  ;;  %v3076_v28 = vmul.f32 -1.442695, %v922_v23 }
 0x931   :  { %3620 = vpow2.f32 %v3078_v27  ;;  %v1359_v27 = vld [vmem:[#allocation3] sm:$0x1] }
 0x932   :  { %3622 = vpow2.f32 %v3076_v28 }
 0x936   :  { %v3617_v25 = vpop.eup %3616 }
 0x937   :  { %1030 = vrot.lane.b32.xlu0 %v3617_v25, %s3763_s3 }
 0x93a   :  { %v3619_v26 = vpop.eup %3618 }
 0x93b   :  { %932 = vrot.lane.b32.xlu1 %v3619_v26, %s3763_s3  ;;  %v3621_v29 = vpop.eup %3620 }
 0x93c   :  { %v1024_v30 = vadd.f32 1.0, %v3621_v29  ;;  %v3623_v31 = vpop.eup %3622 }
 0x93d   :  { %v926_v32 = vadd.f32 1.0, %v3623_v31  ;;  %v1261_v31 = vld [vmem:[#allocation2 + $0x5] sm:$0x1] }
 0x93e   :  { %3624 = vrcp.f32 %v1024_v30 }
 0x93f   :  { %3626 = vrcp.f32 %v926_v32 }
 0x948   :  { %v3625_v33 = vpop.eup %3624 }
 0x949   :  { %v3627_v36 = vpop.eup %3626  ;;  %v1028_v39 = vmul.f32 %v3625_v33, %v832_v2 }
 0x94a   :  { %v930_v42 = vmul.f32 %v3627_v36, %v734_v5 }
 0x9a9   :  { %v1031_v34 = vpop.permute.xlu0 %1030 }
 0x9aa   :  { %v1033_v35 = vmul.f32 %v3625_v33, %v1031_v34 }
 0x9ac   :  { %1035 = vrot.lane.b32.xlu0 %v1033_v35, %s3764_s6 }
 0x9ad   :  { %v933_v37 = vpop.permute.xlu1 %932 }
 0x9ae   :  { %v935_v38 = vmul.f32 %v3627_v36, %v933_v37 }
 0x9b0   :  { %937 = vrot.lane.b32.xlu1 %v935_v38, %s3764_s6 }
 0xa1e   :  { %v1036_v40 = vpop.permute.xlu0 %1035 }
 0xa1f   :  { %v1038_v41 = vadd.f32 %v1036_v40, %v1028_v39 }
 0xa21   :  { %3628 = vtanh.f32 %v1038_v41 }
 0xa22   :  { %v938_v43 = vpop.permute.xlu1 %937 }
 0xa23   :  { %v940_v44 = vadd.f32 %v938_v43, %v930_v42 }
 0xa25   :  { %3630 = vtanh.f32 %v940_v44 }
 0xa2b   :  { %v3629_v45 = vpop.eup %3628 }
 0xa2c   :  { %1041 = vrot.lane.b32.xlu0 %v3629_v45, %s3765_s23 }
 0xa2f   :  { %v3631_v46 = vpop.eup %3630 }
 0xa30   :  { %943 = vrot.lane.b32.xlu1 %v3631_v46, %s3765_s23 }
 0xa9e   :  { %v1042_v47 = vpop.permute.xlu0 %1041 }
 0xa9f   :  { %v1044_v48 = vmul.f32 %v3625_v33, %v1042_v47 }
 0xaa1   :  { %1051 = vrot.lane.b32.xlu0 %v1044_v48, %s3766_s24 }
 0xaa2   :  { %v944_v49 = vpop.permute.xlu1 %943 }
 0xaa3   :  { %v946_v50 = vmul.f32 %v3627_v36, %v944_v49 }
 0xaa5   :  { %1046 = vrot.lane.b32.xlu1 %v946_v50, %s3766_s24 }
 0xb13   :  { %v1052_v51 = vpop.permute.xlu0 %1051 }
 0xb14   :  { %1054 = vst.msk [vmem:[#allocation5 + $0x2] sm:$0x1] %vm430_vm3, %v1052_v51  ;;  %3309 = vmatmul.mubr.msk.f32.vlgmr.msra.gmra.mrb[10].mxu1 %vm231_vm4, %v1052_v51 }
 0xb15   :  { %3500 = vmatpush3.bf16.msra.mxu1 %v3904_v19  ;;  %3322 = vmatprep.mubr.msk.f32.mxu1 %vm3761_vm0, %v3762_v8 }
 0xb16   :  { %3507 = vmatprep.subr.bf16.mxu1 %v3760_v0 }
 0xb17   :  { %v1047_v52 = vpop.permute.xlu1 %1046 }
 0xb18   :  { %1049 = vst.msk [vmem:[#allocation4 + $0x3] sm:$0x1] %vm430_vm3, %v1047_v52  ;;  %3302 = vmatmul.mubr.msk.f32.vlgmr.msra.gmra.mrb[10].mxu0 %vm231_vm4, %v1047_v52 }
 0xb19   :  { %3497 = vmatpush3.bf16.msra.mxu0 %v3907_v20  ;;  %3315 = vmatprep.mubr.msk.f32.mxu0 %vm3761_vm0, %v3762_v8 }
 0xb1a   :  { %3501 = vmatprep.subr.bf16.mxu0 %v3760_v0 }
 0xbe7   :  { %v1222_v54 = vpop.f32.mrb[10].mxu1 }
 0xbe8   :  { %v1226_v19 = vadd.f32 %v1222_v54, %v1153_v53  ;;  %v3310_v55 = vpop.f32.mrb[11].mxu1 }
 0xbea   :  { %3632 = vtanh.f32 %v1226_v19  ;;  %v3082_v20 = vmul.f32 -1.442695, %v1226_v19 }
 0xbeb   :  { %v1124_v57 = vpop.f32.mrb[10].mxu0 }
 0xbec   :  { %v1128_v58 = vadd.f32 %v1124_v57, %v1055_v56  ;;  %v3303_v59 = vpop.f32.mrb[11].mxu0 }
 0xbee   :  { %3634 = vtanh.f32 %v1128_v58  ;;  %v3080_v62 = vmul.f32 -1.442695, %v1128_v58 }
 0xbef   :  { %3636 = vpow2.f32 %v3082_v20  ;;  %v1562_v20 = vld [vmem:[%s4281_s10] sm:$0xff] }
 0xbf0   :  { %3638 = vpow2.f32 %v3080_v62 }
 0xbf4   :  { %v3633_v60 = vpop.eup %3632 }
 0xbf5   :  { %1236 = vrot.lane.b32.xlu0 %v3633_v60, %s3763_s3  ;;  %v1477_v60 = vld [vmem:[%s4280_s7] sm:$0xff] }
 0xbf8   :  { %v3635_v61 = vpop.eup %3634 }
 0xbf9   :  { %1138 = vrot.lane.b32.xlu1 %v3635_v61, %s3763_s3  ;;  %v3637_v63 = vpop.eup %3636  ;;  %v1478_v61 = vld [vmem:[%s4280_s7 + $0x8] sm:$0xff] }
 0xbfa   :  { %v1230_v1 = vadd.f32 1.0, %v3637_v63  ;;  %v3639_v2 = vpop.eup %3638  ;;  %v3502_v62 = vpack.c.bf16 %v1478_v61, %v1477_v60  ;;  %v1563_v63 = vld [vmem:[%s4281_s10 + $0x8] sm:$0xff] }
 0xbfb   :  { %v1132_v3 = vadd.f32 1.0, %v3639_v2  ;;  %v1480_v2 = vld [vmem:[%s4280_s7 + $0x18] sm:$0xff] }
 0xbfc   :  { %3640 = vrcp.f32 %v1230_v1  ;;  %v1479_v1 = vld [vmem:[%s4280_s7 + $0x10] sm:$0xff] }
 0xbfd   :  { %3642 = vrcp.f32 %v1132_v3 }
 0xc06   :  { %v3641_v4 = vpop.eup %3640 }
 0xc07   :  { %v3643_v7 = vpop.eup %3642  ;;  %v1234_v11 = vmul.f32 %v3641_v4, %v1038_v41 }
 0xc08   :  { %v1136_v14 = vmul.f32 %v3643_v7, %v940_v44 }
 0xc67   :  { %v1237_v5 = vpop.permute.xlu0 %1236 }
 0xc68   :  { %v1239_v6 = vmul.f32 %v3641_v4, %v1237_v5  ;;  %v1564_v5 = vld [vmem:[%s4281_s10 + $0x10] sm:$0xff] }
 0xc6a   :  { %1241 = vrot.lane.b32.xlu0 %v1239_v6, %s3764_s6  ;;  %v1565_v6 = vld [vmem:[%s4281_s10 + $0x18] sm:$0xff] }
 0xc6b   :  { %v1139_v9 = vpop.permute.xlu1 %1138 }
 0xc6c   :  { %v1141_v10 = vmul.f32 %v3643_v7, %v1139_v9  ;;  %v3511_v9 = vpack.c.bf16 %v1565_v6, %v1564_v5 }
 0xc6e   :  { %1143 = vrot.lane.b32.xlu1 %v1141_v10, %s3764_s6 }
 0xcdc   :  { %v1242_v12 = vpop.permute.xlu0 %1241 }
 0xcdd   :  { %v1244_v13 = vadd.f32 %v1242_v12, %v1234_v11 }
 0xcdf   :  { %3644 = vtanh.f32 %v1244_v13 }
 0xce0   :  { %v1144_v15 = vpop.permute.xlu1 %1143 }
 0xce1   :  { %v1146_v16 = vadd.f32 %v1144_v15, %v1136_v14  ;;  %v1646_v15 = vld [vmem:[%s4282_s11] sm:$0xff] }
 0xce3   :  { %3646 = vtanh.f32 %v1146_v16 }
 0xce9   :  { %v3645_v17 = vpop.eup %3644 }
 0xcea   :  { %1247 = vrot.lane.b32.xlu0 %v3645_v17, %s3765_s23  ;;  %v1644_v17 = vld [vmem:[%s4283_s8] sm:$0xff] }
 0xced   :  { %v3647_v18 = vpop.eup %3646 }
 0xcee   :  { %1149 = vrot.lane.b32.xlu1 %v3647_v18, %s3765_s23  ;;  %v1645_v18 = vld [vmem:[%s4283_s8 + $0x8] sm:$0xff] }
 0xd5c   :  { %v1248_v21 = vpop.permute.xlu0 %1247 }
 0xd5d   :  { %v1250_v22 = vmul.f32 %v3641_v4, %v1248_v21  ;;  %v3508_v4 = vpack.c.bf16 %v1563_v63, %v1562_v20 }
 0xd5f   :  { %1257 = vrot.lane.b32.xlu0 %v1250_v22, %s3766_s24  ;;  %v4097_v22 = vpack.c.bf16 %v1645_v18, %v1644_v17 }
 0xd60   :  { %v1150_v23 = vpop.permute.xlu1 %1149 }
 0xd61   :  { %v1152_v24 = vmul.f32 %v3643_v7, %v1150_v23  ;;  %v3505_v7 = vpack.c.bf16 %v1480_v2, %v1479_v1 }
 0xd63   :  { %1252 = vrot.lane.b32.xlu1 %v1152_v24, %s3766_s24  ;;  %v3087_v24 = vld [vmem:[%s4284_s9] ss:$0 sm:$0xff] }
 0xdd1   :  { %v1258_v25 = vpop.permute.xlu0 %1257 }
 0xdd2   :  { %1260 = vst.msk [vmem:[#allocation5 + $0x1] sm:$0x1] %vm430_vm3, %v1258_v25  ;;  %3323 = vmatmul.mubr.msk.f32.vlgmr.msra.gmra.mrb[12].mxu1 %vm231_vm4, %v1258_v25  ;;  %v3089_v25 = vld [vmem:[%s4285_s12] ss:$0 sm:$0xff] }
 0xdd3   :  { %3344 = vmatprep.mubr.msk.f32.mxu1 %vm3761_vm0, %v3762_v8  ;;  %3509 = vmatpush3.bf16.msra.mxu1 %v3508_v4 }
 0xdd4   :  { %3510 = vmatprep.subr.bf16.mxu1 %v3760_v0 }
 0xdd5   :  { %v1253_v26 = vpop.permute.xlu1 %1252 }
 0xdd6   :  { %1255 = vst.msk [vmem:[#allocation4 + $0x4] sm:$0x1] %vm430_vm3, %v1253_v26  ;;  %3316 = vmatmul.mubr.msk.f32.vlgmr.msra.gmra.mrb[12].mxu0 %vm231_vm4, %v1253_v26 }
 0xdd7   :  { %3333 = vmatprep.mubr.msk.f32.mxu0 %vm3761_vm0, %v3762_v8  ;;  %3503 = vmatpush3.bf16.msra.mxu0 %v3502_v62 }
 0xdd8   :  { %3504 = vmatprep.subr.bf16.mxu0 %v3760_v0  ;;  %3512 = vmatpush3.bf16.msra.mxu1 %v3511_v9 }
 0xdd9   :  { %3516 = vmatprep.subr.bf16.mxu1 %v3760_v0 }
 0xddb   :  { %3506 = vmatpush3.bf16.msra.mxu0 %v3505_v7 }
 0xddc   :  { %3513 = vmatprep.subr.bf16.mxu0 %v3760_v0 }
 0xea5   :  { %v1428_v28 = vpop.f32.mrb[12].mxu1 }
 0xea6   :  { %v1432_v29 = vadd.f32 %v1428_v28, %v1359_v27  ;;  %v3324_v30 = vpop.f32.mrb[13].mxu1 }
 0xea8   :  { %3648 = vtanh.f32 %v1432_v29  ;;  %v3086_v37 = vmul.f32 -1.442695, %v1432_v29 }
 0xea9   :  { %v1330_v32 = vpop.f32.mrb[12].mxu0 }
 0xeaa   :  { %v1334_v33 = vadd.f32 %v1330_v32, %v1261_v31  ;;  %v3317_v34 = vpop.f32.mrb[13].mxu0 }
 0xeac   :  { %3650 = vtanh.f32 %v1334_v33  ;;  %v3084_v38 = vmul.f32 -1.442695, %v1334_v33 }
 0xead   :  { %3652 = vpow2.f32 %v3086_v37 }
 0xeae   :  { %3654 = vpow2.f32 %v3084_v38 }
 0xeb2   :  { %v3649_v35 = vpop.eup %3648 }
 0xeb3   :  { %1442 = vrot.lane.b32.xlu0 %v3649_v35, %s3763_s3 }
 0xeb6   :  { %v3651_v36 = vpop.eup %3650 }
 0xeb7   :  { %1344 = vrot.lane.b32.xlu1 %v3651_v36, %s3763_s3  ;;  %v3653_v39 = vpop.eup %3652 }
 0xeb8   :  { %v1436_v40 = vadd.f32 1.0, %v3653_v39  ;;  %v3655_v41 = vpop.eup %3654 }
 0xeb9   :  { %v1338_v42 = vadd.f32 1.0, %v3655_v41 }
 0xeba   :  { %3656 = vrcp.f32 %v1436_v40 }
 0xebb   :  { %3658 = vrcp.f32 %v1338_v42 }
 0xec4   :  { %v3657_v43 = vpop.eup %3656 }
 0xec5   :  { %v3659_v46 = vpop.eup %3658  ;;  %v1440_v49 = vmul.f32 %v3657_v43, %v1244_v13 }
 0xec6   :  { %v1342_v52 = vmul.f32 %v3659_v46, %v1146_v16  ;;  %v1647_v16 = vld [vmem:[%s4282_s11 + $0x8] sm:$0xff] }
 0xec7   :  { %v4095_v21 = vpack.c.bf16 %v1647_v16, %v1646_v15 }
 0xf25   :  { %v1443_v44 = vpop.permute.xlu0 %1442 }
 0xf26   :  { %v1445_v45 = vmul.f32 %v3657_v43, %v1443_v44 }
 0xf28   :  { %1447 = vrot.lane.b32.xlu0 %v1445_v45, %s3764_s6 }
 0xf29   :  { %v1345_v47 = vpop.permute.xlu1 %1344 }
 0xf2a   :  { %v1347_v48 = vmul.f32 %v3659_v46, %v1345_v47 }
 0xf2c   :  { %1349 = vrot.lane.b32.xlu1 %v1347_v48, %s3764_s6 }
 0xf9a   :  { %v1448_v50 = vpop.permute.xlu0 %1447 }
 0xf9b   :  { %v1450_v51 = vadd.f32 %v1448_v50, %v1440_v49 }
 0xf9d   :  { %3660 = vtanh.f32 %v1450_v51 }
 0xf9e   :  { %v1350_v53 = vpop.permute.xlu1 %1349 }
 0xf9f   :  { %v1352_v54 = vadd.f32 %v1350_v53, %v1342_v52 }
 0xfa1   :  { %3662 = vtanh.f32 %v1352_v54 }
 0xfa7   :  { %v3661_v19 = vpop.eup %3660 }
 0xfa8   :  { %1453 = vrot.lane.b32.xlu0 %v3661_v19, %s3765_s23 }
 0xfab   :  { %v3663_v55 = vpop.eup %3662 }
 0xfac   :  { %1355 = vrot.lane.b32.xlu1 %v3663_v55, %s3765_s23 }
0x101a   :  { %v1454_v56 = vpop.permute.xlu0 %1453 }
0x101b   :  { %v1456_v57 = vmul.f32 %v3657_v43, %v1454_v56 }
0x101d   :  { %1463 = vrot.lane.b32.xlu0 %v1456_v57, %s3766_s24 }
0x101e   :  { %v1356_v58 = vpop.permute.xlu1 %1355 }
0x101f   :  { %v1358_v59 = vmul.f32 %v3659_v46, %v1356_v58 }
0x1021   :  { %1458 = vrot.lane.b32.xlu1 %v1358_v59, %s3766_s24 }
0x108f   :  { %v1464_v3 = vpop.permute.xlu0 %1463 }
0x1090   :  { %1466 = vst.msk [vmem:[#allocation5] sm:$0x1] %vm430_vm3, %v1464_v3 }
0x1093   :  { %v1459_v10 = vpop.permute.xlu1 %1458 }
0x1094   :  { %1461 = vst.msk [vmem:[#allocation4 + $0x5] sm:$0x1] %vm430_vm3, %v1459_v10 }
0x1097   :  { %v1468_v11 = vld [vmem:[#allocation5] sm:$0x3f] }
0x1098   :  { %1470 = vrot.lane.b32.xlu0 %v1468_v11, %s3764_s6 }
0x109b   :  { %v1467_v13 = vld [vmem:[#allocation4] sm:$0x3f] }
0x110a   :  { %v1471_v12 = vpop.permute.xlu0 %1470 }
0x110b   :  { %v1473_v14 = vsel %vm231_vm4, %v1467_v13, %v1471_v12 }
0x110c   :  { %1475 = vst.msk [vmem:[#allocation6] sm:$0x3f] %vm1474_vm5, %v1473_v14 }
0x1113   :  { %v1476_v23 = vld [vmem:[#allocation6] sm:$0x3f] }
0x1114   :  { %3334 = vmatmul.mubr.msk.f32.vlgmr.msra.gmra.mrb[14].mxu0 %vm68_vm1, %v1476_v23  ;;  %3345 = vmatmul.mubr.msk.f32.vlgmr.msra.gmra.mrb[14].mxu1 %vm68_vm1, %v1476_v23 }
0x1115   :  { %3518 = vmatpush3.bf16.msra.mxu1 %v4095_v21  ;;  %3515 = vmatpush3.bf16.msra.mxu0 %v4097_v22 }
0x1116   :  { %3358 = vmatprep.mubr.msk.f32.mxu1 %vm3761_vm0, %v3762_v8  ;;  %3351 = vmatprep.mubr.msk.f32.mxu0 %vm3761_vm0, %v3762_v8 }
0x1117   :  { %3522 = vmatprep.subr.bf16.mxu1 %v3760_v0  ;;  %3519 = vmatprep.subr.bf16.mxu0 %v3760_v0 }
0x1118   :  { %3359 = vmatmul.mubr.f32.vlgmr.msra.gmra.mrb[16].mxu1 %v3762_v8  ;;  %3352 = vmatmul.mubr.f32.vlgmr.msra.gmra.mrb[16].mxu0 %v3762_v8 }
0x1119   :  { %3524 = vmatpush3.bf16.msra.mxu1 %v4095_v21  ;;  %3521 = vmatpush3.bf16.msra.mxu0 %v4097_v22 }
0x111a   :  { %3372 = vmatprep.mubr.msk.f32.mxu1 %vm3761_vm0, %v3762_v8  ;;  %3365 = vmatprep.mubr.msk.f32.mxu0 %vm3761_vm0, %v3762_v8 }
0x111b   :  { %3528 = vmatprep.subr.bf16.mxu1 %v3760_v0  ;;  %3525 = vmatprep.subr.bf16.mxu0 %v3760_v0 }
0x11e7   :  { %v1557_v26 = vpop.f32.mrb[14].mxu0  ;;  %v1639_v27 = vpop.f32.mrb[14].mxu1 }
0x11e8   :  { %v1558_v28 = vadd.f32 %v3087_v24, %v1557_v26  ;;  %v1640_v29 = vadd.f32 %v3089_v25, %v1639_v27  ;;  %v3335_v30 = vpop.f32.mrb[15].mxu0  ;;  %v3346_v31 = vpop.f32.mrb[15].mxu1 }
0x11ea   :  { %1561 = vst.msk [vmem:[#allocation2] sm:$0x3f] %vm142_vm2, %v1558_v28  ;;  %1643 = vst.msk [vmem:[#allocation3] sm:$0x3f] %vm142_vm2, %v1640_v29 }
0x11eb   :  { %v1811_v32 = vpop.f32.mrb[16].mxu1  ;;  %v1715_v33 = vpop.f32.mrb[16].mxu0 }
0x11ec   :  { %v3360_v34 = vpop.f32.mrb[17].mxu1  ;;  %v3353_v35 = vpop.f32.mrb[17].mxu0 }
0x11f1   :  { %v1744_v36 = vld [vmem:[#allocation3 + $0x5] sm:$0x1]  ;;  %v1648_v37 = vld [vmem:[#allocation2] sm:$0x1]  ;;  %v1948_v3 = vld [vmem:[#allocation3 + $0x4] sm:$0x1] }
0x11f2   :  { %v1815_v38 = vadd.f32 %v1811_v32, %v1744_v36  ;;  %v1719_v39 = vadd.f32 %v1715_v33, %v1648_v37  ;;  %v1850_v5 = vld [vmem:[#allocation2 + $0x1] sm:$0x1] }
0x11f4   :  { %3664 = vtanh.f32 %v1815_v38  ;;  %v3092_v42 = vmul.f32 -1.442695, %v1815_v38  ;;  %v3091_v43 = vmul.f32 -1.442695, %v1719_v39 }
0x11f5   :  { %3666 = vtanh.f32 %v1719_v39 }
0x11f6   :  { %3668 = vpow2.f32 %v3092_v42 }
0x11f7   :  { %3670 = vpow2.f32 %v3091_v43 }
0x11fe   :  { %v3665_v40 = vpop.eup %3664 }
0x11ff   :  { %v3667_v41 = vpop.eup %3666  ;;  %1825 = vrot.lane.b32.xlu1 %v3665_v40, %s3763_s3 }
0x1200   :  { %1729 = vrot.lane.b32.xlu0 %v3667_v41, %s3763_s3  ;;  %v3669_v44 = vpop.eup %3668 }
0x1201   :  { %v3671_v45 = vpop.eup %3670  ;;  %v1819_v46 = vadd.f32 1.0, %v3669_v44  ;;  %v2154_v44 = vld [vmem:[#allocation3 + $0x3] sm:$0x1] }
0x1202   :  { %v1723_v47 = vadd.f32 1.0, %v3671_v45 }
0x1203   :  { %3672 = vrcp.f32 %v1819_v46  ;;  %v2056_v46 = vld [vmem:[#allocation2 + $0x2] sm:$0x1] }
0x1204   :  { %3674 = vrcp.f32 %v1723_v47 }
0x120d   :  { %v3673_v48 = vpop.eup %3672 }
0x120e   :  { %v3675_v50 = vpop.eup %3674  ;;  %v1823_v54 = vmul.f32 0.0, %v3673_v48 }
0x120f   :  { %v1727_v55 = vmul.f32 0.0, %v3675_v50 }
0x1271   :  { %v1826_v49 = vpop.permute.xlu1 %1825 }
0x1272   :  { %v1828_v51 = vmul.f32 %v3673_v48, %v1826_v49  ;;  %v1730_v52 = vpop.permute.xlu0 %1729 }
0x1273   :  { %v1732_v53 = vmul.f32 %v3675_v50, %v1730_v52 }
0x1274   :  { %1830 = vrot.lane.b32.xlu1 %v1828_v51, %s3764_s6 }
0x1275   :  { %1734 = vrot.lane.b32.xlu0 %v1732_v53, %s3764_s6 }
0x12e6   :  { %v1831_v19 = vpop.permute.xlu1 %1830 }
0x12e7   :  { %v1833_v56 = vadd.f32 %v1831_v19, %v1823_v54  ;;  %v1735_v57 = vpop.permute.xlu0 %1734 }
0x12e8   :  { %v1737_v58 = vadd.f32 %v1735_v57, %v1727_v55 }
0x12e9   :  { %3676 = vtanh.f32 %v1833_v56 }
0x12ea   :  { %3678 = vtanh.f32 %v1737_v58 }
0x12f3   :  { %v3677_v59 = vpop.eup %3676 }
0x12f4   :  { %v3679_v60 = vpop.eup %3678  ;;  %1836 = vrot.lane.b32.xlu1 %v3677_v59, %s3765_s23 }
0x12f5   :  { %1740 = vrot.lane.b32.xlu0 %v3679_v60, %s3765_s23 }
0x1366   :  { %v1837_v61 = vpop.permute.xlu1 %1836 }
0x1367   :  { %v1839_v20 = vmul.f32 %v3673_v48, %v1837_v61  ;;  %v1741_v62 = vpop.permute.xlu0 %1740 }
0x1368   :  { %v1743_v63 = vmul.f32 %v3675_v50, %v1741_v62 }
0x1369   :  { %1846 = vrot.lane.b32.xlu1 %v1839_v20, %s3766_s24 }
0x136a   :  { %1841 = vrot.lane.b32.xlu0 %v1743_v63, %s3766_s24 }
0x13db   :  { %v1847_v1 = vpop.permute.xlu1 %1846 }
0x13dc   :  { %1849 = vst.msk [vmem:[#allocation5 + $0x5] sm:$0x1] %vm430_vm3, %v1847_v1  ;;  %v1842_v2 = vpop.permute.xlu0 %1841  ;;  %3373 = vmatmul.mubr.msk.f32.vlgmr.msra.gmra.mrb[18].mxu1 %vm231_vm4, %v1847_v1 }
0x13dd   :  { %1844 = vst.msk [vmem:[#allocation4] sm:$0x1] %vm430_vm3, %v1842_v2  ;;  %3366 = vmatmul.mubr.msk.f32.vlgmr.msra.gmra.mrb[18].mxu0 %vm231_vm4, %v1842_v2  ;;  %3530 = vmatpush3.bf16.msra.mxu1 %v4095_v21 }
0x13de   :  { %3527 = vmatpush3.bf16.msra.mxu0 %v4097_v22  ;;  %3386 = vmatprep.mubr.msk.f32.mxu1 %vm3761_vm0, %v3762_v8 }
0x13df   :  { %3379 = vmatprep.mubr.msk.f32.mxu0 %vm3761_vm0, %v3762_v8  ;;  %3534 = vmatprep.subr.bf16.mxu1 %v3760_v0 }
0x13e0   :  { %3531 = vmatprep.subr.bf16.mxu0 %v3760_v0 }
0x14af   :  { %v2017_v4 = vpop.f32.mrb[18].mxu1 }
0x14b0   :  { %v1919_v6 = vpop.f32.mrb[18].mxu0  ;;  %v2021_v7 = vadd.f32 %v2017_v4, %v1948_v3  ;;  %v3374_v9 = vpop.f32.mrb[19].mxu1 }
0x14b1   :  { %v1923_v10 = vadd.f32 %v1919_v6, %v1850_v5  ;;  %v3367_v11 = vpop.f32.mrb[19].mxu0 }
0x14b2   :  { %3680 = vtanh.f32 %v2021_v7  ;;  %v3096_v14 = vmul.f32 -1.442695, %v2021_v7 }
0x14b3   :  { %3682 = vtanh.f32 %v1923_v10  ;;  %v3094_v15 = vmul.f32 -1.442695, %v1923_v10 }
0x14b4   :  { %3684 = vpow2.f32 %v3096_v14 }
0x14b5   :  { %3686 = vpow2.f32 %v3094_v15 }
0x14bc   :  { %v3681_v12 = vpop.eup %3680 }
0x14bd   :  { %v3683_v13 = vpop.eup %3682  ;;  %2031 = vrot.lane.b32.xlu1 %v3681_v12, %s3763_s3 }
0x14be   :  { %1933 = vrot.lane.b32.xlu0 %v3683_v13, %s3763_s3  ;;  %v3685_v16 = vpop.eup %3684 }
0x14bf   :  { %v3687_v17 = vpop.eup %3686  ;;  %v2025_v18 = vadd.f32 1.0, %v3685_v16  ;;  %v2360_v16 = vld [vmem:[#allocation3 + $0x2] sm:$0x1] }
0x14c0   :  { %v1927_v23 = vadd.f32 1.0, %v3687_v17 }
0x14c1   :  { %3688 = vrcp.f32 %v2025_v18  ;;  %v2262_v18 = vld [vmem:[#allocation2 + $0x3] sm:$0x1] }
0x14c2   :  { %3690 = vrcp.f32 %v1927_v23 }
0x14cb   :  { %v3689_v24 = vpop.eup %3688 }
0x14cc   :  { %v3691_v26 = vpop.eup %3690  ;;  %v2029_v30 = vmul.f32 %v3689_v24, %v1833_v56 }
0x14cd   :  { %v1931_v32 = vmul.f32 %v3691_v26, %v1737_v58 }
0x152f   :  { %v2032_v25 = vpop.permute.xlu1 %2031 }
0x1530   :  { %v2034_v27 = vmul.f32 %v3689_v24, %v2032_v25  ;;  %v1934_v28 = vpop.permute.xlu0 %1933 }
0x1531   :  { %v1936_v29 = vmul.f32 %v3691_v26, %v1934_v28 }
0x1532   :  { %2036 = vrot.lane.b32.xlu1 %v2034_v27, %s3764_s6 }
0x1533   :  { %1938 = vrot.lane.b32.xlu0 %v1936_v29, %s3764_s6 }
0x15a4   :  { %v2037_v31 = vpop.permute.xlu1 %2036 }
0x15a5   :  { %v2039_v33 = vadd.f32 %v2037_v31, %v2029_v30  ;;  %v1939_v34 = vpop.permute.xlu0 %1938 }
0x15a6   :  { %v1941_v35 = vadd.f32 %v1939_v34, %v1931_v32 }
0x15a7   :  { %3692 = vtanh.f32 %v2039_v33 }
0x15a8   :  { %3694 = vtanh.f32 %v1941_v35 }
0x15b1   :  { %v3693_v36 = vpop.eup %3692 }
0x15b2   :  { %v3695_v37 = vpop.eup %3694  ;;  %2042 = vrot.lane.b32.xlu1 %v3693_v36, %s3765_s23 }
0x15b3   :  { %1944 = vrot.lane.b32.xlu0 %v3695_v37, %s3765_s23 }
0x1624   :  { %v2043_v38 = vpop.permute.xlu1 %2042 }
0x1625   :  { %v2045_v39 = vmul.f32 %v3689_v24, %v2043_v38  ;;  %v1945_v40 = vpop.permute.xlu0 %1944 }
0x1626   :  { %v1947_v41 = vmul.f32 %v3691_v26, %v1945_v40 }
0x1627   :  { %2052 = vrot.lane.b32.xlu1 %v2045_v39, %s3766_s24 }
0x1628   :  { %2047 = vrot.lane.b32.xlu0 %v1947_v41, %s3766_s24 }
0x1699   :  { %v2053_v42 = vpop.permute.xlu1 %2052 }
0x169a   :  { %2055 = vst.msk [vmem:[#allocation5 + $0x4] sm:$0x1] %vm430_vm3, %v2053_v42  ;;  %v2048_v43 = vpop.permute.xlu0 %2047  ;;  %3387 = vmatmul.mubr.msk.f32.vlgmr.msra.gmra.mrb[20].mxu1 %vm231_vm4, %v2053_v42 }
0x169b   :  { %2050 = vst.msk [vmem:[#allocation4 + $0x1] sm:$0x1] %vm430_vm3, %v2048_v43  ;;  %3380 = vmatmul.mubr.msk.f32.vlgmr.msra.gmra.mrb[20].mxu0 %vm231_vm4, %v2048_v43  ;;  %3536 = vmatpush3.bf16.msra.mxu1 %v4095_v21 }
0x169c   :  { %3533 = vmatpush3.bf16.msra.mxu0 %v4097_v22  ;;  %3400 = vmatprep.mubr.msk.f32.mxu1 %vm3761_vm0, %v3762_v8 }
0x169d   :  { %3393 = vmatprep.mubr.msk.f32.mxu0 %vm3761_vm0, %v3762_v8  ;;  %3540 = vmatprep.subr.bf16.mxu1 %v3760_v0 }
0x169e   :  { %3537 = vmatprep.subr.bf16.mxu0 %v3760_v0 }
0x176d   :  { %v2223_v45 = vpop.f32.mrb[20].mxu1 }
0x176e   :  { %v2125_v47 = vpop.f32.mrb[20].mxu0  ;;  %v2227_v48 = vadd.f32 %v2223_v45, %v2154_v44  ;;  %v3388_v49 = vpop.f32.mrb[21].mxu1 }
0x176f   :  { %v2129_v50 = vadd.f32 %v2125_v47, %v2056_v46  ;;  %v3381_v51 = vpop.f32.mrb[21].mxu0 }
0x1770   :  { %3696 = vtanh.f32 %v2227_v48  ;;  %v3100_v54 = vmul.f32 -1.442695, %v2227_v48 }
0x1771   :  { %3698 = vtanh.f32 %v2129_v50  ;;  %v3098_v19 = vmul.f32 -1.442695, %v2129_v50 }
0x1772   :  { %3700 = vpow2.f32 %v3100_v54 }
0x1773   :  { %3702 = vpow2.f32 %v3098_v19 }
0x177a   :  { %v3697_v52 = vpop.eup %3696 }
0x177b   :  { %v3699_v53 = vpop.eup %3698  ;;  %2237 = vrot.lane.b32.xlu1 %v3697_v52, %s3763_s3 }
0x177c   :  { %2139 = vrot.lane.b32.xlu0 %v3699_v53, %s3763_s3  ;;  %v3701_v55 = vpop.eup %3700 }
0x177d   :  { %v3703_v56 = vpop.eup %3702  ;;  %v2231_v57 = vadd.f32 1.0, %v3701_v55  ;;  %v2566_v55 = vld [vmem:[#allocation3 + $0x1] sm:$0x1] }
0x177e   :  { %v2133_v58 = vadd.f32 1.0, %v3703_v56 }
0x177f   :  { %3704 = vrcp.f32 %v2231_v57  ;;  %v2468_v57 = vld [vmem:[#allocation2 + $0x4] sm:$0x1] }
0x1780   :  { %3706 = vrcp.f32 %v2133_v58 }
0x1789   :  { %v3705_v59 = vpop.eup %3704 }
0x178a   :  { %v3707_v61 = vpop.eup %3706  ;;  %v2235_v1 = vmul.f32 %v3705_v59, %v2039_v33 }
0x178b   :  { %v2137_v3 = vmul.f32 %v3707_v61, %v1941_v35 }
0x17ed   :  { %v2238_v60 = vpop.permute.xlu1 %2237 }
0x17ee   :  { %v2240_v20 = vmul.f32 %v3705_v59, %v2238_v60  ;;  %v2140_v62 = vpop.permute.xlu0 %2139 }
0x17ef   :  { %v2142_v63 = vmul.f32 %v3707_v61, %v2140_v62 }
0x17f0   :  { %2242 = vrot.lane.b32.xlu1 %v2240_v20, %s3764_s6 }
0x17f1   :  { %2144 = vrot.lane.b32.xlu0 %v2142_v63, %s3764_s6 }
0x1862   :  { %v2243_v2 = vpop.permute.xlu1 %2242 }
0x1863   :  { %v2245_v4 = vadd.f32 %v2243_v2, %v2235_v1  ;;  %v2145_v5 = vpop.permute.xlu0 %2144 }
0x1864   :  { %v2147_v6 = vadd.f32 %v2145_v5, %v2137_v3 }
0x1865   :  { %3708 = vtanh.f32 %v2245_v4 }
0x1866   :  { %3710 = vtanh.f32 %v2147_v6 }
0x186f   :  { %v3709_v7 = vpop.eup %3708 }
0x1870   :  { %v3711_v9 = vpop.eup %3710  ;;  %2248 = vrot.lane.b32.xlu1 %v3709_v7, %s3765_s23 }
0x1871   :  { %2150 = vrot.lane.b32.xlu0 %v3711_v9, %s3765_s23 }
0x18e2   :  { %v2249_v10 = vpop.permute.xlu1 %2248 }
0x18e3   :  { %v2251_v11 = vmul.f32 %v3705_v59, %v2249_v10  ;;  %v2151_v12 = vpop.permute.xlu0 %2150 }
0x18e4   :  { %v2153_v13 = vmul.f32 %v3707_v61, %v2151_v12 }
0x18e5   :  { %2258 = vrot.lane.b32.xlu1 %v2251_v11, %s3766_s24 }
0x18e6   :  { %2253 = vrot.lane.b32.xlu0 %v2153_v13, %s3766_s24 }
0x1957   :  { %v2259_v14 = vpop.permute.xlu1 %2258 }
0x1958   :  { %2261 = vst.msk [vmem:[#allocation5 + $0x3] sm:$0x1] %vm430_vm3, %v2259_v14  ;;  %v2254_v15 = vpop.permute.xlu0 %2253  ;;  %3401 = vmatmul.mubr.msk.f32.vlgmr.msra.gmra.mrb[22].mxu1 %vm231_vm4, %v2259_v14 }
0x1959   :  { %2256 = vst.msk [vmem:[#allocation4 + $0x2] sm:$0x1] %vm430_vm3, %v2254_v15  ;;  %3394 = vmatmul.mubr.msk.f32.vlgmr.msra.gmra.mrb[22].mxu0 %vm231_vm4, %v2254_v15  ;;  %3542 = vmatpush3.bf16.msra.mxu1 %v4095_v21 }
0x195a   :  { %3539 = vmatpush3.bf16.msra.mxu0 %v4097_v22  ;;  %3414 = vmatprep.mubr.msk.f32.mxu1 %vm3761_vm0, %v3762_v8 }
0x195b   :  { %3407 = vmatprep.mubr.msk.f32.mxu0 %vm3761_vm0, %v3762_v8  ;;  %3546 = vmatprep.subr.bf16.mxu1 %v3760_v0 }
0x195c   :  { %3543 = vmatprep.subr.bf16.mxu0 %v3760_v0 }
0x1a2b   :  { %v2429_v17 = vpop.f32.mrb[22].mxu1 }
0x1a2c   :  { %v2331_v23 = vpop.f32.mrb[22].mxu0  ;;  %v2433_v24 = vadd.f32 %v2429_v17, %v2360_v16  ;;  %v3402_v25 = vpop.f32.mrb[23].mxu1 }
0x1a2d   :  { %v2335_v26 = vadd.f32 %v2331_v23, %v2262_v18  ;;  %v3395_v27 = vpop.f32.mrb[23].mxu0 }
0x1a2e   :  { %3712 = vtanh.f32 %v2433_v24  ;;  %v3104_v30 = vmul.f32 -1.442695, %v2433_v24 }
0x1a2f   :  { %3714 = vtanh.f32 %v2335_v26  ;;  %v3102_v31 = vmul.f32 -1.442695, %v2335_v26 }
0x1a30   :  { %3716 = vpow2.f32 %v3104_v30  ;;  %v2772_v30 = vld [vmem:[#allocation3] sm:$0x1] }
0x1a31   :  { %3718 = vpow2.f32 %v3102_v31 }
0x1a38   :  { %v3713_v28 = vpop.eup %3712 }
0x1a39   :  { %v3715_v29 = vpop.eup %3714  ;;  %2443 = vrot.lane.b32.xlu1 %v3713_v28, %s3763_s3 }
0x1a3a   :  { %2345 = vrot.lane.b32.xlu0 %v3715_v29, %s3763_s3  ;;  %v3717_v32 = vpop.eup %3716 }
0x1a3b   :  { %v3719_v33 = vpop.eup %3718  ;;  %v2437_v34 = vadd.f32 1.0, %v3717_v32  ;;  %v2674_v32 = vld [vmem:[#allocation2 + $0x5] sm:$0x1] }
0x1a3c   :  { %v2339_v35 = vadd.f32 1.0, %v3719_v33 }
0x1a3d   :  { %3720 = vrcp.f32 %v2437_v34 }
0x1a3e   :  { %3722 = vrcp.f32 %v2339_v35 }
0x1a47   :  { %v3721_v36 = vpop.eup %3720 }
0x1a48   :  { %v3723_v38 = vpop.eup %3722  ;;  %v2441_v42 = vmul.f32 %v3721_v36, %v2245_v4 }
0x1a49   :  { %v2343_v44 = vmul.f32 %v3723_v38, %v2147_v6 }
0x1aab   :  { %v2444_v37 = vpop.permute.xlu1 %2443 }
0x1aac   :  { %v2446_v39 = vmul.f32 %v3721_v36, %v2444_v37  ;;  %v2346_v40 = vpop.permute.xlu0 %2345 }
0x1aad   :  { %v2348_v41 = vmul.f32 %v3723_v38, %v2346_v40 }
0x1aae   :  { %2448 = vrot.lane.b32.xlu1 %v2446_v39, %s3764_s6 }
0x1aaf   :  { %2350 = vrot.lane.b32.xlu0 %v2348_v41, %s3764_s6 }
0x1b20   :  { %v2449_v43 = vpop.permute.xlu1 %2448 }
0x1b21   :  { %v2451_v45 = vadd.f32 %v2449_v43, %v2441_v42  ;;  %v2351_v46 = vpop.permute.xlu0 %2350 }
0x1b22   :  { %v2353_v47 = vadd.f32 %v2351_v46, %v2343_v44 }
0x1b23   :  { %3724 = vtanh.f32 %v2451_v45 }
0x1b24   :  { %3726 = vtanh.f32 %v2353_v47 }
0x1b2d   :  { %v3725_v48 = vpop.eup %3724 }
0x1b2e   :  { %v3727_v49 = vpop.eup %3726  ;;  %2454 = vrot.lane.b32.xlu1 %v3725_v48, %s3765_s23 }
0x1b2f   :  { %2356 = vrot.lane.b32.xlu0 %v3727_v49, %s3765_s23 }
0x1ba0   :  { %v2455_v50 = vpop.permute.xlu1 %2454 }
0x1ba1   :  { %v2457_v51 = vmul.f32 %v3721_v36, %v2455_v50  ;;  %v2357_v52 = vpop.permute.xlu0 %2356 }
0x1ba2   :  { %v2359_v53 = vmul.f32 %v3723_v38, %v2357_v52 }
0x1ba3   :  { %2464 = vrot.lane.b32.xlu1 %v2457_v51, %s3766_s24 }
0x1ba4   :  { %2459 = vrot.lane.b32.xlu0 %v2359_v53, %s3766_s24 }
0x1c15   :  { %v2465_v54 = vpop.permute.xlu1 %2464 }
0x1c16   :  { %2467 = vst.msk [vmem:[#allocation5 + $0x2] sm:$0x1] %vm430_vm3, %v2465_v54  ;;  %v2460_v19 = vpop.permute.xlu0 %2459  ;;  %3415 = vmatmul.mubr.msk.f32.vlgmr.msra.gmra.mrb[24].mxu1 %vm231_vm4, %v2465_v54 }
0x1c17   :  { %2462 = vst.msk [vmem:[#allocation4 + $0x3] sm:$0x1] %vm430_vm3, %v2460_v19  ;;  %3408 = vmatmul.mubr.msk.f32.vlgmr.msra.gmra.mrb[24].mxu0 %vm231_vm4, %v2460_v19  ;;  %3548 = vmatpush3.bf16.msra.mxu1 %v4095_v21 }
0x1c18   :  { %3545 = vmatpush3.bf16.msra.mxu0 %v4097_v22  ;;  %3428 = vmatprep.mubr.msk.f32.mxu1 %vm3761_vm0, %v3762_v8 }
0x1c19   :  { %3421 = vmatprep.mubr.msk.f32.mxu0 %vm3761_vm0, %v3762_v8  ;;  %3549 = vmatprep.subr.bf16.mxu0 %v3760_v0 }
0x1c1a   :  { %3555 = vmatprep.subr.bf16.mxu1 %v3760_v0 }
0x1ce9   :  { %v2635_v56 = vpop.f32.mrb[24].mxu1 }
0x1cea   :  { %v2537_v58 = vpop.f32.mrb[24].mxu0  ;;  %v2639_v59 = vadd.f32 %v2635_v56, %v2566_v55  ;;  %v3416_v60 = vpop.f32.mrb[25].mxu1 }
0x1ceb   :  { %v2541_v61 = vadd.f32 %v2537_v58, %v2468_v57  ;;  %v3409_v21 = vpop.f32.mrb[25].mxu0  ;;  %v2887_v58 = vld [vmem:[%s4286_s13] sm:$0xff]  ;;  %v2889_v60 = vld [vmem:[%s4286_s13 + $0x10] sm:$0xff] }
0x1cec   :  { %3728 = vtanh.f32 %v2639_v59  ;;  %v3108_v62 = vmul.f32 -1.442695, %v2639_v59  ;;  %v2888_v59 = vld [vmem:[%s4286_s13 + $0x8] sm:$0xff] }
0x1ced   :  { %3730 = vtanh.f32 %v2541_v61  ;;  %v3106_v63 = vmul.f32 -1.442695, %v2541_v61  ;;  %v3550_v21 = vpack.c.bf16 %v2888_v59, %v2887_v58 }
0x1cee   :  { %3732 = vpow2.f32 %v3108_v62 }
0x1cef   :  { %3734 = vpow2.f32 %v3106_v63 }
0x1cf6   :  { %v3729_v22 = vpop.eup %3728 }
0x1cf7   :  { %v3731_v20 = vpop.eup %3730  ;;  %2649 = vrot.lane.b32.xlu1 %v3729_v22, %s3763_s3  ;;  %v2890_v22 = vld [vmem:[%s4286_s13 + $0x18] sm:$0xff] }
0x1cf8   :  { %2551 = vrot.lane.b32.xlu0 %v3731_v20, %s3763_s3  ;;  %v3733_v1 = vpop.eup %3732 }
0x1cf9   :  { %v3735_v2 = vpop.eup %3734  ;;  %v2643_v3 = vadd.f32 1.0, %v3733_v1  ;;  %v3553_v1 = vpack.c.bf16 %v2890_v22, %v2889_v60 }
0x1cfa   :  { %v2545_v4 = vadd.f32 1.0, %v3735_v2  ;;  %v2972_v2 = vld [vmem:[%s4287_s15] sm:$0xff] }
0x1cfb   :  { %3736 = vrcp.f32 %v2643_v3  ;;  %v2973_v3 = vld [vmem:[%s4287_s15 + $0x8] sm:$0xff] }
0x1cfc   :  { %3738 = vrcp.f32 %v2545_v4  ;;  %v3556_v4 = vpack.c.bf16 %v2973_v3, %v2972_v2 }
0x1d05   :  { %v3737_v5 = vpop.eup %3736 }
0x1d06   :  { %v3739_v7 = vpop.eup %3738  ;;  %v2647_v12 = vmul.f32 %v3737_v5, %v2451_v45 }
0x1d07   :  { %v2549_v14 = vmul.f32 %v3739_v7, %v2353_v47 }
0x1d69   :  { %v2650_v6 = vpop.permute.xlu1 %2649 }
0x1d6a   :  { %v2652_v9 = vmul.f32 %v3737_v5, %v2650_v6  ;;  %v2552_v10 = vpop.permute.xlu0 %2551 }
0x1d6b   :  { %v2554_v11 = vmul.f32 %v3739_v7, %v2552_v10 }
0x1d6c   :  { %2654 = vrot.lane.b32.xlu1 %v2652_v9, %s3764_s6 }
0x1d6d   :  { %2556 = vrot.lane.b32.xlu0 %v2554_v11, %s3764_s6 }
0x1dde   :  { %v2655_v13 = vpop.permute.xlu1 %2654 }
0x1ddf   :  { %v2657_v15 = vadd.f32 %v2655_v13, %v2647_v12  ;;  %v2557_v16 = vpop.permute.xlu0 %2556  ;;  %v2974_v12 = vld [vmem:[%s4287_s15 + $0x10] sm:$0xff]  ;;  %v2975_v13 = vld [vmem:[%s4287_s15 + $0x18] sm:$0xff] }
0x1de0   :  { %v2559_v17 = vadd.f32 %v2557_v16, %v2549_v14  ;;  %v3559_v14 = vpack.c.bf16 %v2975_v13, %v2974_v12 }
0x1de1   :  { %3740 = vtanh.f32 %v2657_v15 }
0x1de2   :  { %3742 = vtanh.f32 %v2559_v17 }
0x1deb   :  { %v3741_v18 = vpop.eup %3740 }
0x1dec   :  { %v3743_v23 = vpop.eup %3742  ;;  %2660 = vrot.lane.b32.xlu1 %v3741_v18, %s3765_s23 }
0x1ded   :  { %2562 = vrot.lane.b32.xlu0 %v3743_v23, %s3765_s23  ;;  %v3115_v23 = vld [vmem:[%s4289_s16] ss:$0 sm:$0xff] }
0x1e5e   :  { %v2661_v24 = vpop.permute.xlu1 %2660 }
0x1e5f   :  { %v2663_v25 = vmul.f32 %v3737_v5, %v2661_v24  ;;  %v2563_v26 = vpop.permute.xlu0 %2562 }
0x1e60   :  { %v2565_v27 = vmul.f32 %v3739_v7, %v2563_v26 }
0x1e61   :  { %2670 = vrot.lane.b32.xlu1 %v2663_v25, %s3766_s24 }
0x1e62   :  { %2665 = vrot.lane.b32.xlu0 %v2565_v27, %s3766_s24 }
0x1ed3   :  { %v2671_v28 = vpop.permute.xlu1 %2670 }
0x1ed4   :  { %2673 = vst.msk [vmem:[#allocation5 + $0x1] sm:$0x1] %vm430_vm3, %v2671_v28  ;;  %v2666_v29 = vpop.permute.xlu0 %2665  ;;  %3429 = vmatmul.mubr.msk.f32.vlgmr.msra.gmra.mrb[26].mxu1 %vm231_vm4, %v2671_v28 }
0x1ed5   :  { %2668 = vst.msk [vmem:[#allocation4 + $0x4] sm:$0x1] %vm430_vm3, %v2666_v29  ;;  %3422 = vmatmul.mubr.msk.f32.vlgmr.msra.gmra.mrb[26].mxu0 %vm231_vm4, %v2666_v29  ;;  %3450 = vmatprep.mubr.msk.f32.mxu1 %vm3761_vm0, %v3762_v8 }
0x1ed6   :  { %3439 = vmatprep.mubr.msk.f32.mxu0 %vm3761_vm0, %v3762_v8  ;;  %3551 = vmatpush3.bf16.msra.mxu0 %v3550_v21 }
0x1ed7   :  { %3552 = vmatprep.subr.bf16.mxu0 %v3760_v0  ;;  %3557 = vmatpush3.bf16.msra.mxu1 %v3556_v4 }
0x1ed8   :  { %3558 = vmatprep.subr.bf16.mxu1 %v3760_v0  ;;  %v3113_v0 = vld [vmem:[%s4288_s14] ss:$0 sm:$0xff] }
0x1eda   :  { %3554 = vmatpush3.bf16.msra.mxu0 %v3553_v1 }
0x1edb   :  { %3560 = vmatpush3.bf16.msra.mxu1 %v3559_v14 }
0x1fa7   :  { %v2841_v31 = vpop.f32.mrb[26].mxu1 }
0x1fa8   :  { %v2743_v33 = vpop.f32.mrb[26].mxu0  ;;  %v2845_v34 = vadd.f32 %v2841_v31, %v2772_v30  ;;  %v3430_v35 = vpop.f32.mrb[27].mxu1 }
0x1fa9   :  { %v2747_v36 = vadd.f32 %v2743_v33, %v2674_v32  ;;  %v3423_v37 = vpop.f32.mrb[27].mxu0 }
0x1faa   :  { %3744 = vtanh.f32 %v2845_v34  ;;  %v3112_v40 = vmul.f32 -1.442695, %v2845_v34 }
0x1fab   :  { %3746 = vtanh.f32 %v2747_v36  ;;  %v3110_v41 = vmul.f32 -1.442695, %v2747_v36 }
0x1fac   :  { %3748 = vpow2.f32 %v3112_v40 }
0x1fad   :  { %3750 = vpow2.f32 %v3110_v41 }
0x1fb4   :  { %v3745_v38 = vpop.eup %3744 }
0x1fb5   :  { %v3747_v39 = vpop.eup %3746  ;;  %2855 = vrot.lane.b32.xlu1 %v3745_v38, %s3763_s3 }
0x1fb6   :  { %2757 = vrot.lane.b32.xlu0 %v3747_v39, %s3763_s3  ;;  %v3749_v8 = vpop.eup %3748 }
0x1fb7   :  { %v3751_v42 = vpop.eup %3750  ;;  %v2849_v43 = vadd.f32 1.0, %v3749_v8 }
0x1fb8   :  { %v2751_v44 = vadd.f32 1.0, %v3751_v42 }
0x1fb9   :  { %3752 = vrcp.f32 %v2849_v43 }
0x1fba   :  { %3754 = vrcp.f32 %v2751_v44 }
0x1fc3   :  { %v3753_v45 = vpop.eup %3752 }
0x1fc4   :  { %v3755_v47 = vpop.eup %3754  ;;  %v2853_v51 = vmul.f32 %v3753_v45, %v2657_v15 }
0x1fc5   :  { %v2755_v53 = vmul.f32 %v3755_v47, %v2559_v17 }
0x2027   :  { %v2856_v46 = vpop.permute.xlu1 %2855 }
0x2028   :  { %v2858_v48 = vmul.f32 %v3753_v45, %v2856_v46  ;;  %v2758_v49 = vpop.permute.xlu0 %2757 }
0x2029   :  { %v2760_v50 = vmul.f32 %v3755_v47, %v2758_v49 }
0x202a   :  { %2860 = vrot.lane.b32.xlu1 %v2858_v48, %s3764_s6 }
0x202b   :  { %2762 = vrot.lane.b32.xlu0 %v2760_v50, %s3764_s6 }
0x209c   :  { %v2861_v52 = vpop.permute.xlu1 %2860 }
0x209d   :  { %v2863_v54 = vadd.f32 %v2861_v52, %v2853_v51  ;;  %v2763_v19 = vpop.permute.xlu0 %2762 }
0x209e   :  { %v2765_v55 = vadd.f32 %v2763_v19, %v2755_v53 }
0x209f   :  { %3756 = vtanh.f32 %v2863_v54 }
0x20a0   :  { %3758 = vtanh.f32 %v2765_v55 }
0x20a9   :  { %v3757_v56 = vpop.eup %3756 }
0x20aa   :  { %v3759_v57 = vpop.eup %3758  ;;  %2866 = vrot.lane.b32.xlu1 %v3757_v56, %s3765_s23 }
0x20ab   :  { %2768 = vrot.lane.b32.xlu0 %v3759_v57, %s3765_s23 }
0x211c   :  { %v2867_v61 = vpop.permute.xlu1 %2866 }
0x211d   :  { %v2869_v20 = vmul.f32 %v3753_v45, %v2867_v61  ;;  %v2769_v62 = vpop.permute.xlu0 %2768 }
0x211e   :  { %v2771_v63 = vmul.f32 %v3755_v47, %v2769_v62 }
0x211f   :  { %2876 = vrot.lane.b32.xlu1 %v2869_v20, %s3766_s24 }
0x2120   :  { %2871 = vrot.lane.b32.xlu0 %v2771_v63, %s3766_s24 }
0x2191   :  { %v2877_v5 = vpop.permute.xlu1 %2876 }
0x2192   :  { %2879 = vst.msk [vmem:[#allocation5] sm:$0x1] %vm430_vm3, %v2877_v5  ;;  %v2872_v6 = vpop.permute.xlu0 %2871 }
0x2193   :  { %2874 = vst.msk [vmem:[#allocation4 + $0x5] sm:$0x1] %vm430_vm3, %v2872_v6 }
0x2199   :  { %v2881_v7 = vld [vmem:[#allocation5] sm:$0x3f] }
0x219a   :  { %2883 = vrot.lane.b32.xlu1 %v2881_v7, %s3764_s6  ;;  %v2880_v10 = vld [vmem:[#allocation4] sm:$0x3f] }
0x220c   :  { %v2884_v9 = vpop.permute.xlu1 %2883 }
0x220d   :  { %v2886_v11 = vsel %vm231_vm4, %v2880_v10, %v2884_v9 }
0x220e   :  { %3440 = vmatmul.mubr.msk.f32.vlgmr.msra.gmra.mrb[28].mxu0 %vm68_vm1, %v2886_v11 }
0x22e1   :  { %v2967_v15 = vpop.f32.mrb[28].mxu0 }
0x22e2   :  { %v2968_v16 = vadd.f32 %v3113_v0, %v2967_v15  ;;  %v3441_v17 = vpop.f32.mrb[29].mxu0 }
0x22e4   :  { %v2971_v18 = vmax.f32 %v2968_v16, 0.0 }
0x22e6   :  { %3451 = vmatmul.mubr.msk.f32.vlgmr.msra.gmra.mrb[28].mxu1 %vm68_vm1, %v2971_v18 }
0x23b9   :  { %v3052_v24 = vpop.f32.mrb[28].mxu1 }
0x23ba   :  { %v3053_v25 = vadd.f32 %v3115_v23, %v3052_v24  ;;  %v3452_v26 = vpop.f32.mrb[29].mxu1 }
0x23bc   :  { %3056 = vst.msk [vmem:[%s4290_s17] sm:$0x3f] %vm1474_vm5, %v3053_v25 }

</bundles_post_ra>
